<compile_context>
chip_gen: v7x
topology: tpu7x:2x2x1
jax: 0.10.0
libtpu: 0.0.40
codegen_flags: <defaults>
</compile_context>

<pallas_src>
import functools

import jax
import jax.numpy as jnp
from jax import lax
from jax.experimental import pallas as pl
from jax.experimental.pallas import tpu as pltpu


# ----------------------------------------------------------------------------
# In-kernel helpers
# ----------------------------------------------------------------------------
def _erf(x):
    # Abramowitz & Stegun 7.1.26 polynomial erf (|err| < 1.5e-7); exp/add/mul/div only.
    a1, a2, a3, a4, a5 = 0.254829592, -0.284496736, 1.421413741, -1.453152027, 1.061405429
    p = 0.3275911
    s = jnp.where(x >= 0.0, 1.0, -1.0)
    ax = jnp.abs(x)
    t = 1.0 / (1.0 + p * ax)
    poly = ((((a5 * t + a4) * t + a3) * t + a2) * t + a1) * t
    return s * (1.0 - poly * jnp.exp(-ax * ax))


def _gelu_exact(x):
    # nn.GELU() default (erf-based) GELU.
    return 0.5 * x * (1.0 + _erf(x * 0.7071067811865476))


def _shift0(x, delta, axis):
    """out[i] = x[i + delta] along `axis`, zero-filled outside (static delta)."""
    if delta == 0:
        return x
    n = x.shape[axis]
    d = abs(delta)
    if d >= n:
        return jnp.zeros_like(x)
    zshape = list(x.shape)
    zshape[axis] = d
    zeros = jnp.zeros(zshape, x.dtype)
    if delta > 0:
        return jnp.concatenate([lax.slice_in_dim(x, d, n, axis=axis), zeros], axis=axis)
    return jnp.concatenate([zeros, lax.slice_in_dim(x, 0, n - d, axis=axis)], axis=axis)


def _block_max(x, f, axis, iota):
    """Within aligned blocks of size f along `axis`, broadcast the block max to
    every element (== adaptive max-pool(f) followed by nearest upsample(f)).
    XOR butterfly: log2(f) steps of 2 shifts + select + max (XLU/VPU work)."""
    p = x
    d = 1
    while d < f:
        hi = _shift0(p, +d, axis)          # value at index + d
        lo = _shift0(p, -d, axis)          # value at index - d
        partner = jnp.where((iota & d) == 0, hi, lo)
        p = jnp.maximum(p, partner)
        d *= 2
    return p


# ----------------------------------------------------------------------------
# Kernel 1: per row-tile, all levels fused:
#   max-pool(f) + depthwise 3x3 (as dilated conv at full res) + bias + nearest
#   upsample + channel concat.  Output == "cat" tensor in NCHW.
# ----------------------------------------------------------------------------
def _mfr_kernel(xc_ref, xp_ref, xn_ref, w_ref, b_ref, o_ref, *,
                n_levels, cc, th, halo, height):
    # xc_ref : (1, C, TH,   W)      current row tile of x (NCHW)
    # xp_ref : (1, C, HALO, W)      HALO rows above (clamped at the top edge)
    # xn_ref : (1, C, HALO, W)      HALO rows below (clamped at the bottom edge)
    # w_ref  : (n_levels*9, cc, 1, 1)  depthwise taps, index = level*9 + kh*3 + kw
    # b_ref  : (C, 1, 1)
    # o_ref  : (1, C, TH, W)
    width = xc_ref.shape[3]
    r0 = pl.program_id(1) * th                                     # global row of out row 0
    xin = jnp.concatenate([xp_ref[0], xc_ref[0], xn_ref[0]], axis=1)   # (C, TH+2*HALO, W)
    rows_in = th + 2 * halo

    row_out = lax.broadcasted_iota(jnp.int32, (th, width), 0) + r0     # global output rows
    iota_h = lax.broadcasted_iota(jnp.int32, (rows_in, width), 0)      # butterfly parity (rows)
    iota_w = lax.broadcasted_iota(jnp.int32, (rows_in, width), 1)      # butterfly parity (cols)

    outs = []
    for lvl in range(n_levels):
        f = 1 << lvl
        x_l = xin[lvl * cc:(lvl + 1) * cc]                         # (cc, rows_in, W)
        # fused adaptive max-pool + nearest upsample (block max broadcast)
        p = _block_max(x_l, f, axis=2, iota=iota_w)
        p = _block_max(p, f, axis=1, iota=iota_h)
        # depthwise 3x3 conv on the pooled map == dilated 3x3 (dilation f) on p
        acc = None
        for kh in range(3):
            dr = f * (kh - 1)
            tap = p[:, halo + dr: halo + dr + th, :]               # (cc, TH, W)
            if dr != 0:                                            # conv zero-pad along H
                rg = row_out + dr
                tap = jnp.where((rg >= 0) & (rg < height), tap, 0.0)
            for kw in range(3):
                dc = f * (kw - 1)
                sh = _shift0(tap, dc, axis=2)                      # conv zero-pad along W
                term = sh * w_ref[lvl * 9 + kh * 3 + kw]           # per-channel tap weight
                acc = term if acc is None else acc + term
        outs.append(acc)

    cat = jnp.concatenate(outs, axis=0) + b_ref[...]               # (C, TH, W)
    o_ref[0] = cat.astype(o_ref.dtype)


def _pick_row_tile(h, c, w, halo, budget=16 * 1024 * 1024, cap=256):
    """Largest multiple of `halo` that divides H, fits the VMEM budget, <= cap."""
    per_row = 4 * c * w * 10           # dbuf'd in/out blocks + in-kernel temps, per row
    fixed = 4 * c * w * halo * 12      # halo blocks + halo share of the temps
    best = halo
    t = halo
    while t <= min(h, cap):
        if h % t == 0 and fixed + per_row * t <= budget:
            best = t
        t += halo
    return best


def _mfr_cat(x, wdw, bdw, n_levels, th):
    n, c, h, w = x.shape
    cc = c // n_levels
    halo = 1 << (n_levels - 1)
    hb = th // halo                    # halo-sized blocks per row tile
    last_hblk = h // halo - 1
    kernel = functools.partial(_mfr_kernel, n_levels=n_levels, cc=cc, th=th,
                               halo=halo, height=h)
    return pl.pallas_call(
        kernel,
        out_shape=jax.ShapeDtypeStruct((n, c, h, w), jnp.float32),
        grid_spec=pltpu.PrefetchScalarGridSpec(
            num_scalar_prefetch=0,
            grid=(n, h // th),
            in_specs=[
                pl.BlockSpec((1, c, th, w), lambda b, r: (b, 0, r, 0)),
                pl.BlockSpec((1, c, halo, w),
                             lambda b, r: (b, 0, jnp.maximum(r * hb - 1, 0), 0)),
                pl.BlockSpec((1, c, halo, w),
                             lambda b, r: (b, 0, jnp.minimum((r + 1) * hb, last_hblk), 0)),
                pl.BlockSpec((n_levels * 9, cc, 1, 1), lambda b, r: (0, 0, 0, 0)),
                pl.BlockSpec((c, 1, 1), lambda b, r: (0, 0, 0)),
            ],
            out_specs=pl.BlockSpec((1, c, th, w), lambda b, r: (b, 0, r, 0)),
        ),
        compiler_params=pltpu.CompilerParams(
            dimension_semantics=("parallel", "parallel"),
            vmem_limit_bytes=48 * 1024 * 1024),
    )(x, x, x, wdw, bdw)


# ----------------------------------------------------------------------------
# Kernel 2: 1x1 conv (channel matmul on MXU) + bias + exact GELU + modulation.
# Spatial dim (TS) is the lane dim -> lane-dense loads/stores; output is NCHW.
# ----------------------------------------------------------------------------
def _aggr_kernel(cat_ref, x_ref, w_ref, b_ref, o_ref):
    # cat_ref/x_ref : (1, C, TS)   w_ref : (C, C)   b_ref : (C, 1)   o_ref : (1, C, TS)
    y = jnp.dot(w_ref[...], cat_ref[0], preferred_element_type=jnp.float32) + b_ref[...]
    o_ref[0] = (_gelu_exact(y) * x_ref[0]).astype(o_ref.dtype)


def _pick_col_tile(s, c, budget=8 * 1024 * 1024, cap=2048):
    per_col = 4 * c * 14
    limit = max(1, min(s, cap, budget // per_col))
    divs = [t for t in range(1, limit + 1) if s % t == 0]
    m128 = [t for t in divs if t % 128 == 0]
    return max(m128) if m128 else max(divs)


def _aggr_gelu_mul(cat3, x3, w, b, ts):
    n, c, s = cat3.shape
    return pl.pallas_call(
        _aggr_kernel,
        out_shape=jax.ShapeDtypeStruct((n, c, s), jnp.float32),
        grid_spec=pltpu.PrefetchScalarGridSpec(
            num_scalar_prefetch=0,
            grid=(n, s // ts),
            in_specs=[
                pl.BlockSpec((1, c, ts), lambda b, t: (b, 0, t)),
                pl.BlockSpec((1, c, ts), lambda b, t: (b, 0, t)),
                pl.BlockSpec((c, c), lambda b, t: (0, 0)),
                pl.BlockSpec((c, 1), lambda b, t: (0, 0)),
            ],
            out_specs=pl.BlockSpec((1, c, ts), lambda b, t: (b, 0, t)),
        ),
        compiler_params=pltpu.CompilerParams(
            dimension_semantics=("parallel", "parallel"),
            vmem_limit_bytes=48 * 1024 * 1024),
    )(cat3, x3, w, b)


# ----------------------------------------------------------------------------
# Forward pass (wrapper) -- stays in NCHW end to end; only free reshapes outside.
# ----------------------------------------------------------------------------
def safm_forward(x_nchw, params, n_levels=4):
    n, c, h, w = x_nchw.shape
    if c % n_levels:
        raise ValueError("dim must be divisible by n_levels")
    cc = c // n_levels
    fmax = 1 << (n_levels - 1)
    if h % fmax or w % fmax:
        raise ValueError("H and W must be divisible by 2**(n_levels-1) "
                         "(matches exact max-pool / nearest-upsample semantics)")
    x = x_nchw.astype(jnp.float32)

    # pack depthwise (groups=cc) 3x3 weights: (n_levels*9, cc, 1, 1), tap = kh*3+kw
    wdw = jnp.concatenate(
        [jnp.transpose(params["mfr_w"][i][:, 0], (1, 2, 0)).reshape(9, cc, 1, 1)
         for i in range(n_levels)], axis=0)
    bdw = jnp.concatenate(params["mfr_b"], axis=0).reshape(c, 1, 1)

    th = _pick_row_tile(h, c, w, fmax)
    cat = _mfr_cat(x, wdw, bdw, n_levels, th)           # (n, c, h, w) == torch.cat(out, 1)

    s = h * w
    ts = _pick_col_tile(s, c)
    y = _aggr_gelu_mul(cat.reshape(n, c, s), x.reshape(n, c, s),
                       params["aggr_w"], params["aggr_b"].reshape(c, 1), ts)
    return y.reshape(n, c, h, w)                        # already NCHW, no transpose


# ----------------------------------------------------------------------------
# Deterministic parameter init (shapes from SAFM.__init__)
# ----------------------------------------------------------------------------
def init_params(key, dim, n_levels=4):
    cc = dim // n_levels
    keys = jax.random.split(key, 2 * n_levels + 2)
    mfr_w = [0.3 * jax.random.normal(keys[2 * i], (cc, 1, 3, 3), jnp.float32)
             for i in range(n_levels)]
    mfr_b = [0.1 * jax.random.normal(keys[2 * i + 1], (cc,), jnp.float32)
             for i in range(n_levels)]
    aggr_w = 0.3 * jax.random.normal(keys[-2], (dim, dim), jnp.float32)
    aggr_b = 0.1 * jax.random.normal(keys[-1], (dim,), jnp.float32)
    return dict(mfr_w=mfr_w, mfr_b=mfr_b, aggr_w=aggr_w, aggr_b=aggr_b)


# ----------------------------------------------------------------------------
# Pure-JAX reference (mirrors the PyTorch forward) for correctness checking
# ----------------------------------------------------------------------------
def safm_reference(x, params, n_levels=4):
    mfr_w, mfr_b = params["mfr_w"], params["mfr_b"]
    aggr_w, aggr_b = params["aggr_w"], params["aggr_b"]
    n, c, h, w = x.shape
    cc = c // n_levels
    outs = []
    for i in range(n_levels):
        f = 2 ** i
        xi = x[:, i * cc:(i + 1) * cc]
        if i > 0:
            xi = xi.reshape(n, cc, h // f, f, w // f, f).max(axis=(3, 5))
        s = jax.lax.conv_general_dilated(
            xi, mfr_w[i], (1, 1), ((1, 1), (1, 1)),
            dimension_numbers=("NCHW", "OIHW", "NCHW"), feature_group_count=cc)
        s = s + mfr_b[i][None, :, None, None]
        if i > 0:
            s = jnp.repeat(jnp.repeat(s, f, axis=2), f, axis=3)
        outs.append(s)
    cat = jnp.concatenate(outs, axis=1)
    y = jnp.einsum("nchw,oc->nohw", cat, aggr_w) + aggr_b[None, :, None, None]
    return jax.nn.gelu(y, approximate=False) * x


if __name__ == "__main__":
    key = jax.random.PRNGKey(0)
    kx, kp = jax.random.split(key)
    N, C, H, W = 2, 8, 16, 16        # dim=8, n_levels=4 -> chunk_dim=2
    x = jax.random.normal(kx, (N, C, H, W), jnp.float32)
    params = init_params(kp, C, n_levels=4)

    out = safm_forward(x, params, n_levels=4)
    out = jax.block_until_ready(out)

    ref = safm_reference(x, params, n_levels=4)
    assert out.shape == ref.shape == (N, C, H, W)
    err = float(jnp.max(jnp.abs(out - ref)))
    if err > 1e-3:
        raise AssertionError(f"Pallas result mismatch vs reference: max abs err = {err}")
    print("KERNEL_OK")
</pallas_src>

<mosaic_0001>
module attributes {stable_mosaic.version = 11 : i64} {
  func.func @_mfr_kernel(%arg0: i32, %arg1: i32, %arg2: memref<1x8x16x16xf32, #tpu.memory_space<vmem>>, %arg3: memref<1x8x8x16xf32, #tpu.memory_space<vmem>>, %arg4: memref<1x8x8x16xf32, #tpu.memory_space<vmem>>, %arg5: memref<36x2x1x1xf32, #tpu.memory_space<vmem>>, %arg6: memref<8x1x1xf32, #tpu.memory_space<vmem>>, %arg7: memref<1x8x16x16xf32, #tpu.memory_space<vmem>>) attributes {dimension_semantics = [#tpu.dimension_semantics<parallel>, #tpu.dimension_semantics<parallel>], iteration_bounds = array<i64: 2, 1>, scalar_prefetch = 0 : i64, scratch_operands = 0 : i64, tpu.core_type = #tpu.core_type<tc>, window_params = [{transform_indices = @transform_0, window_bounds = array<i64: 1, 8, 16, 16>}, {transform_indices = @transform_1, window_bounds = array<i64: 1, 8, 8, 16>}, {transform_indices = @transform_2, window_bounds = array<i64: 1, 8, 8, 16>}, {pipeline_mode = #tpu.pipeline_mode<synchronous>, transform_indices = @transform_3, window_bounds = array<i64: 36, 2, 1, 1>}, {pipeline_mode = #tpu.pipeline_mode<synchronous>, transform_indices = @transform_4, window_bounds = array<i64: 8, 1, 1>}, {transform_indices = @transform_5, window_bounds = array<i64: 1, 8, 16, 16>}]} {
    %c16_i32 = arith.constant 16 : i32
    %0 = arith.muli %arg1, %c16_i32 : i32
    %c0 = arith.constant 0 : index
    %c0_0 = arith.constant 0 : index
    %c0_1 = arith.constant 0 : index
    %c0_2 = arith.constant 0 : index
    %1 = vector.load %arg3[%c0, %c0_0, %c0_1, %c0_2] : memref<1x8x8x16xf32, #tpu.memory_space<vmem>>, vector<1x8x8x16xf32>
    %2 = vector.shape_cast %1 : vector<1x8x8x16xf32> to vector<8x8x16xf32>
    %c0_3 = arith.constant 0 : index
    %c0_4 = arith.constant 0 : index
    %c0_5 = arith.constant 0 : index
    %c0_6 = arith.constant 0 : index
    %3 = vector.load %arg2[%c0_3, %c0_4, %c0_5, %c0_6] : memref<1x8x16x16xf32, #tpu.memory_space<vmem>>, vector<1x8x16x16xf32>
    %4 = vector.shape_cast %3 : vector<1x8x16x16xf32> to vector<8x16x16xf32>
    %c0_7 = arith.constant 0 : index
    %c0_8 = arith.constant 0 : index
    %c0_9 = arith.constant 0 : index
    %c0_10 = arith.constant 0 : index
    %5 = vector.load %arg4[%c0_7, %c0_8, %c0_9, %c0_10] : memref<1x8x8x16xf32, #tpu.memory_space<vmem>>, vector<1x8x8x16xf32>
    %6 = vector.shape_cast %5 : vector<1x8x8x16xf32> to vector<8x8x16xf32>
    %7 = tpu.concatenate %2, %4, %6 in 1 : vector<8x8x16xf32>, vector<8x16x16xf32>, vector<8x8x16xf32> -> vector<8x32x16xf32>
    %8 = tpu.iota {dimensions = array<i32: 0>} : vector<16x16xi32>
    %9 = vector.broadcast %0 : i32 to vector<16x16xi32>
    %10 = arith.addi %8, %9 : vector<16x16xi32>
    %11 = tpu.iota {dimensions = array<i32: 0>} : vector<32x16xi32>
    %12 = tpu.iota {dimensions = array<i32: 1>} : vector<32x16xi32>
    %13 = vector.extract_strided_slice %7 {offsets = [0, 0, 0], sizes = [2, 32, 16], strides = [1, 1, 1]} : vector<8x32x16xf32> to vector<2x32x16xf32>
    %14 = vector.extract_strided_slice %13 {offsets = [0, 7, 0], sizes = [2, 16, 16], strides = [1, 1, 1]} : vector<2x32x16xf32> to vector<2x16x16xf32>
    %c-1_i32 = arith.constant -1 : i32
    %15 = vector.broadcast %c-1_i32 : i32 to vector<16x16xi32>
    %16 = arith.addi %10, %15 : vector<16x16xi32>
    %c0_i32 = arith.constant 0 : i32
    %17 = vector.broadcast %c0_i32 : i32 to vector<16x16xi32>
    %18 = arith.cmpi sge, %16, %17 : vector<16x16xi32>
    %c16_i32_11 = arith.constant 16 : i32
    %19 = vector.broadcast %c16_i32_11 : i32 to vector<16x16xi32>
    %20 = arith.cmpi slt, %16, %19 : vector<16x16xi32>
    %21 = arith.andi %18, %20 : vector<16x16xi1>
    %cst = arith.constant 0.000000e+00 : f32
    %22 = vector.shape_cast %21 : vector<16x16xi1> to vector<1x16x16xi1>
    %23 = vector.broadcast %22 : vector<1x16x16xi1> to vector<2x16x16xi1>
    %24 = vector.broadcast %cst : f32 to vector<2x16x16xf32>
    %25 = arith.select %23, %14, %24 : vector<2x16x16xi1>, vector<2x16x16xf32>
    %cst_12 = arith.constant 0.000000e+00 : f32
    %26 = vector.broadcast %cst_12 : f32 to vector<2x16x1xf32>
    %27 = vector.extract_strided_slice %25 {offsets = [0, 0, 0], sizes = [2, 16, 15], strides = [1, 1, 1]} : vector<2x16x16xf32> to vector<2x16x15xf32>
    %28 = tpu.concatenate %26, %27 in 2 : vector<2x16x1xf32>, vector<2x16x15xf32> -> vector<2x16x16xf32>
    %c0_13 = arith.constant 0 : index
    %c0_14 = arith.constant 0 : index
    %c0_15 = arith.constant 0 : index
    %c0_16 = arith.constant 0 : index
    %29 = vector.load %arg5[%c0_13, %c0_14, %c0_15, %c0_16] : memref<36x2x1x1xf32, #tpu.memory_space<vmem>>, vector<1x2x1x1xf32>
    %30 = vector.shape_cast %29 : vector<1x2x1x1xf32> to vector<2x1x1xf32>
    %31 = vector.broadcast %30 : vector<2x1x1xf32> to vector<2x16x16xf32>
    %32 = arith.mulf %28, %31 : vector<2x16x16xf32>
    %c1 = arith.constant 1 : index
    %c0_17 = arith.constant 0 : index
    %c0_18 = arith.constant 0 : index
    %c0_19 = arith.constant 0 : index
    %33 = vector.load %arg5[%c1, %c0_17, %c0_18, %c0_19] : memref<36x2x1x1xf32, #tpu.memory_space<vmem>>, vector<1x2x1x1xf32>
    %34 = vector.shape_cast %33 : vector<1x2x1x1xf32> to vector<2x1x1xf32>
    %35 = vector.broadcast %34 : vector<2x1x1xf32> to vector<2x16x16xf32>
    %36 = arith.mulf %25, %35 : vector<2x16x16xf32>
    %37 = arith.addf %32, %36 : vector<2x16x16xf32>
    %cst_20 = arith.constant 0.000000e+00 : f32
    %38 = vector.broadcast %cst_20 : f32 to vector<2x16x1xf32>
    %39 = vector.extract_strided_slice %25 {offsets = [0, 0, 1], sizes = [2, 16, 15], strides = [1, 1, 1]} : vector<2x16x16xf32> to vector<2x16x15xf32>
    %40 = tpu.concatenate %39, %38 in 2 : vector<2x16x15xf32>, vector<2x16x1xf32> -> vector<2x16x16xf32>
    %c2 = arith.constant 2 : index
    %c0_21 = arith.constant 0 : index
    %c0_22 = arith.constant 0 : index
    %c0_23 = arith.constant 0 : index
    %41 = vector.load %arg5[%c2, %c0_21, %c0_22, %c0_23] : memref<36x2x1x1xf32, #tpu.memory_space<vmem>>, vector<1x2x1x1xf32>
    %42 = vector.shape_cast %41 : vector<1x2x1x1xf32> to vector<2x1x1xf32>
    %43 = vector.broadcast %42 : vector<2x1x1xf32> to vector<2x16x16xf32>
    %44 = arith.mulf %40, %43 : vector<2x16x16xf32>
    %45 = arith.addf %37, %44 : vector<2x16x16xf32>
    %46 = vector.extract_strided_slice %13 {offsets = [0, 8, 0], sizes = [2, 16, 16], strides = [1, 1, 1]} : vector<2x32x16xf32> to vector<2x16x16xf32>
    %cst_24 = arith.constant 0.000000e+00 : f32
    %47 = vector.broadcast %cst_24 : f32 to vector<2x16x1xf32>
    %48 = vector.extract_strided_slice %46 {offsets = [0, 0, 0], sizes = [2, 16, 15], strides = [1, 1, 1]} : vector<2x16x16xf32> to vector<2x16x15xf32>
    %49 = tpu.concatenate %47, %48 in 2 : vector<2x16x1xf32>, vector<2x16x15xf32> -> vector<2x16x16xf32>
    %c3 = arith.constant 3 : index
    %c0_25 = arith.constant 0 : index
    %c0_26 = arith.constant 0 : index
    %c0_27 = arith.constant 0 : index
    %50 = vector.load %arg5[%c3, %c0_25, %c0_26, %c0_27] : memref<36x2x1x1xf32, #tpu.memory_space<vmem>>, vector<1x2x1x1xf32>
    %51 = vector.shape_cast %50 : vector<1x2x1x1xf32> to vector<2x1x1xf32>
    %52 = vector.broadcast %51 : vector<2x1x1xf32> to vector<2x16x16xf32>
    %53 = arith.mulf %49, %52 : vector<2x16x16xf32>
    %54 = arith.addf %45, %53 : vector<2x16x16xf32>
    %c4 = arith.constant 4 : index
    %c0_28 = arith.constant 0 : index
    %c0_29 = arith.constant 0 : index
    %c0_30 = arith.constant 0 : index
    %55 = vector.load %arg5[%c4, %c0_28, %c0_29, %c0_30] : memref<36x2x1x1xf32, #tpu.memory_space<vmem>>, vector<1x2x1x1xf32>
    %56 = vector.shape_cast %55 : vector<1x2x1x1xf32> to vector<2x1x1xf32>
    %57 = vector.broadcast %56 : vector<2x1x1xf32> to vector<2x16x16xf32>
    %58 = arith.mulf %46, %57 : vector<2x16x16xf32>
    %59 = arith.addf %54, %58 : vector<2x16x16xf32>
    %cst_31 = arith.constant 0.000000e+00 : f32
    %60 = vector.broadcast %cst_31 : f32 to vector<2x16x1xf32>
    %61 = vector.extract_strided_slice %46 {offsets = [0, 0, 1], sizes = [2, 16, 15], strides = [1, 1, 1]} : vector<2x16x16xf32> to vector<2x16x15xf32>
    %62 = tpu.concatenate %61, %60 in 2 : vector<2x16x15xf32>, vector<2x16x1xf32> -> vector<2x16x16xf32>
    %c5 = arith.constant 5 : index
    %c0_32 = arith.constant 0 : index
    %c0_33 = arith.constant 0 : index
    %c0_34 = arith.constant 0 : index
    %63 = vector.load %arg5[%c5, %c0_32, %c0_33, %c0_34] : memref<36x2x1x1xf32, #tpu.memory_space<vmem>>, vector<1x2x1x1xf32>
    %64 = vector.shape_cast %63 : vector<1x2x1x1xf32> to vector<2x1x1xf32>
    %65 = vector.broadcast %64 : vector<2x1x1xf32> to vector<2x16x16xf32>
    %66 = arith.mulf %62, %65 : vector<2x16x16xf32>
    %67 = arith.addf %59, %66 : vector<2x16x16xf32>
    %68 = vector.extract_strided_slice %13 {offsets = [0, 9, 0], sizes = [2, 16, 16], strides = [1, 1, 1]} : vector<2x32x16xf32> to vector<2x16x16xf32>
    %c1_i32 = arith.constant 1 : i32
    %69 = vector.broadcast %c1_i32 : i32 to vector<16x16xi32>
    %70 = arith.addi %10, %69 : vector<16x16xi32>
    %c0_i32_35 = arith.constant 0 : i32
    %71 = vector.broadcast %c0_i32_35 : i32 to vector<16x16xi32>
    %72 = arith.cmpi sge, %70, %71 : vector<16x16xi32>
    %c16_i32_36 = arith.constant 16 : i32
    %73 = vector.broadcast %c16_i32_36 : i32 to vector<16x16xi32>
    %74 = arith.cmpi slt, %70, %73 : vector<16x16xi32>
    %75 = arith.andi %72, %74 : vector<16x16xi1>
    %cst_37 = arith.constant 0.000000e+00 : f32
    %76 = vector.shape_cast %75 : vector<16x16xi1> to vector<1x16x16xi1>
    %77 = vector.broadcast %76 : vector<1x16x16xi1> to vector<2x16x16xi1>
    %78 = vector.broadcast %cst_37 : f32 to vector<2x16x16xf32>
    %79 = arith.select %77, %68, %78 : vector<2x16x16xi1>, vector<2x16x16xf32>
    %cst_38 = arith.constant 0.000000e+00 : f32
    %80 = vector.broadcast %cst_38 : f32 to vector<2x16x1xf32>
    %81 = vector.extract_strided_slice %79 {offsets = [0, 0, 0], sizes = [2, 16, 15], strides = [1, 1, 1]} : vector<2x16x16xf32> to vector<2x16x15xf32>
    %82 = tpu.concatenate %80, %81 in 2 : vector<2x16x1xf32>, vector<2x16x15xf32> -> vector<2x16x16xf32>
    %c6 = arith.constant 6 : index
    %c0_39 = arith.constant 0 : index
    %c0_40 = arith.constant 0 : index
    %c0_41 = arith.constant 0 : index
    %83 = vector.load %arg5[%c6, %c0_39, %c0_40, %c0_41] : memref<36x2x1x1xf32, #tpu.memory_space<vmem>>, vector<1x2x1x1xf32>
    %84 = vector.shape_cast %83 : vector<1x2x1x1xf32> to vector<2x1x1xf32>
    %85 = vector.broadcast %84 : vector<2x1x1xf32> to vector<2x16x16xf32>
    %86 = arith.mulf %82, %85 : vector<2x16x16xf32>
    %87 = arith.addf %67, %86 : vector<2x16x16xf32>
    %c7 = arith.constant 7 : index
    %c0_42 = arith.constant 0 : index
    %c0_43 = arith.constant 0 : index
    %c0_44 = arith.constant 0 : index
    %88 = vector.load %arg5[%c7, %c0_42, %c0_43, %c0_44] : memref<36x2x1x1xf32, #tpu.memory_space<vmem>>, vector<1x2x1x1xf32>
    %89 = vector.shape_cast %88 : vector<1x2x1x1xf32> to vector<2x1x1xf32>
    %90 = vector.broadcast %89 : vector<2x1x1xf32> to vector<2x16x16xf32>
    %91 = arith.mulf %79, %90 : vector<2x16x16xf32>
    %92 = arith.addf %87, %91 : vector<2x16x16xf32>
    %cst_45 = arith.constant 0.000000e+00 : f32
    %93 = vector.broadcast %cst_45 : f32 to vector<2x16x1xf32>
    %94 = vector.extract_strided_slice %79 {offsets = [0, 0, 1], sizes = [2, 16, 15], strides = [1, 1, 1]} : vector<2x16x16xf32> to vector<2x16x15xf32>
    %95 = tpu.concatenate %94, %93 in 2 : vector<2x16x15xf32>, vector<2x16x1xf32> -> vector<2x16x16xf32>
    %c8 = arith.constant 8 : index
    %c0_46 = arith.constant 0 : index
    %c0_47 = arith.constant 0 : index
    %c0_48 = arith.constant 0 : index
    %96 = vector.load %arg5[%c8, %c0_46, %c0_47, %c0_48] : memref<36x2x1x1xf32, #tpu.memory_space<vmem>>, vector<1x2x1x1xf32>
    %97 = vector.shape_cast %96 : vector<1x2x1x1xf32> to vector<2x1x1xf32>
    %98 = vector.broadcast %97 : vector<2x1x1xf32> to vector<2x16x16xf32>
    %99 = arith.mulf %95, %98 : vector<2x16x16xf32>
    %100 = arith.addf %92, %99 : vector<2x16x16xf32>
    %101 = vector.extract_strided_slice %7 {offsets = [2, 0, 0], sizes = [2, 32, 16], strides = [1, 1, 1]} : vector<8x32x16xf32> to vector<2x32x16xf32>
    %cst_49 = arith.constant 0.000000e+00 : f32
    %102 = vector.broadcast %cst_49 : f32 to vector<2x32x1xf32>
    %103 = vector.extract_strided_slice %101 {offsets = [0, 0, 1], sizes = [2, 32, 15], strides = [1, 1, 1]} : vector<2x32x16xf32> to vector<2x32x15xf32>
    %104 = tpu.concatenate %103, %102 in 2 : vector<2x32x15xf32>, vector<2x32x1xf32> -> vector<2x32x16xf32>
    %cst_50 = arith.constant 0.000000e+00 : f32
    %105 = vector.broadcast %cst_50 : f32 to vector<2x32x1xf32>
    %106 = vector.extract_strided_slice %101 {offsets = [0, 0, 0], sizes = [2, 32, 15], strides = [1, 1, 1]} : vector<2x32x16xf32> to vector<2x32x15xf32>
    %107 = tpu.concatenate %105, %106 in 2 : vector<2x32x1xf32>, vector<2x32x15xf32> -> vector<2x32x16xf32>
    %c1_i32_51 = arith.constant 1 : i32
    %108 = vector.broadcast %c1_i32_51 : i32 to vector<32x16xi32>
    %109 = arith.andi %12, %108 : vector<32x16xi32>
    %c0_i32_52 = arith.constant 0 : i32
    %110 = vector.broadcast %c0_i32_52 : i32 to vector<32x16xi32>
    %111 = arith.cmpi eq, %109, %110 : vector<32x16xi32>
    %112 = vector.shape_cast %111 : vector<32x16xi1> to vector<1x32x16xi1>
    %113 = vector.broadcast %112 : vector<1x32x16xi1> to vector<2x32x16xi1>
    %114 = arith.select %113, %104, %107 : vector<2x32x16xi1>, vector<2x32x16xf32>
    %115 = arith.maximumf %101, %114 : vector<2x32x16xf32>
    %cst_53 = arith.constant 0.000000e+00 : f32
    %116 = vector.broadcast %cst_53 : f32 to vector<2x1x16xf32>
    %117 = vector.extract_strided_slice %115 {offsets = [0, 1, 0], sizes = [2, 31, 16], strides = [1, 1, 1]} : vector<2x32x16xf32> to vector<2x31x16xf32>
    %118 = tpu.concatenate %117, %116 in 1 : vector<2x31x16xf32>, vector<2x1x16xf32> -> vector<2x32x16xf32>
    %cst_54 = arith.constant 0.000000e+00 : f32
    %119 = vector.broadcast %cst_54 : f32 to vector<2x1x16xf32>
    %120 = vector.extract_strided_slice %115 {offsets = [0, 0, 0], sizes = [2, 31, 16], strides = [1, 1, 1]} : vector<2x32x16xf32> to vector<2x31x16xf32>
    %121 = tpu.concatenate %119, %120 in 1 : vector<2x1x16xf32>, vector<2x31x16xf32> -> vector<2x32x16xf32>
    %c1_i32_55 = arith.constant 1 : i32
    %122 = vector.broadcast %c1_i32_55 : i32 to vector<32x16xi32>
    %123 = arith.andi %11, %122 : vector<32x16xi32>
    %c0_i32_56 = arith.constant 0 : i32
    %124 = vector.broadcast %c0_i32_56 : i32 to vector<32x16xi32>
    %125 = arith.cmpi eq, %123, %124 : vector<32x16xi32>
    %126 = vector.shape_cast %125 : vector<32x16xi1> to vector<1x32x16xi1>
    %127 = vector.broadcast %126 : vector<1x32x16xi1> to vector<2x32x16xi1>
    %128 = arith.select %127, %118, %121 : vector<2x32x16xi1>, vector<2x32x16xf32>
    %129 = arith.maximumf %115, %128 : vector<2x32x16xf32>
    %130 = vector.extract_strided_slice %129 {offsets = [0, 6, 0], sizes = [2, 16, 16], strides = [1, 1, 1]} : vector<2x32x16xf32> to vector<2x16x16xf32>
    %c-2_i32 = arith.constant -2 : i32
    %131 = vector.broadcast %c-2_i32 : i32 to vector<16x16xi32>
    %132 = arith.addi %10, %131 : vector<16x16xi32>
    %c0_i32_57 = arith.constant 0 : i32
    %133 = vector.broadcast %c0_i32_57 : i32 to vector<16x16xi32>
    %134 = arith.cmpi sge, %132, %133 : vector<16x16xi32>
    %c16_i32_58 = arith.constant 16 : i32
    %135 = vector.broadcast %c16_i32_58 : i32 to vector<16x16xi32>
    %136 = arith.cmpi slt, %132, %135 : vector<16x16xi32>
    %137 = arith.andi %134, %136 : vector<16x16xi1>
    %cst_59 = arith.constant 0.000000e+00 : f32
    %138 = vector.shape_cast %137 : vector<16x16xi1> to vector<1x16x16xi1>
    %139 = vector.broadcast %138 : vector<1x16x16xi1> to vector<2x16x16xi1>
    %140 = vector.broadcast %cst_59 : f32 to vector<2x16x16xf32>
    %141 = arith.select %139, %130, %140 : vector<2x16x16xi1>, vector<2x16x16xf32>
    %cst_60 = arith.constant 0.000000e+00 : f32
    %142 = vector.broadcast %cst_60 : f32 to vector<2x16x2xf32>
    %143 = vector.extract_strided_slice %141 {offsets = [0, 0, 0], sizes = [2, 16, 14], strides = [1, 1, 1]} : vector<2x16x16xf32> to vector<2x16x14xf32>
    %144 = tpu.concatenate %142, %143 in 2 : vector<2x16x2xf32>, vector<2x16x14xf32> -> vector<2x16x16xf32>
    %c9 = arith.constant 9 : index
    %c0_61 = arith.constant 0 : index
    %c0_62 = arith.constant 0 : index
    %c0_63 = arith.constant 0 : index
    %145 = vector.load %arg5[%c9, %c0_61, %c0_62, %c0_63] : memref<36x2x1x1xf32, #tpu.memory_space<vmem>>, vector<1x2x1x1xf32>
    %146 = vector.shape_cast %145 : vector<1x2x1x1xf32> to vector<2x1x1xf32>
    %147 = vector.broadcast %146 : vector<2x1x1xf32> to vector<2x16x16xf32>
    %148 = arith.mulf %144, %147 : vector<2x16x16xf32>
    %c10 = arith.constant 10 : index
    %c0_64 = arith.constant 0 : index
    %c0_65 = arith.constant 0 : index
    %c0_66 = arith.constant 0 : index
    %149 = vector.load %arg5[%c10, %c0_64, %c0_65, %c0_66] : memref<36x2x1x1xf32, #tpu.memory_space<vmem>>, vector<1x2x1x1xf32>
    %150 = vector.shape_cast %149 : vector<1x2x1x1xf32> to vector<2x1x1xf32>
    %151 = vector.broadcast %150 : vector<2x1x1xf32> to vector<2x16x16xf32>
    %152 = arith.mulf %141, %151 : vector<2x16x16xf32>
    %153 = arith.addf %148, %152 : vector<2x16x16xf32>
    %cst_67 = arith.constant 0.000000e+00 : f32
    %154 = vector.broadcast %cst_67 : f32 to vector<2x16x2xf32>
    %155 = vector.extract_strided_slice %141 {offsets = [0, 0, 2], sizes = [2, 16, 14], strides = [1, 1, 1]} : vector<2x16x16xf32> to vector<2x16x14xf32>
    %156 = tpu.concatenate %155, %154 in 2 : vector<2x16x14xf32>, vector<2x16x2xf32> -> vector<2x16x16xf32>
    %c11 = arith.constant 11 : index
    %c0_68 = arith.constant 0 : index
    %c0_69 = arith.constant 0 : index
    %c0_70 = arith.constant 0 : index
    %157 = vector.load %arg5[%c11, %c0_68, %c0_69, %c0_70] : memref<36x2x1x1xf32, #tpu.memory_space<vmem>>, vector<1x2x1x1xf32>
    %158 = vector.shape_cast %157 : vector<1x2x1x1xf32> to vector<2x1x1xf32>
    %159 = vector.broadcast %158 : vector<2x1x1xf32> to vector<2x16x16xf32>
    %160 = arith.mulf %156, %159 : vector<2x16x16xf32>
    %161 = arith.addf %153, %160 : vector<2x16x16xf32>
    %162 = vector.extract_strided_slice %129 {offsets = [0, 8, 0], sizes = [2, 16, 16], strides = [1, 1, 1]} : vector<2x32x16xf32> to vector<2x16x16xf32>
    %cst_71 = arith.constant 0.000000e+00 : f32
    %163 = vector.broadcast %cst_71 : f32 to vector<2x16x2xf32>
    %164 = vector.extract_strided_slice %162 {offsets = [0, 0, 0], sizes = [2, 16, 14], strides = [1, 1, 1]} : vector<2x16x16xf32> to vector<2x16x14xf32>
    %165 = tpu.concatenate %163, %164 in 2 : vector<2x16x2xf32>, vector<2x16x14xf32> -> vector<2x16x16xf32>
    %c12 = arith.constant 12 : index
    %c0_72 = arith.constant 0 : index
    %c0_73 = arith.constant 0 : index
    %c0_74 = arith.constant 0 : index
    %166 = vector.load %arg5[%c12, %c0_72, %c0_73, %c0_74] : memref<36x2x1x1xf32, #tpu.memory_space<vmem>>, vector<1x2x1x1xf32>
    %167 = vector.shape_cast %166 : vector<1x2x1x1xf32> to vector<2x1x1xf32>
    %168 = vector.broadcast %167 : vector<2x1x1xf32> to vector<2x16x16xf32>
    %169 = arith.mulf %165, %168 : vector<2x16x16xf32>
    %170 = arith.addf %161, %169 : vector<2x16x16xf32>
    %c13 = arith.constant 13 : index
    %c0_75 = arith.constant 0 : index
    %c0_76 = arith.constant 0 : index
    %c0_77 = arith.constant 0 : index
    %171 = vector.load %arg5[%c13, %c0_75, %c0_76, %c0_77] : memref<36x2x1x1xf32, #tpu.memory_space<vmem>>, vector<1x2x1x1xf32>
    %172 = vector.shape_cast %171 : vector<1x2x1x1xf32> to vector<2x1x1xf32>
    %173 = vector.broadcast %172 : vector<2x1x1xf32> to vector<2x16x16xf32>
    %174 = arith.mulf %162, %173 : vector<2x16x16xf32>
    %175 = arith.addf %170, %174 : vector<2x16x16xf32>
    %cst_78 = arith.constant 0.000000e+00 : f32
    %176 = vector.broadcast %cst_78 : f32 to vector<2x16x2xf32>
    %177 = vector.extract_strided_slice %162 {offsets = [0, 0, 2], sizes = [2, 16, 14], strides = [1, 1, 1]} : vector<2x16x16xf32> to vector<2x16x14xf32>
    %178 = tpu.concatenate %177, %176 in 2 : vector<2x16x14xf32>, vector<2x16x2xf32> -> vector<2x16x16xf32>
    %c14 = arith.constant 14 : index
    %c0_79 = arith.constant 0 : index
    %c0_80 = arith.constant 0 : index
    %c0_81 = arith.constant 0 : index
    %179 = vector.load %arg5[%c14, %c0_79, %c0_80, %c0_81] : memref<36x2x1x1xf32, #tpu.memory_space<vmem>>, vector<1x2x1x1xf32>
    %180 = vector.shape_cast %179 : vector<1x2x1x1xf32> to vector<2x1x1xf32>
    %181 = vector.broadcast %180 : vector<2x1x1xf32> to vector<2x16x16xf32>
    %182 = arith.mulf %178, %181 : vector<2x16x16xf32>
    %183 = arith.addf %175, %182 : vector<2x16x16xf32>
    %184 = vector.extract_strided_slice %129 {offsets = [0, 10, 0], sizes = [2, 16, 16], strides = [1, 1, 1]} : vector<2x32x16xf32> to vector<2x16x16xf32>
    %c2_i32 = arith.constant 2 : i32
    %185 = vector.broadcast %c2_i32 : i32 to vector<16x16xi32>
    %186 = arith.addi %10, %185 : vector<16x16xi32>
    %c0_i32_82 = arith.constant 0 : i32
    %187 = vector.broadcast %c0_i32_82 : i32 to vector<16x16xi32>
    %188 = arith.cmpi sge, %186, %187 : vector<16x16xi32>
    %c16_i32_83 = arith.constant 16 : i32
    %189 = vector.broadcast %c16_i32_83 : i32 to vector<16x16xi32>
    %190 = arith.cmpi slt, %186, %189 : vector<16x16xi32>
    %191 = arith.andi %188, %190 : vector<16x16xi1>
    %cst_84 = arith.constant 0.000000e+00 : f32
    %192 = vector.shape_cast %191 : vector<16x16xi1> to vector<1x16x16xi1>
    %193 = vector.broadcast %192 : vector<1x16x16xi1> to vector<2x16x16xi1>
    %194 = vector.broadcast %cst_84 : f32 to vector<2x16x16xf32>
    %195 = arith.select %193, %184, %194 : vector<2x16x16xi1>, vector<2x16x16xf32>
    %cst_85 = arith.constant 0.000000e+00 : f32
    %196 = vector.broadcast %cst_85 : f32 to vector<2x16x2xf32>
    %197 = vector.extract_strided_slice %195 {offsets = [0, 0, 0], sizes = [2, 16, 14], strides = [1, 1, 1]} : vector<2x16x16xf32> to vector<2x16x14xf32>
    %198 = tpu.concatenate %196, %197 in 2 : vector<2x16x2xf32>, vector<2x16x14xf32> -> vector<2x16x16xf32>
    %c15 = arith.constant 15 : index
    %c0_86 = arith.constant 0 : index
    %c0_87 = arith.constant 0 : index
    %c0_88 = arith.constant 0 : index
    %199 = vector.load %arg5[%c15, %c0_86, %c0_87, %c0_88] : memref<36x2x1x1xf32, #tpu.memory_space<vmem>>, vector<1x2x1x1xf32>
    %200 = vector.shape_cast %199 : vector<1x2x1x1xf32> to vector<2x1x1xf32>
    %201 = vector.broadcast %200 : vector<2x1x1xf32> to vector<2x16x16xf32>
    %202 = arith.mulf %198, %201 : vector<2x16x16xf32>
    %203 = arith.addf %183, %202 : vector<2x16x16xf32>
    %c16 = arith.constant 16 : index
    %c0_89 = arith.constant 0 : index
    %c0_90 = arith.constant 0 : index
    %c0_91 = arith.constant 0 : index
    %204 = vector.load %arg5[%c16, %c0_89, %c0_90, %c0_91] : memref<36x2x1x1xf32, #tpu.memory_space<vmem>>, vector<1x2x1x1xf32>
    %205 = vector.shape_cast %204 : vector<1x2x1x1xf32> to vector<2x1x1xf32>
    %206 = vector.broadcast %205 : vector<2x1x1xf32> to vector<2x16x16xf32>
    %207 = arith.mulf %195, %206 : vector<2x16x16xf32>
    %208 = arith.addf %203, %207 : vector<2x16x16xf32>
    %cst_92 = arith.constant 0.000000e+00 : f32
    %209 = vector.broadcast %cst_92 : f32 to vector<2x16x2xf32>
    %210 = vector.extract_strided_slice %195 {offsets = [0, 0, 2], sizes = [2, 16, 14], strides = [1, 1, 1]} : vector<2x16x16xf32> to vector<2x16x14xf32>
    %211 = tpu.concatenate %210, %209 in 2 : vector<2x16x14xf32>, vector<2x16x2xf32> -> vector<2x16x16xf32>
    %c17 = arith.constant 17 : index
    %c0_93 = arith.constant 0 : index
    %c0_94 = arith.constant 0 : index
    %c0_95 = arith.constant 0 : index
    %212 = vector.load %arg5[%c17, %c0_93, %c0_94, %c0_95] : memref<36x2x1x1xf32, #tpu.memory_space<vmem>>, vector<1x2x1x1xf32>
    %213 = vector.shape_cast %212 : vector<1x2x1x1xf32> to vector<2x1x1xf32>
    %214 = vector.broadcast %213 : vector<2x1x1xf32> to vector<2x16x16xf32>
    %215 = arith.mulf %211, %214 : vector<2x16x16xf32>
    %216 = arith.addf %208, %215 : vector<2x16x16xf32>
    %217 = vector.extract_strided_slice %7 {offsets = [4, 0, 0], sizes = [2, 32, 16], strides = [1, 1, 1]} : vector<8x32x16xf32> to vector<2x32x16xf32>
    %cst_96 = arith.constant 0.000000e+00 : f32
    %218 = vector.broadcast %cst_96 : f32 to vector<2x32x1xf32>
    %219 = vector.extract_strided_slice %217 {offsets = [0, 0, 1], sizes = [2, 32, 15], strides = [1, 1, 1]} : vector<2x32x16xf32> to vector<2x32x15xf32>
    %220 = tpu.concatenate %219, %218 in 2 : vector<2x32x15xf32>, vector<2x32x1xf32> -> vector<2x32x16xf32>
    %cst_97 = arith.constant 0.000000e+00 : f32
    %221 = vector.broadcast %cst_97 : f32 to vector<2x32x1xf32>
    %222 = vector.extract_strided_slice %217 {offsets = [0, 0, 0], sizes = [2, 32, 15], strides = [1, 1, 1]} : vector<2x32x16xf32> to vector<2x32x15xf32>
    %223 = tpu.concatenate %221, %222 in 2 : vector<2x32x1xf32>, vector<2x32x15xf32> -> vector<2x32x16xf32>
    %c1_i32_98 = arith.constant 1 : i32
    %224 = vector.broadcast %c1_i32_98 : i32 to vector<32x16xi32>
    %225 = arith.andi %12, %224 : vector<32x16xi32>
    %c0_i32_99 = arith.constant 0 : i32
    %226 = vector.broadcast %c0_i32_99 : i32 to vector<32x16xi32>
    %227 = arith.cmpi eq, %225, %226 : vector<32x16xi32>
    %228 = vector.shape_cast %227 : vector<32x16xi1> to vector<1x32x16xi1>
    %229 = vector.broadcast %228 : vector<1x32x16xi1> to vector<2x32x16xi1>
    %230 = arith.select %229, %220, %223 : vector<2x32x16xi1>, vector<2x32x16xf32>
    %231 = arith.maximumf %217, %230 : vector<2x32x16xf32>
    %cst_100 = arith.constant 0.000000e+00 : f32
    %232 = vector.broadcast %cst_100 : f32 to vector<2x32x2xf32>
    %233 = vector.extract_strided_slice %231 {offsets = [0, 0, 2], sizes = [2, 32, 14], strides = [1, 1, 1]} : vector<2x32x16xf32> to vector<2x32x14xf32>
    %234 = tpu.concatenate %233, %232 in 2 : vector<2x32x14xf32>, vector<2x32x2xf32> -> vector<2x32x16xf32>
    %cst_101 = arith.constant 0.000000e+00 : f32
    %235 = vector.broadcast %cst_101 : f32 to vector<2x32x2xf32>
    %236 = vector.extract_strided_slice %231 {offsets = [0, 0, 0], sizes = [2, 32, 14], strides = [1, 1, 1]} : vector<2x32x16xf32> to vector<2x32x14xf32>
    %237 = tpu.concatenate %235, %236 in 2 : vector<2x32x2xf32>, vector<2x32x14xf32> -> vector<2x32x16xf32>
    %c2_i32_102 = arith.constant 2 : i32
    %238 = vector.broadcast %c2_i32_102 : i32 to vector<32x16xi32>
    %239 = arith.andi %12, %238 : vector<32x16xi32>
    %c0_i32_103 = arith.constant 0 : i32
    %240 = vector.broadcast %c0_i32_103 : i32 to vector<32x16xi32>
    %241 = arith.cmpi eq, %239, %240 : vector<32x16xi32>
    %242 = vector.shape_cast %241 : vector<32x16xi1> to vector<1x32x16xi1>
    %243 = vector.broadcast %242 : vector<1x32x16xi1> to vector<2x32x16xi1>
    %244 = arith.select %243, %234, %237 : vector<2x32x16xi1>, vector<2x32x16xf32>
    %245 = arith.maximumf %231, %244 : vector<2x32x16xf32>
    %cst_104 = arith.constant 0.000000e+00 : f32
    %246 = vector.broadcast %cst_104 : f32 to vector<2x1x16xf32>
    %247 = vector.extract_strided_slice %245 {offsets = [0, 1, 0], sizes = [2, 31, 16], strides = [1, 1, 1]} : vector<2x32x16xf32> to vector<2x31x16xf32>
    %248 = tpu.concatenate %247, %246 in 1 : vector<2x31x16xf32>, vector<2x1x16xf32> -> vector<2x32x16xf32>
    %cst_105 = arith.constant 0.000000e+00 : f32
    %249 = vector.broadcast %cst_105 : f32 to vector<2x1x16xf32>
    %250 = vector.extract_strided_slice %245 {offsets = [0, 0, 0], sizes = [2, 31, 16], strides = [1, 1, 1]} : vector<2x32x16xf32> to vector<2x31x16xf32>
    %251 = tpu.concatenate %249, %250 in 1 : vector<2x1x16xf32>, vector<2x31x16xf32> -> vector<2x32x16xf32>
    %c1_i32_106 = arith.constant 1 : i32
    %252 = vector.broadcast %c1_i32_106 : i32 to vector<32x16xi32>
    %253 = arith.andi %11, %252 : vector<32x16xi32>
    %c0_i32_107 = arith.constant 0 : i32
    %254 = vector.broadcast %c0_i32_107 : i32 to vector<32x16xi32>
    %255 = arith.cmpi eq, %253, %254 : vector<32x16xi32>
    %256 = vector.shape_cast %255 : vector<32x16xi1> to vector<1x32x16xi1>
    %257 = vector.broadcast %256 : vector<1x32x16xi1> to vector<2x32x16xi1>
    %258 = arith.select %257, %248, %251 : vector<2x32x16xi1>, vector<2x32x16xf32>
    %259 = arith.maximumf %245, %258 : vector<2x32x16xf32>
    %cst_108 = arith.constant 0.000000e+00 : f32
    %260 = vector.broadcast %cst_108 : f32 to vector<2x2x16xf32>
    %261 = vector.extract_strided_slice %259 {offsets = [0, 2, 0], sizes = [2, 30, 16], strides = [1, 1, 1]} : vector<2x32x16xf32> to vector<2x30x16xf32>
    %262 = tpu.concatenate %261, %260 in 1 : vector<2x30x16xf32>, vector<2x2x16xf32> -> vector<2x32x16xf32>
    %cst_109 = arith.constant 0.000000e+00 : f32
    %263 = vector.broadcast %cst_109 : f32 to vector<2x2x16xf32>
    %264 = vector.extract_strided_slice %259 {offsets = [0, 0, 0], sizes = [2, 30, 16], strides = [1, 1, 1]} : vector<2x32x16xf32> to vector<2x30x16xf32>
    %265 = tpu.concatenate %263, %264 in 1 : vector<2x2x16xf32>, vector<2x30x16xf32> -> vector<2x32x16xf32>
    %c2_i32_110 = arith.constant 2 : i32
    %266 = vector.broadcast %c2_i32_110 : i32 to vector<32x16xi32>
    %267 = arith.andi %11, %266 : vector<32x16xi32>
    %c0_i32_111 = arith.constant 0 : i32
    %268 = vector.broadcast %c0_i32_111 : i32 to vector<32x16xi32>
    %269 = arith.cmpi eq, %267, %268 : vector<32x16xi32>
    %270 = vector.shape_cast %269 : vector<32x16xi1> to vector<1x32x16xi1>
    %271 = vector.broadcast %270 : vector<1x32x16xi1> to vector<2x32x16xi1>
    %272 = arith.select %271, %262, %265 : vector<2x32x16xi1>, vector<2x32x16xf32>
    %273 = arith.maximumf %259, %272 : vector<2x32x16xf32>
    %274 = vector.extract_strided_slice %273 {offsets = [0, 4, 0], sizes = [2, 16, 16], strides = [1, 1, 1]} : vector<2x32x16xf32> to vector<2x16x16xf32>
    %c-4_i32 = arith.constant -4 : i32
    %275 = vector.broadcast %c-4_i32 : i32 to vector<16x16xi32>
    %276 = arith.addi %10, %275 : vector<16x16xi32>
    %c0_i32_112 = arith.constant 0 : i32
    %277 = vector.broadcast %c0_i32_112 : i32 to vector<16x16xi32>
    %278 = arith.cmpi sge, %276, %277 : vector<16x16xi32>
    %c16_i32_113 = arith.constant 16 : i32
    %279 = vector.broadcast %c16_i32_113 : i32 to vector<16x16xi32>
    %280 = arith.cmpi slt, %276, %279 : vector<16x16xi32>
    %281 = arith.andi %278, %280 : vector<16x16xi1>
    %cst_114 = arith.constant 0.000000e+00 : f32
    %282 = vector.shape_cast %281 : vector<16x16xi1> to vector<1x16x16xi1>
    %283 = vector.broadcast %282 : vector<1x16x16xi1> to vector<2x16x16xi1>
    %284 = vector.broadcast %cst_114 : f32 to vector<2x16x16xf32>
    %285 = arith.select %283, %274, %284 : vector<2x16x16xi1>, vector<2x16x16xf32>
    %cst_115 = arith.constant 0.000000e+00 : f32
    %286 = vector.broadcast %cst_115 : f32 to vector<2x16x4xf32>
    %287 = vector.extract_strided_slice %285 {offsets = [0, 0, 0], sizes = [2, 16, 12], strides = [1, 1, 1]} : vector<2x16x16xf32> to vector<2x16x12xf32>
    %288 = tpu.concatenate %286, %287 in 2 : vector<2x16x4xf32>, vector<2x16x12xf32> -> vector<2x16x16xf32>
    %c18 = arith.constant 18 : index
    %c0_116 = arith.constant 0 : index
    %c0_117 = arith.constant 0 : index
    %c0_118 = arith.constant 0 : index
    %289 = vector.load %arg5[%c18, %c0_116, %c0_117, %c0_118] : memref<36x2x1x1xf32, #tpu.memory_space<vmem>>, vector<1x2x1x1xf32>
    %290 = vector.shape_cast %289 : vector<1x2x1x1xf32> to vector<2x1x1xf32>
    %291 = vector.broadcast %290 : vector<2x1x1xf32> to vector<2x16x16xf32>
    %292 = arith.mulf %288, %291 : vector<2x16x16xf32>
    %c19 = arith.constant 19 : index
    %c0_119 = arith.constant 0 : index
    %c0_120 = arith.constant 0 : index
    %c0_121 = arith.constant 0 : index
    %293 = vector.load %arg5[%c19, %c0_119, %c0_120, %c0_121] : memref<36x2x1x1xf32, #tpu.memory_space<vmem>>, vector<1x2x1x1xf32>
    %294 = vector.shape_cast %293 : vector<1x2x1x1xf32> to vector<2x1x1xf32>
    %295 = vector.broadcast %294 : vector<2x1x1xf32> to vector<2x16x16xf32>
    %296 = arith.mulf %285, %295 : vector<2x16x16xf32>
    %297 = arith.addf %292, %296 : vector<2x16x16xf32>
    %cst_122 = arith.constant 0.000000e+00 : f32
    %298 = vector.broadcast %cst_122 : f32 to vector<2x16x4xf32>
    %299 = vector.extract_strided_slice %285 {offsets = [0, 0, 4], sizes = [2, 16, 12], strides = [1, 1, 1]} : vector<2x16x16xf32> to vector<2x16x12xf32>
    %300 = tpu.concatenate %299, %298 in 2 : vector<2x16x12xf32>, vector<2x16x4xf32> -> vector<2x16x16xf32>
    %c20 = arith.constant 20 : index
    %c0_123 = arith.constant 0 : index
    %c0_124 = arith.constant 0 : index
    %c0_125 = arith.constant 0 : index
    %301 = vector.load %arg5[%c20, %c0_123, %c0_124, %c0_125] : memref<36x2x1x1xf32, #tpu.memory_space<vmem>>, vector<1x2x1x1xf32>
    %302 = vector.shape_cast %301 : vector<1x2x1x1xf32> to vector<2x1x1xf32>
    %303 = vector.broadcast %302 : vector<2x1x1xf32> to vector<2x16x16xf32>
    %304 = arith.mulf %300, %303 : vector<2x16x16xf32>
    %305 = arith.addf %297, %304 : vector<2x16x16xf32>
    %306 = vector.extract_strided_slice %273 {offsets = [0, 8, 0], sizes = [2, 16, 16], strides = [1, 1, 1]} : vector<2x32x16xf32> to vector<2x16x16xf32>
    %cst_126 = arith.constant 0.000000e+00 : f32
    %307 = vector.broadcast %cst_126 : f32 to vector<2x16x4xf32>
    %308 = vector.extract_strided_slice %306 {offsets = [0, 0, 0], sizes = [2, 16, 12], strides = [1, 1, 1]} : vector<2x16x16xf32> to vector<2x16x12xf32>
    %309 = tpu.concatenate %307, %308 in 2 : vector<2x16x4xf32>, vector<2x16x12xf32> -> vector<2x16x16xf32>
    %c21 = arith.constant 21 : index
    %c0_127 = arith.constant 0 : index
    %c0_128 = arith.constant 0 : index
    %c0_129 = arith.constant 0 : index
    %310 = vector.load %arg5[%c21, %c0_127, %c0_128, %c0_129] : memref<36x2x1x1xf32, #tpu.memory_space<vmem>>, vector<1x2x1x1xf32>
    %311 = vector.shape_cast %310 : vector<1x2x1x1xf32> to vector<2x1x1xf32>
    %312 = vector.broadcast %311 : vector<2x1x1xf32> to vector<2x16x16xf32>
    %313 = arith.mulf %309, %312 : vector<2x16x16xf32>
    %314 = arith.addf %305, %313 : vector<2x16x16xf32>
    %c22 = arith.constant 22 : index
    %c0_130 = arith.constant 0 : index
    %c0_131 = arith.constant 0 : index
    %c0_132 = arith.constant 0 : index
    %315 = vector.load %arg5[%c22, %c0_130, %c0_131, %c0_132] : memref<36x2x1x1xf32, #tpu.memory_space<vmem>>, vector<1x2x1x1xf32>
    %316 = vector.shape_cast %315 : vector<1x2x1x1xf32> to vector<2x1x1xf32>
    %317 = vector.broadcast %316 : vector<2x1x1xf32> to vector<2x16x16xf32>
    %318 = arith.mulf %306, %317 : vector<2x16x16xf32>
    %319 = arith.addf %314, %318 : vector<2x16x16xf32>
    %cst_133 = arith.constant 0.000000e+00 : f32
    %320 = vector.broadcast %cst_133 : f32 to vector<2x16x4xf32>
    %321 = vector.extract_strided_slice %306 {offsets = [0, 0, 4], sizes = [2, 16, 12], strides = [1, 1, 1]} : vector<2x16x16xf32> to vector<2x16x12xf32>
    %322 = tpu.concatenate %321, %320 in 2 : vector<2x16x12xf32>, vector<2x16x4xf32> -> vector<2x16x16xf32>
    %c23 = arith.constant 23 : index
    %c0_134 = arith.constant 0 : index
    %c0_135 = arith.constant 0 : index
    %c0_136 = arith.constant 0 : index
    %323 = vector.load %arg5[%c23, %c0_134, %c0_135, %c0_136] : memref<36x2x1x1xf32, #tpu.memory_space<vmem>>, vector<1x2x1x1xf32>
    %324 = vector.shape_cast %323 : vector<1x2x1x1xf32> to vector<2x1x1xf32>
    %325 = vector.broadcast %324 : vector<2x1x1xf32> to vector<2x16x16xf32>
    %326 = arith.mulf %322, %325 : vector<2x16x16xf32>
    %327 = arith.addf %319, %326 : vector<2x16x16xf32>
    %328 = vector.extract_strided_slice %273 {offsets = [0, 12, 0], sizes = [2, 16, 16], strides = [1, 1, 1]} : vector<2x32x16xf32> to vector<2x16x16xf32>
    %c4_i32 = arith.constant 4 : i32
    %329 = vector.broadcast %c4_i32 : i32 to vector<16x16xi32>
    %330 = arith.addi %10, %329 : vector<16x16xi32>
    %c0_i32_137 = arith.constant 0 : i32
    %331 = vector.broadcast %c0_i32_137 : i32 to vector<16x16xi32>
    %332 = arith.cmpi sge, %330, %331 : vector<16x16xi32>
    %c16_i32_138 = arith.constant 16 : i32
    %333 = vector.broadcast %c16_i32_138 : i32 to vector<16x16xi32>
    %334 = arith.cmpi slt, %330, %333 : vector<16x16xi32>
    %335 = arith.andi %332, %334 : vector<16x16xi1>
    %cst_139 = arith.constant 0.000000e+00 : f32
    %336 = vector.shape_cast %335 : vector<16x16xi1> to vector<1x16x16xi1>
    %337 = vector.broadcast %336 : vector<1x16x16xi1> to vector<2x16x16xi1>
    %338 = vector.broadcast %cst_139 : f32 to vector<2x16x16xf32>
    %339 = arith.select %337, %328, %338 : vector<2x16x16xi1>, vector<2x16x16xf32>
    %cst_140 = arith.constant 0.000000e+00 : f32
    %340 = vector.broadcast %cst_140 : f32 to vector<2x16x4xf32>
    %341 = vector.extract_strided_slice %339 {offsets = [0, 0, 0], sizes = [2, 16, 12], strides = [1, 1, 1]} : vector<2x16x16xf32> to vector<2x16x12xf32>
    %342 = tpu.concatenate %340, %341 in 2 : vector<2x16x4xf32>, vector<2x16x12xf32> -> vector<2x16x16xf32>
    %c24 = arith.constant 24 : index
    %c0_141 = arith.constant 0 : index
    %c0_142 = arith.constant 0 : index
    %c0_143 = arith.constant 0 : index
    %343 = vector.load %arg5[%c24, %c0_141, %c0_142, %c0_143] : memref<36x2x1x1xf32, #tpu.memory_space<vmem>>, vector<1x2x1x1xf32>
    %344 = vector.shape_cast %343 : vector<1x2x1x1xf32> to vector<2x1x1xf32>
    %345 = vector.broadcast %344 : vector<2x1x1xf32> to vector<2x16x16xf32>
    %346 = arith.mulf %342, %345 : vector<2x16x16xf32>
    %347 = arith.addf %327, %346 : vector<2x16x16xf32>
    %c25 = arith.constant 25 : index
    %c0_144 = arith.constant 0 : index
    %c0_145 = arith.constant 0 : index
    %c0_146 = arith.constant 0 : index
    %348 = vector.load %arg5[%c25, %c0_144, %c0_145, %c0_146] : memref<36x2x1x1xf32, #tpu.memory_space<vmem>>, vector<1x2x1x1xf32>
    %349 = vector.shape_cast %348 : vector<1x2x1x1xf32> to vector<2x1x1xf32>
    %350 = vector.broadcast %349 : vector<2x1x1xf32> to vector<2x16x16xf32>
    %351 = arith.mulf %339, %350 : vector<2x16x16xf32>
    %352 = arith.addf %347, %351 : vector<2x16x16xf32>
    %cst_147 = arith.constant 0.000000e+00 : f32
    %353 = vector.broadcast %cst_147 : f32 to vector<2x16x4xf32>
    %354 = vector.extract_strided_slice %339 {offsets = [0, 0, 4], sizes = [2, 16, 12], strides = [1, 1, 1]} : vector<2x16x16xf32> to vector<2x16x12xf32>
    %355 = tpu.concatenate %354, %353 in 2 : vector<2x16x12xf32>, vector<2x16x4xf32> -> vector<2x16x16xf32>
    %c26 = arith.constant 26 : index
    %c0_148 = arith.constant 0 : index
    %c0_149 = arith.constant 0 : index
    %c0_150 = arith.constant 0 : index
    %356 = vector.load %arg5[%c26, %c0_148, %c0_149, %c0_150] : memref<36x2x1x1xf32, #tpu.memory_space<vmem>>, vector<1x2x1x1xf32>
    %357 = vector.shape_cast %356 : vector<1x2x1x1xf32> to vector<2x1x1xf32>
    %358 = vector.broadcast %357 : vector<2x1x1xf32> to vector<2x16x16xf32>
    %359 = arith.mulf %355, %358 : vector<2x16x16xf32>
    %360 = arith.addf %352, %359 : vector<2x16x16xf32>
    %361 = vector.extract_strided_slice %7 {offsets = [6, 0, 0], sizes = [2, 32, 16], strides = [1, 1, 1]} : vector<8x32x16xf32> to vector<2x32x16xf32>
    %cst_151 = arith.constant 0.000000e+00 : f32
    %362 = vector.broadcast %cst_151 : f32 to vector<2x32x1xf32>
    %363 = vector.extract_strided_slice %361 {offsets = [0, 0, 1], sizes = [2, 32, 15], strides = [1, 1, 1]} : vector<2x32x16xf32> to vector<2x32x15xf32>
    %364 = tpu.concatenate %363, %362 in 2 : vector<2x32x15xf32>, vector<2x32x1xf32> -> vector<2x32x16xf32>
    %cst_152 = arith.constant 0.000000e+00 : f32
    %365 = vector.broadcast %cst_152 : f32 to vector<2x32x1xf32>
    %366 = vector.extract_strided_slice %361 {offsets = [0, 0, 0], sizes = [2, 32, 15], strides = [1, 1, 1]} : vector<2x32x16xf32> to vector<2x32x15xf32>
    %367 = tpu.concatenate %365, %366 in 2 : vector<2x32x1xf32>, vector<2x32x15xf32> -> vector<2x32x16xf32>
    %c1_i32_153 = arith.constant 1 : i32
    %368 = vector.broadcast %c1_i32_153 : i32 to vector<32x16xi32>
    %369 = arith.andi %12, %368 : vector<32x16xi32>
    %c0_i32_154 = arith.constant 0 : i32
    %370 = vector.broadcast %c0_i32_154 : i32 to vector<32x16xi32>
    %371 = arith.cmpi eq, %369, %370 : vector<32x16xi32>
    %372 = vector.shape_cast %371 : vector<32x16xi1> to vector<1x32x16xi1>
    %373 = vector.broadcast %372 : vector<1x32x16xi1> to vector<2x32x16xi1>
    %374 = arith.select %373, %364, %367 : vector<2x32x16xi1>, vector<2x32x16xf32>
    %375 = arith.maximumf %361, %374 : vector<2x32x16xf32>
    %cst_155 = arith.constant 0.000000e+00 : f32
    %376 = vector.broadcast %cst_155 : f32 to vector<2x32x2xf32>
    %377 = vector.extract_strided_slice %375 {offsets = [0, 0, 2], sizes = [2, 32, 14], strides = [1, 1, 1]} : vector<2x32x16xf32> to vector<2x32x14xf32>
    %378 = tpu.concatenate %377, %376 in 2 : vector<2x32x14xf32>, vector<2x32x2xf32> -> vector<2x32x16xf32>
    %cst_156 = arith.constant 0.000000e+00 : f32
    %379 = vector.broadcast %cst_156 : f32 to vector<2x32x2xf32>
    %380 = vector.extract_strided_slice %375 {offsets = [0, 0, 0], sizes = [2, 32, 14], strides = [1, 1, 1]} : vector<2x32x16xf32> to vector<2x32x14xf32>
    %381 = tpu.concatenate %379, %380 in 2 : vector<2x32x2xf32>, vector<2x32x14xf32> -> vector<2x32x16xf32>
    %c2_i32_157 = arith.constant 2 : i32
    %382 = vector.broadcast %c2_i32_157 : i32 to vector<32x16xi32>
    %383 = arith.andi %12, %382 : vector<32x16xi32>
    %c0_i32_158 = arith.constant 0 : i32
    %384 = vector.broadcast %c0_i32_158 : i32 to vector<32x16xi32>
    %385 = arith.cmpi eq, %383, %384 : vector<32x16xi32>
    %386 = vector.shape_cast %385 : vector<32x16xi1> to vector<1x32x16xi1>
    %387 = vector.broadcast %386 : vector<1x32x16xi1> to vector<2x32x16xi1>
    %388 = arith.select %387, %378, %381 : vector<2x32x16xi1>, vector<2x32x16xf32>
    %389 = arith.maximumf %375, %388 : vector<2x32x16xf32>
    %cst_159 = arith.constant 0.000000e+00 : f32
    %390 = vector.broadcast %cst_159 : f32 to vector<2x32x4xf32>
    %391 = vector.extract_strided_slice %389 {offsets = [0, 0, 4], sizes = [2, 32, 12], strides = [1, 1, 1]} : vector<2x32x16xf32> to vector<2x32x12xf32>
    %392 = tpu.concatenate %391, %390 in 2 : vector<2x32x12xf32>, vector<2x32x4xf32> -> vector<2x32x16xf32>
    %cst_160 = arith.constant 0.000000e+00 : f32
    %393 = vector.broadcast %cst_160 : f32 to vector<2x32x4xf32>
    %394 = vector.extract_strided_slice %389 {offsets = [0, 0, 0], sizes = [2, 32, 12], strides = [1, 1, 1]} : vector<2x32x16xf32> to vector<2x32x12xf32>
    %395 = tpu.concatenate %393, %394 in 2 : vector<2x32x4xf32>, vector<2x32x12xf32> -> vector<2x32x16xf32>
    %c4_i32_161 = arith.constant 4 : i32
    %396 = vector.broadcast %c4_i32_161 : i32 to vector<32x16xi32>
    %397 = arith.andi %12, %396 : vector<32x16xi32>
    %c0_i32_162 = arith.constant 0 : i32
    %398 = vector.broadcast %c0_i32_162 : i32 to vector<32x16xi32>
    %399 = arith.cmpi eq, %397, %398 : vector<32x16xi32>
    %400 = vector.shape_cast %399 : vector<32x16xi1> to vector<1x32x16xi1>
    %401 = vector.broadcast %400 : vector<1x32x16xi1> to vector<2x32x16xi1>
    %402 = arith.select %401, %392, %395 : vector<2x32x16xi1>, vector<2x32x16xf32>
    %403 = arith.maximumf %389, %402 : vector<2x32x16xf32>
    %cst_163 = arith.constant 0.000000e+00 : f32
    %404 = vector.broadcast %cst_163 : f32 to vector<2x1x16xf32>
    %405 = vector.extract_strided_slice %403 {offsets = [0, 1, 0], sizes = [2, 31, 16], strides = [1, 1, 1]} : vector<2x32x16xf32> to vector<2x31x16xf32>
    %406 = tpu.concatenate %405, %404 in 1 : vector<2x31x16xf32>, vector<2x1x16xf32> -> vector<2x32x16xf32>
    %cst_164 = arith.constant 0.000000e+00 : f32
    %407 = vector.broadcast %cst_164 : f32 to vector<2x1x16xf32>
    %408 = vector.extract_strided_slice %403 {offsets = [0, 0, 0], sizes = [2, 31, 16], strides = [1, 1, 1]} : vector<2x32x16xf32> to vector<2x31x16xf32>
    %409 = tpu.concatenate %407, %408 in 1 : vector<2x1x16xf32>, vector<2x31x16xf32> -> vector<2x32x16xf32>
    %c1_i32_165 = arith.constant 1 : i32
    %410 = vector.broadcast %c1_i32_165 : i32 to vector<32x16xi32>
    %411 = arith.andi %11, %410 : vector<32x16xi32>
    %c0_i32_166 = arith.constant 0 : i32
    %412 = vector.broadcast %c0_i32_166 : i32 to vector<32x16xi32>
    %413 = arith.cmpi eq, %411, %412 : vector<32x16xi32>
    %414 = vector.shape_cast %413 : vector<32x16xi1> to vector<1x32x16xi1>
    %415 = vector.broadcast %414 : vector<1x32x16xi1> to vector<2x32x16xi1>
    %416 = arith.select %415, %406, %409 : vector<2x32x16xi1>, vector<2x32x16xf32>
    %417 = arith.maximumf %403, %416 : vector<2x32x16xf32>
    %cst_167 = arith.constant 0.000000e+00 : f32
    %418 = vector.broadcast %cst_167 : f32 to vector<2x2x16xf32>
    %419 = vector.extract_strided_slice %417 {offsets = [0, 2, 0], sizes = [2, 30, 16], strides = [1, 1, 1]} : vector<2x32x16xf32> to vector<2x30x16xf32>
    %420 = tpu.concatenate %419, %418 in 1 : vector<2x30x16xf32>, vector<2x2x16xf32> -> vector<2x32x16xf32>
    %cst_168 = arith.constant 0.000000e+00 : f32
    %421 = vector.broadcast %cst_168 : f32 to vector<2x2x16xf32>
    %422 = vector.extract_strided_slice %417 {offsets = [0, 0, 0], sizes = [2, 30, 16], strides = [1, 1, 1]} : vector<2x32x16xf32> to vector<2x30x16xf32>
    %423 = tpu.concatenate %421, %422 in 1 : vector<2x2x16xf32>, vector<2x30x16xf32> -> vector<2x32x16xf32>
    %c2_i32_169 = arith.constant 2 : i32
    %424 = vector.broadcast %c2_i32_169 : i32 to vector<32x16xi32>
    %425 = arith.andi %11, %424 : vector<32x16xi32>
    %c0_i32_170 = arith.constant 0 : i32
    %426 = vector.broadcast %c0_i32_170 : i32 to vector<32x16xi32>
    %427 = arith.cmpi eq, %425, %426 : vector<32x16xi32>
    %428 = vector.shape_cast %427 : vector<32x16xi1> to vector<1x32x16xi1>
    %429 = vector.broadcast %428 : vector<1x32x16xi1> to vector<2x32x16xi1>
    %430 = arith.select %429, %420, %423 : vector<2x32x16xi1>, vector<2x32x16xf32>
    %431 = arith.maximumf %417, %430 : vector<2x32x16xf32>
    %cst_171 = arith.constant 0.000000e+00 : f32
    %432 = vector.broadcast %cst_171 : f32 to vector<2x4x16xf32>
    %433 = vector.extract_strided_slice %431 {offsets = [0, 4, 0], sizes = [2, 28, 16], strides = [1, 1, 1]} : vector<2x32x16xf32> to vector<2x28x16xf32>
    %434 = tpu.concatenate %433, %432 in 1 : vector<2x28x16xf32>, vector<2x4x16xf32> -> vector<2x32x16xf32>
    %cst_172 = arith.constant 0.000000e+00 : f32
    %435 = vector.broadcast %cst_172 : f32 to vector<2x4x16xf32>
    %436 = vector.extract_strided_slice %431 {offsets = [0, 0, 0], sizes = [2, 28, 16], strides = [1, 1, 1]} : vector<2x32x16xf32> to vector<2x28x16xf32>
    %437 = tpu.concatenate %435, %436 in 1 : vector<2x4x16xf32>, vector<2x28x16xf32> -> vector<2x32x16xf32>
    %c4_i32_173 = arith.constant 4 : i32
    %438 = vector.broadcast %c4_i32_173 : i32 to vector<32x16xi32>
    %439 = arith.andi %11, %438 : vector<32x16xi32>
    %c0_i32_174 = arith.constant 0 : i32
    %440 = vector.broadcast %c0_i32_174 : i32 to vector<32x16xi32>
    %441 = arith.cmpi eq, %439, %440 : vector<32x16xi32>
    %442 = vector.shape_cast %441 : vector<32x16xi1> to vector<1x32x16xi1>
    %443 = vector.broadcast %442 : vector<1x32x16xi1> to vector<2x32x16xi1>
    %444 = arith.select %443, %434, %437 : vector<2x32x16xi1>, vector<2x32x16xf32>
    %445 = arith.maximumf %431, %444 : vector<2x32x16xf32>
    %446 = vector.extract_strided_slice %445 {offsets = [0, 0, 0], sizes = [2, 16, 16], strides = [1, 1, 1]} : vector<2x32x16xf32> to vector<2x16x16xf32>
    %c-8_i32 = arith.constant -8 : i32
    %447 = vector.broadcast %c-8_i32 : i32 to vector<16x16xi32>
    %448 = arith.addi %10, %447 : vector<16x16xi32>
    %c0_i32_175 = arith.constant 0 : i32
    %449 = vector.broadcast %c0_i32_175 : i32 to vector<16x16xi32>
    %450 = arith.cmpi sge, %448, %449 : vector<16x16xi32>
    %c16_i32_176 = arith.constant 16 : i32
    %451 = vector.broadcast %c16_i32_176 : i32 to vector<16x16xi32>
    %452 = arith.cmpi slt, %448, %451 : vector<16x16xi32>
    %453 = arith.andi %450, %452 : vector<16x16xi1>
    %cst_177 = arith.constant 0.000000e+00 : f32
    %454 = vector.shape_cast %453 : vector<16x16xi1> to vector<1x16x16xi1>
    %455 = vector.broadcast %454 : vector<1x16x16xi1> to vector<2x16x16xi1>
    %456 = vector.broadcast %cst_177 : f32 to vector<2x16x16xf32>
    %457 = arith.select %455, %446, %456 : vector<2x16x16xi1>, vector<2x16x16xf32>
    %cst_178 = arith.constant 0.000000e+00 : f32
    %458 = vector.broadcast %cst_178 : f32 to vector<2x16x8xf32>
    %459 = vector.extract_strided_slice %457 {offsets = [0, 0, 0], sizes = [2, 16, 8], strides = [1, 1, 1]} : vector<2x16x16xf32> to vector<2x16x8xf32>
    %460 = tpu.concatenate %458, %459 in 2 : vector<2x16x8xf32>, vector<2x16x8xf32> -> vector<2x16x16xf32>
    %c27 = arith.constant 27 : index
    %c0_179 = arith.constant 0 : index
    %c0_180 = arith.constant 0 : index
    %c0_181 = arith.constant 0 : index
    %461 = vector.load %arg5[%c27, %c0_179, %c0_180, %c0_181] : memref<36x2x1x1xf32, #tpu.memory_space<vmem>>, vector<1x2x1x1xf32>
    %462 = vector.shape_cast %461 : vector<1x2x1x1xf32> to vector<2x1x1xf32>
    %463 = vector.broadcast %462 : vector<2x1x1xf32> to vector<2x16x16xf32>
    %464 = arith.mulf %460, %463 : vector<2x16x16xf32>
    %c28 = arith.constant 28 : index
    %c0_182 = arith.constant 0 : index
    %c0_183 = arith.constant 0 : index
    %c0_184 = arith.constant 0 : index
    %465 = vector.load %arg5[%c28, %c0_182, %c0_183, %c0_184] : memref<36x2x1x1xf32, #tpu.memory_space<vmem>>, vector<1x2x1x1xf32>
    %466 = vector.shape_cast %465 : vector<1x2x1x1xf32> to vector<2x1x1xf32>
    %467 = vector.broadcast %466 : vector<2x1x1xf32> to vector<2x16x16xf32>
    %468 = arith.mulf %457, %467 : vector<2x16x16xf32>
    %469 = arith.addf %464, %468 : vector<2x16x16xf32>
    %cst_185 = arith.constant 0.000000e+00 : f32
    %470 = vector.broadcast %cst_185 : f32 to vector<2x16x8xf32>
    %471 = vector.extract_strided_slice %457 {offsets = [0, 0, 8], sizes = [2, 16, 8], strides = [1, 1, 1]} : vector<2x16x16xf32> to vector<2x16x8xf32>
    %472 = tpu.concatenate %471, %470 in 2 : vector<2x16x8xf32>, vector<2x16x8xf32> -> vector<2x16x16xf32>
    %c29 = arith.constant 29 : index
    %c0_186 = arith.constant 0 : index
    %c0_187 = arith.constant 0 : index
    %c0_188 = arith.constant 0 : index
    %473 = vector.load %arg5[%c29, %c0_186, %c0_187, %c0_188] : memref<36x2x1x1xf32, #tpu.memory_space<vmem>>, vector<1x2x1x1xf32>
    %474 = vector.shape_cast %473 : vector<1x2x1x1xf32> to vector<2x1x1xf32>
    %475 = vector.broadcast %474 : vector<2x1x1xf32> to vector<2x16x16xf32>
    %476 = arith.mulf %472, %475 : vector<2x16x16xf32>
    %477 = arith.addf %469, %476 : vector<2x16x16xf32>
    %478 = vector.extract_strided_slice %445 {offsets = [0, 8, 0], sizes = [2, 16, 16], strides = [1, 1, 1]} : vector<2x32x16xf32> to vector<2x16x16xf32>
    %cst_189 = arith.constant 0.000000e+00 : f32
    %479 = vector.broadcast %cst_189 : f32 to vector<2x16x8xf32>
    %480 = vector.extract_strided_slice %478 {offsets = [0, 0, 0], sizes = [2, 16, 8], strides = [1, 1, 1]} : vector<2x16x16xf32> to vector<2x16x8xf32>
    %481 = tpu.concatenate %479, %480 in 2 : vector<2x16x8xf32>, vector<2x16x8xf32> -> vector<2x16x16xf32>
    %c30 = arith.constant 30 : index
    %c0_190 = arith.constant 0 : index
    %c0_191 = arith.constant 0 : index
    %c0_192 = arith.constant 0 : index
    %482 = vector.load %arg5[%c30, %c0_190, %c0_191, %c0_192] : memref<36x2x1x1xf32, #tpu.memory_space<vmem>>, vector<1x2x1x1xf32>
    %483 = vector.shape_cast %482 : vector<1x2x1x1xf32> to vector<2x1x1xf32>
    %484 = vector.broadcast %483 : vector<2x1x1xf32> to vector<2x16x16xf32>
    %485 = arith.mulf %481, %484 : vector<2x16x16xf32>
    %486 = arith.addf %477, %485 : vector<2x16x16xf32>
    %c31 = arith.constant 31 : index
    %c0_193 = arith.constant 0 : index
    %c0_194 = arith.constant 0 : index
    %c0_195 = arith.constant 0 : index
    %487 = vector.load %arg5[%c31, %c0_193, %c0_194, %c0_195] : memref<36x2x1x1xf32, #tpu.memory_space<vmem>>, vector<1x2x1x1xf32>
    %488 = vector.shape_cast %487 : vector<1x2x1x1xf32> to vector<2x1x1xf32>
    %489 = vector.broadcast %488 : vector<2x1x1xf32> to vector<2x16x16xf32>
    %490 = arith.mulf %478, %489 : vector<2x16x16xf32>
    %491 = arith.addf %486, %490 : vector<2x16x16xf32>
    %cst_196 = arith.constant 0.000000e+00 : f32
    %492 = vector.broadcast %cst_196 : f32 to vector<2x16x8xf32>
    %493 = vector.extract_strided_slice %478 {offsets = [0, 0, 8], sizes = [2, 16, 8], strides = [1, 1, 1]} : vector<2x16x16xf32> to vector<2x16x8xf32>
    %494 = tpu.concatenate %493, %492 in 2 : vector<2x16x8xf32>, vector<2x16x8xf32> -> vector<2x16x16xf32>
    %c32 = arith.constant 32 : index
    %c0_197 = arith.constant 0 : index
    %c0_198 = arith.constant 0 : index
    %c0_199 = arith.constant 0 : index
    %495 = vector.load %arg5[%c32, %c0_197, %c0_198, %c0_199] : memref<36x2x1x1xf32, #tpu.memory_space<vmem>>, vector<1x2x1x1xf32>
    %496 = vector.shape_cast %495 : vector<1x2x1x1xf32> to vector<2x1x1xf32>
    %497 = vector.broadcast %496 : vector<2x1x1xf32> to vector<2x16x16xf32>
    %498 = arith.mulf %494, %497 : vector<2x16x16xf32>
    %499 = arith.addf %491, %498 : vector<2x16x16xf32>
    %500 = vector.extract_strided_slice %445 {offsets = [0, 16, 0], sizes = [2, 16, 16], strides = [1, 1, 1]} : vector<2x32x16xf32> to vector<2x16x16xf32>
    %c8_i32 = arith.constant 8 : i32
    %501 = vector.broadcast %c8_i32 : i32 to vector<16x16xi32>
    %502 = arith.addi %10, %501 : vector<16x16xi32>
    %c0_i32_200 = arith.constant 0 : i32
    %503 = vector.broadcast %c0_i32_200 : i32 to vector<16x16xi32>
    %504 = arith.cmpi sge, %502, %503 : vector<16x16xi32>
    %c16_i32_201 = arith.constant 16 : i32
    %505 = vector.broadcast %c16_i32_201 : i32 to vector<16x16xi32>
    %506 = arith.cmpi slt, %502, %505 : vector<16x16xi32>
    %507 = arith.andi %504, %506 : vector<16x16xi1>
    %cst_202 = arith.constant 0.000000e+00 : f32
    %508 = vector.shape_cast %507 : vector<16x16xi1> to vector<1x16x16xi1>
    %509 = vector.broadcast %508 : vector<1x16x16xi1> to vector<2x16x16xi1>
    %510 = vector.broadcast %cst_202 : f32 to vector<2x16x16xf32>
    %511 = arith.select %509, %500, %510 : vector<2x16x16xi1>, vector<2x16x16xf32>
    %cst_203 = arith.constant 0.000000e+00 : f32
    %512 = vector.broadcast %cst_203 : f32 to vector<2x16x8xf32>
    %513 = vector.extract_strided_slice %511 {offsets = [0, 0, 0], sizes = [2, 16, 8], strides = [1, 1, 1]} : vector<2x16x16xf32> to vector<2x16x8xf32>
    %514 = tpu.concatenate %512, %513 in 2 : vector<2x16x8xf32>, vector<2x16x8xf32> -> vector<2x16x16xf32>
    %c33 = arith.constant 33 : index
    %c0_204 = arith.constant 0 : index
    %c0_205 = arith.constant 0 : index
    %c0_206 = arith.constant 0 : index
    %515 = vector.load %arg5[%c33, %c0_204, %c0_205, %c0_206] : memref<36x2x1x1xf32, #tpu.memory_space<vmem>>, vector<1x2x1x1xf32>
    %516 = vector.shape_cast %515 : vector<1x2x1x1xf32> to vector<2x1x1xf32>
    %517 = vector.broadcast %516 : vector<2x1x1xf32> to vector<2x16x16xf32>
    %518 = arith.mulf %514, %517 : vector<2x16x16xf32>
    %519 = arith.addf %499, %518 : vector<2x16x16xf32>
    %c34 = arith.constant 34 : index
    %c0_207 = arith.constant 0 : index
    %c0_208 = arith.constant 0 : index
    %c0_209 = arith.constant 0 : index
    %520 = vector.load %arg5[%c34, %c0_207, %c0_208, %c0_209] : memref<36x2x1x1xf32, #tpu.memory_space<vmem>>, vector<1x2x1x1xf32>
    %521 = vector.shape_cast %520 : vector<1x2x1x1xf32> to vector<2x1x1xf32>
    %522 = vector.broadcast %521 : vector<2x1x1xf32> to vector<2x16x16xf32>
    %523 = arith.mulf %511, %522 : vector<2x16x16xf32>
    %524 = arith.addf %519, %523 : vector<2x16x16xf32>
    %cst_210 = arith.constant 0.000000e+00 : f32
    %525 = vector.broadcast %cst_210 : f32 to vector<2x16x8xf32>
    %526 = vector.extract_strided_slice %511 {offsets = [0, 0, 8], sizes = [2, 16, 8], strides = [1, 1, 1]} : vector<2x16x16xf32> to vector<2x16x8xf32>
    %527 = tpu.concatenate %526, %525 in 2 : vector<2x16x8xf32>, vector<2x16x8xf32> -> vector<2x16x16xf32>
    %c35 = arith.constant 35 : index
    %c0_211 = arith.constant 0 : index
    %c0_212 = arith.constant 0 : index
    %c0_213 = arith.constant 0 : index
    %528 = vector.load %arg5[%c35, %c0_211, %c0_212, %c0_213] : memref<36x2x1x1xf32, #tpu.memory_space<vmem>>, vector<1x2x1x1xf32>
    %529 = vector.shape_cast %528 : vector<1x2x1x1xf32> to vector<2x1x1xf32>
    %530 = vector.broadcast %529 : vector<2x1x1xf32> to vector<2x16x16xf32>
    %531 = arith.mulf %527, %530 : vector<2x16x16xf32>
    %532 = arith.addf %524, %531 : vector<2x16x16xf32>
    %533 = tpu.concatenate %100, %216, %360, %532 in 0 : vector<2x16x16xf32>, vector<2x16x16xf32>, vector<2x16x16xf32>, vector<2x16x16xf32> -> vector<8x16x16xf32>
    %c0_214 = arith.constant 0 : index
    %c0_215 = arith.constant 0 : index
    %c0_216 = arith.constant 0 : index
    %534 = vector.load %arg6[%c0_214, %c0_215, %c0_216] : memref<8x1x1xf32, #tpu.memory_space<vmem>>, vector<8x1x1xf32>
    %535 = vector.broadcast %534 : vector<8x1x1xf32> to vector<8x16x16xf32>
    %536 = arith.addf %533, %535 : vector<8x16x16xf32>
    %c0_217 = arith.constant 0 : index
    %c0_218 = arith.constant 0 : index
    %c0_219 = arith.constant 0 : index
    %c0_220 = arith.constant 0 : index
    %537 = vector.load %arg7[%c0_217, %c0_218, %c0_219, %c0_220] : memref<1x8x16x16xf32, #tpu.memory_space<vmem>>, vector<1x8x16x16xf32>
    %538 = vector.shape_cast %537 : vector<1x8x16x16xf32> to vector<8x16x16xf32>
    %539 = vector.shape_cast %536 : vector<8x16x16xf32> to vector<1x8x16x16xf32>
    tpu.vector_store %arg7[%c0_217, %c0_218, %c0_219, %c0_220], %539 {strides = array<i32>} : memref<1x8x16x16xf32, #tpu.memory_space<vmem>>, vector<1x8x16x16xf32>,
    return
  }
  func.func @transform_0(%arg0: i32, %arg1: i32) -> (i32, i32, i32, i32) {
    %c0_i32 = arith.constant 0 : i32
    %c0_i32_0 = arith.constant 0 : i32
    %c0_i32_1 = arith.constant 0 : i32
    return %arg0, %c0_i32, %arg1, %c0_i32_0 : i32, i32, i32, i32
  }
  func.func @transform_1(%arg0: i32, %arg1: i32) -> (i32, i32, i32, i32) {
    %c2_i32 = arith.constant 2 : i32
    %0 = arith.muli %arg1, %c2_i32 : i32
    %c1_i32 = arith.constant 1 : i32
    %1 = arith.subi %0, %c1_i32 : i32
    %c0_i32 = arith.constant 0 : i32
    %2 = arith.maxsi %1, %c0_i32 : i32
    %c0_i32_0 = arith.constant 0 : i32
    %c0_i32_1 = arith.constant 0 : i32
    %c0_i32_2 = arith.constant 0 : i32
    return %arg0, %c0_i32_0, %2, %c0_i32_1 : i32, i32, i32, i32
  }
  func.func @transform_2(%arg0: i32, %arg1: i32) -> (i32, i32, i32, i32) {
    %c1_i32 = arith.constant 1 : i32
    %0 = arith.addi %arg1, %c1_i32 : i32
    %c2_i32 = arith.constant 2 : i32
    %1 = arith.muli %0, %c2_i32 : i32
    %c1_i32_0 = arith.constant 1 : i32
    %2 = arith.minsi %1, %c1_i32_0 : i32
    %c0_i32 = arith.constant 0 : i32
    %c0_i32_1 = arith.constant 0 : i32
    %c0_i32_2 = arith.constant 0 : i32
    return %arg0, %c0_i32, %2, %c0_i32_1 : i32, i32, i32, i32
  }
  func.func @transform_3(%arg0: i32, %arg1: i32) -> (i32, i32, i32, i32) {
    %c0_i32 = arith.constant 0 : i32
    %c0_i32_0 = arith.constant 0 : i32
    %c0_i32_1 = arith.constant 0 : i32
    %c0_i32_2 = arith.constant 0 : i32
    %c0_i32_3 = arith.constant 0 : i32
    return %c0_i32, %c0_i32_0, %c0_i32_1, %c0_i32_2 : i32, i32, i32, i32
  }
  func.func @transform_4(%arg0: i32, %arg1: i32) -> (i32, i32, i32) {
    %c0_i32 = arith.constant 0 : i32
    %c0_i32_0 = arith.constant 0 : i32
    %c0_i32_1 = arith.constant 0 : i32
    %c0_i32_2 = arith.constant 0 : i32
    return %c0_i32, %c0_i32_0, %c0_i32_1 : i32, i32, i32
  }
  func.func @transform_5(%arg0: i32, %arg1: i32) -> (i32, i32, i32, i32) {
    %c0_i32 = arith.constant 0 : i32
    %c0_i32_0 = arith.constant 0 : i32
    %c0_i32_1 = arith.constant 0 : i32
    return %arg0, %c0_i32, %arg1, %c0_i32_0 : i32, i32, i32, i32
  }
}

</mosaic_0001>

<bundles_post_ra>
// kernel: tpu_custom_call.1
= control target key start
LH: loop header
LB: loop body
LE: loop exit
PB: predicated region body
PF: predicated region fallthrough
CT: control target
= control target key end

     0   :  { %s6363_s0 = inlined_call_operand.hbm [shape: f32[2,8,16,16], index: 0, kind: input, shape index: {}]   ;;  %s6364_s1 = inlined_call_operand.hbm [shape: f32[2,8,16,16], index: 1, kind: input, shape index: {}]   ;;  %s6365_s2 = inlined_call_operand.hbm [shape: f32[2,8,16,16], index: 2, kind: input, shape index: {}]   ;;  %s6366_s3 = inlined_call_operand.vmem [shape: f32[36,2,1,1], index: 3, kind: input, shape index: {}]   ;;  %s6367_s4 = inlined_call_operand.vmem [shape: f32[8,1,1], index: 4, kind: input, shape index: {}]   ;;  %s6368_s5 = inlined_call_operand.hbm [shape: f32[2,8,16,16], index: 5, kind: output, shape index: {}]  }
   0x1   :  { %6479 = sst [smem:[#allocation140_spill]] %s6364_s1 }
   0x2   :  { %10 = vsyncpa [#allocation3], 0 }
   0x3   :  { %12 = vsyncpa [#allocation3 + $0x1], 0 }
   0x4   :  { %13 = vsyncpa [#allocation6], 0 }
   0x5   :  { %15 = vsyncpa [#allocation6 + $0x1], 0 }
   0x6   :  { %16 = vsyncpa [#allocation4], 0 }
   0x7   :  { %18 = vsyncpa [#allocation4 + $0x1], 0  ;;  %s3888_s18 = smov 0   ;;  %s3890_s19 = smov 0  }
   0x8   :  { %s3892_s20 = smov 0   ;;  %s3894_s21 = smov 0  }
   0x9   :  { %s3896_s22 = smov 0   ;;  %s3898_s23 = smov 0  }
   0xa LB: > { %6480 = sst [smem:[#allocation12_spill]] %s3826_s20  ;;  %s3919_s24 = sadd.s32 4294967295, %s3838_s23   ;;  %s3838_s23 = sphi %s3898_s23, %s24_s23   ;;  %s3834_s22 = sphi %s3896_s22, %s6896_s22   ;;  %s3830_s21 = sphi %s3894_s21, %s6895_s21   ;;  %s3826_s20 = sphi %s3892_s20, %s6894_s20   ;;  %s3822_s19 = sphi %s3890_s19, %s6898_s19   ;;  %s3818_s18 = sphi %s3888_s18, %s6897_s18  }
   0xb   : > { %6481 = sst [smem:[#allocation13_spill]] %s3834_s22  ;;  %s3372_s25 = sadd.s32 4294967294, %s3838_s23  }
   0xc   : > { %6482 = sst [smem:[#allocation14_spill]] %s3838_s23  ;;  %s36_s26 = sadd.s32 1, %s3834_s22 }
   0xd   : > { %s45_s27 = sadd.s32 1, %s3826_s20  ;;  %p38_p0 = scmp.ge.s32.totalorder %s36_s26, 2 }
   0xe   : > { %p52_p1 = scmp.ne.s32.totalorder %s3826_s20, %s3822_s19  ;;  %p53_p2 = scmp.eq.s32.totalorder %s3838_s23, 0 }
   0xf   : > { %p58_p3 = scmp.ne.s32.totalorder %s3822_s19, %s3818_s18  ;;  %s6900_s26 = smov (%p38_p0, %s36_s26), 0 }
  0x10   : > { %6483 = sst [smem:[#allocation15_spill]] %s6900_s26  ;;  %p3931_p4 = por %p53_p2, %p52_p1 }
  0x11   : > { %p59_p5 = scmp.eq.s32.totalorder %s3919_s24, 0  ;;  %s40_s29 = ssub.s32 %s3834_s22, %s6900_s26 }
  0x12   : > { %p198_p6 = scmp.eq.s32.totalorder %s3919_s24, 1  ;;  %p43_p7 = scmp.eq.s32.totalorder %s40_s29, 0 }
  0x13   : > { %p3939_p8 = por %p59_p5, %p58_p3  ;;  %p204_p10 = scmp.eq.s32.totalorder %s3372_s25, 1 }
  0x14   : > { %p3943_p9 = por %p198_p6, %p52_p1  ;;  %p3572_p13 = scmp.lt.s32.totalorder %s3838_s23, 2 }
  0x15   : > { %s6485_s30 = scalar_select %p3939_p8, 1, 0 }
  0x16   : > { %s6486_s6 = scalar_select %p3943_p9, 1, 0 }
  0x17   : > { %s3948_s7 = scalar_select %p43_p7, %s3826_s20, %s45_s27  }
  0x18   : > { %p3950_p11 = por %p204_p10, %p58_p3  ;;  %s3957_s9 = sand.u32 1, %s3826_s20  }
  0x19   : > { %6487 = sst [smem:[#allocation16_spill]] %s3948_s7  ;;  %s3960_s10 = sshll.u32 %s3834_s22, 11 }
  0x1a   : > { %s6488_s8 = scalar_select %p3950_p11, 1, 0 }
  0x1b   : > { %p3964_p0 = pnand %p3572_p13, %p3931_p4  ;;  %s253_s12 = sand.u32 1, %s3838_s23  }
  0x1c   : > { %6489 = sst [smem:[#allocation17_spill]] %s6488_s8  ;;  %s6369_s13 = sshll.u32 %s3957_s9, 6 }
  0x1d   : > { %s6491_s1 = sld [smem:[#allocation140_spill]]  ;;  %s257_s17 = scalar_lea.vmem [#allocation5], %s6369_s13 }
  0x1e   : > { %s269_s25 = sshll.u32 %s257_s17, 4  ;;  %s3980_s27 = scalar_lea.sflag [#allocation6], %s253_s12  ;;  %s3978_s25 = int_to_ptr.vmem [resolvable:$true] %s269_s25 }
  0x1f   : > { %p3986_p2 = pneg %p3964_p0 }
  0x23   : > { %s3974_s16 = scalar_lea.hbm %s6491_s1, %s3960_s10  ;;  %s3667_s13 = scalar_lea.hbm %s6491_s1, 4096 }
  0x24   : > { %s3662_s28 = scalar_lea.hbm %s3974_s16, 1024  ;;  %p3668_p5 = scmp.lt.u32.totalorder %s3974_s16, %s6491_s1 }
  0x25   : > { %p3663_p1 = scmp.ne.s32.totalorder %s3974_s16, %s3662_s28  ;;  %p3669_p6 = scmp.lt.u32.totalorder %s3667_s13, %s3662_s28 }
  0x26   : > { %p3671_p10 = scmp.lt.u32.totalorder %s3662_s28, %s3974_s16 }
  0x27   : > { %p3665_p3 = pnand %p3986_p2, %p3663_p1  ;;  %p3670_p7 = por %p3669_p6, %p3668_p5 }
  0x29   : > { %p3666_p4 = pneg %p3665_p3  ;;  %p3672_p13 = por %p3671_p10, %p3670_p7 }
  0x2b   : > { %p3673_p12 = pnand %p3672_p13, %p3666_p4 }
  0x2d   : > { %3676 = shalt.err (!%p3673_p12)
}
  0x2e   : > { %s3677_s12 = scalar_lea.vmem %s3978_s25, 1024  ;;  %s3840_s14 = smov [#allocation5]  }
  0x2f   : > { %p3678_p1 = scmp.ne.s32.totalorder %s3978_s25, %s3677_s12  ;;  %s3682_s15 = sshll.u32 %s3840_s14, 4  ;;  %s3683_s15 = int_to_ptr.vmem [resolvable:$false] %s3682_s15 }
  0x30   : > { %s3684_s26 = scalar_lea.vmem %s3683_s15, 2048  ;;  %p3685_p9 = scmp.lt.s32.totalorder %s3978_s25, %s3683_s15 }
  0x31   : > { %p3680_p3 = pnand %p3678_p1, %p3986_p2  ;;  %p3686_p8 = scmp.lt.s32.totalorder %s3684_s26, %s3677_s12 }
  0x33   : > { %p3681_p11 = pneg %p3680_p3  ;;  %p3687_p5 = por %p3686_p8, %p3685_p9 }
  0x35   : > { %p3688_p6 = pnand %p3687_p5, %p3681_p11 }
  0x37   : > { %3691 = shalt.err (!%p3688_p6)
}
  0x38   : > { %s6375_s13 = smov 256   ;;  %s6376_s28 = smov 128  }
  0x39   : > { %s6378_s17 = smov 8   ;;  %s6493_s12 = sshll.u32 %s3957_s9, 6 }
  0x3a   : > { %3564 = dma.hbm_to_vmem [thread:$0]  (!%p3964_p0), %s3974_s16, 1024, %s3978_s25, %s3980_s27, %s6375_s13, %s6376_s28, %s6378_s17  }
  0x3b   : > { %s283_s14 = scalar_lea.vmem [#allocation7], %s6493_s12  ;;  %p3384_p8 = scmp.ge.s32.totalorder %s3838_s23, 1 }
  0x3c   : > { %s295_s15 = sshll.u32 %s283_s14, 4  ;;  %p303_p9 = scmp.lt.s32.totalorder %s3838_s23, 3  ;;  %s4016_s15 = int_to_ptr.vmem [resolvable:$true] %s295_s15 }
  0x3d   : > { %s3375_s1 = sshll.u32 %s3957_s9, 7  ;;  %s4028_s20 = scalar_lea.hbm %s6363_s0, %s3960_s10 }
  0x3e   : > { %p4019_p11 = pnand %p3384_p8, %p303_p9  ;;  %s3547_s16 = sadd.s32 128, %s3960_s10 }
  0x3f   : > { %s234_s25 = scalar_lea.vmem [#allocation2], %s3375_s1  ;;  %s4034_s28 = scalar_lea.hbm %s6365_s2, %s3547_s16 }
  0x40   : > { %s6494_s26 = scalar_select %p4019_p11, 1, 0 }
  0x41   : > { %s243_s12 = sshll.u32 %s234_s25, 4  ;;  %s231_s17 = scalar_lea.sflag [#allocation3], %s3957_s9  ;;  %s4036_s12 = int_to_ptr.vmem [resolvable:$true] %s243_s12 }
  0x42   : > { %s3692_s23 = scalar_lea.hbm %s4028_s20, 2048  ;;  %s3697_s8 = scalar_lea.hbm %s6363_s0, 4096 }
  0x43   : > { %p3693_p12 = scmp.ne.s32.totalorder %s4028_s20, %s3692_s23  ;;  %p3698_p10 = scmp.lt.u32.totalorder %s4028_s20, %s6363_s0 }
  0x44   : > { %p3699_p13 = scmp.lt.u32.totalorder %s3697_s8, %s3692_s23  ;;  %p3701_p3 = scmp.lt.u32.totalorder %s3692_s23, %s4028_s20 }
  0x45   : > { %p3695_p4 = pnand %p3693_p12, %p3986_p2 }
  0x46   : > { %p3700_p1 = por %p3699_p13, %p3698_p10 }
  0x47   : > { %p3696_p7 = pneg %p3695_p4 }
  0x48   : > { %p3702_p5 = por %p3701_p3, %p3700_p1 }
  0x4a   : > { %p3703_p6 = pnand %p3702_p5, %p3696_p7 }
  0x4c   : > { %3706 = shalt.err (!%p3703_p6)
}
  0x4d   : > { %s3707_s13 = scalar_lea.vmem %s4036_s12, 2048  ;;  %s3844_s16 = smov [#allocation2]  }
  0x4e   : > { %p3708_p8 = scmp.ne.s32.totalorder %s4036_s12, %s3707_s13  ;;  %s3712_s25 = sshll.u32 %s3844_s16, 4  ;;  %s3713_s25 = int_to_ptr.vmem [resolvable:$false] %s3712_s25 }
  0x4f   : > { %s3714_s14 = scalar_lea.vmem %s3713_s25, 4096  ;;  %p3715_p4 = scmp.lt.s32.totalorder %s4036_s12, %s3713_s25 }
  0x50   : > { %p3710_p9 = pnand %p3708_p8, %p3986_p2  ;;  %p3716_p11 = scmp.lt.s32.totalorder %s3714_s14, %s3707_s13 }
  0x52   : > { %p3711_p12 = pneg %p3710_p9  ;;  %p3717_p10 = por %p3716_p11, %p3715_p4 }
  0x54   : > { %p3718_p13 = pnand %p3717_p10, %p3711_p12 }
  0x56   : > { %3721 = shalt.err (!%p3718_p13)
}
  0x57   : > { %s6495_s23 = smov 8   ;;  %s6496_s8 = smov 128  }
  0x58   : > { %3561 = dma.hbm_to_vmem [thread:$0]  (!%p3964_p0), %s4028_s20, 2048, %s4036_s12, %s231_s17, %s6496_s8, %s6496_s8, %s6495_s23  }
  0x59   : > { %s3722_s22 = scalar_lea.hbm %s4034_s28, 1024  ;;  %s3727_s1 = scalar_lea.hbm %s6365_s2, 4096 }
  0x5a   : > { %p3723_p7 = scmp.ne.s32.totalorder %s4034_s28, %s3722_s22  ;;  %p3728_p3 = scmp.lt.u32.totalorder %s4034_s28, %s6365_s2 }
  0x5b   : > { %p3729_p5 = scmp.lt.u32.totalorder %s3727_s1, %s3722_s22  ;;  %p3731_p8 = scmp.lt.u32.totalorder %s3722_s22, %s4034_s28 }
  0x5c   : > { %p3725_p11 = pnand %p3723_p7, %p3986_p2 }
  0x5d   : > { %p3730_p6 = por %p3729_p5, %p3728_p3 }
  0x5e   : > { %p3726_p1 = pneg %p3725_p11 }
  0x5f   : > { %p3732_p9 = por %p3731_p8, %p3730_p6 }
  0x61   : > { %p3733_p12 = pnand %p3732_p9, %p3726_p1 }
  0x63   : > { %3736 = shalt.err (!%p3733_p12)
}
  0x64   : > { %s3737_s20 = scalar_lea.vmem %s4016_s15, 1024  ;;  %s3845_s9 = smov [#allocation7]  }
  0x65   : > { %p3738_p4 = scmp.ne.s32.totalorder %s4016_s15, %s3737_s20  ;;  %s3742_s17 = sshll.u32 %s3845_s9, 4  ;;  %s3743_s17 = int_to_ptr.vmem [resolvable:$false] %s3742_s17 }
  0x66   : > { %s3744_s12 = scalar_lea.vmem %s3743_s17, 2048  ;;  %p3745_p7 = scmp.lt.s32.totalorder %s4016_s15, %s3743_s17 }
  0x67   : > { %p3740_p10 = pnand %p3738_p4, %p3986_p2  ;;  %p3746_p11 = scmp.lt.s32.totalorder %s3744_s12, %s3737_s20 }
  0x69   : > { %p3741_p13 = pneg %p3740_p10  ;;  %p3747_p3 = por %p3746_p11, %p3745_p7 }
  0x6b   : > { %p3748_p5 = pnand %p3747_p3, %p3741_p13 }
  0x6d   : > { %3751 = shalt.err (!%p3748_p5)
}
  0x6e   : > { %s6497_s25 = smov 256   ;;  %p6498_p2 = scmp.ne.s32.totalorder %s6494_s26, 0 }
  0x6f   : > { %3567 = dma.hbm_to_vmem [thread:$0]  (!%p3964_p0), %s4034_s28, 1024, %s4016_s15, %s3980_s27, %s6497_s25, %s6496_s8, %s6495_s23  }
  0x70   : > { %307 = sbr.rel (%p6498_p2) target bundleno = 1529 (0x5f9), region = 40 }
  0x77   : > { %s4093_s29 = sand.u32 1, %s3822_s19   ;;  %p6499_p1 = scmp.ne.s32.totalorder %s6485_s30, 0 }
  0x78   : > { %s3385_s14 = sshll.u32 %s4093_s29, 7  ;;  %s310_s22 = scalar_lea.sflag [#allocation3], %s4093_s29 }
  0x79   : > { %s4099_s11 = scalar_lea.vmem [#allocation2], %s3385_s14 }
  0x7a   : > { %3805 = dma.done.wait (%p6499_p1), %s310_s22, 2048  }
  0x7b   : > { %3807 = vsyncadd (%p6499_p1), %s310_s22, 4294965248  ;;  %s318_s27 = sand.u32 1, %s3919_s24   ;;  %s3386_s28 = sshll.u32 %s4093_s29, 6 }
  0x7c   : > { %s319_s15 = scalar_lea.sflag [#allocation6], %s318_s27  ;;  %s4109_s26 = scalar_lea.vmem [#allocation5], %s3386_s28 }
  0x7d   : > { %3809 = dma.done.wait (%p6499_p1), %s319_s15, 2048  }
  0x7e   : > { %3811 = vsyncadd (%p6499_p1), %s319_s15, 4294965248  ;;  %v3846_v0 = vmov 0   ;;  %v411_v1 = vlaneseq  ;;  %v3390_v3 = vld [vmem:[%s6366_s3 + $0x1] ss:$0 sm:$0xff]  ;;  %v4125_v5 = vld [vmem:[%s4099_s11 + $0x8] sm:$0xff]  ;;  %vm6434_vm0 = vcmask 1040384  }
  0x7f   : > { %3637 = vset.pattern.permute.xlu1 %v3846_v0  ;;  %3636 = vset.pattern.permute.xlu0 %v3846_v0  ;;  %v4122_v4 = vld [vmem:[%s4099_s11] sm:$0xff]  ;;  %v443_v7 = vrot.slane %v4125_v5, 7  ;;  %v4130_v8 = vld [vmem:[%s4099_s11 + $0x10] sm:$0xff]  ;;  %v4133_v9 = vld [vmem:[%s4099_s11 + $0x18] sm:$0xff]  ;;  %s3847_s30 = smov 1   ;;  %s3848_s20 = smov 127  }
  0x80   : > { %v4116_v2 = vshrl.u32 %v411_v1, 7  ;;  %496 = vperm.xlu1 %3637, %v3390_v3   ;;  %v441_v6 = vrot.slane %v4122_v4, 7  ;;  %v446_v10 = vrot.slane %v4130_v8, 7  ;;  %v448_v11 = vrot.slane %v4133_v9, 7  ;;  %v379_v12 = vld [vmem:[%s4109_s26] sm:$0xff]  ;;  %v380_v14 = vld [vmem:[%s4109_s26 + $0x8] sm:$0xff] }
  0x81   : > { %v440_v16 = vrot.slane %v379_v12, 7  ;;  %v445_v17 = vrot.slane %v380_v14, 7  ;;  %v3389_v19 = vld [vmem:[%s6366_s3] ss:$0 sm:$0xff]  ;;  %v3393_v20 = vld [vmem:[%s6366_s3 + $0x2] ss:$0 sm:$0xff] }
  0x82   : > { %v421_v13 = vadd.s32 4294967295, %v4116_v2  ;;  %v4141_v15 = vsel %vm6434_vm0, %v441_v6, %v443_v7  ;;  %v4146_v18 = vsel %vm6434_vm0, %v446_v10, %v448_v11  ;;  %v3394_v25 = vld [vmem:[%s6366_s3 + $0x3] ss:$0 sm:$0xff]  ;;  %v3397_v26 = vld [vmem:[%s6366_s3 + $0x4] ss:$0 sm:$0xff]  ;;  %v4206_v32 = vadd.s32 8, %v4116_v2 }
  0x83   : > { %6500 = vst [vmem:[#allocation18_spill] sm:$0xff] %v4141_v15  ;;  %464 = vrot.lane.b32.xlu0 %v4141_v15, %s3847_s30  ;;  %6501 = vst [vmem:[#allocation19_spill] sm:$0xff] %v4146_v18  ;;  %v442_v21 = vsel %vm6434_vm0, %v440_v16, %v441_v6  ;;  %v447_v22 = vsel %vm6434_vm0, %v445_v17, %v446_v10  ;;  %v3398_v27 = vld [vmem:[%s6366_s3 + $0x5] ss:$0 sm:$0xff]  ;;  %v3401_v28 = vld [vmem:[%s6366_s3 + $0x6] ss:$0 sm:$0xff] }
  0x84   : > { %468 = vrot.lane.b32.xlu1 %v4146_v18, %s3847_s30  ;;  %vm423_vm1 = vcmp.ge.s32.totalorder %v421_v13, 0  ;;  %v3402_v29 = vld [vmem:[%s6366_s3 + $0x7] ss:$0 sm:$0xff]  ;;  %v3405_v30 = vld [vmem:[%s6366_s3 + $0x8] ss:$0 sm:$0xff]  ;;  %6504 = vst [vmem:[#allocation22_spill] sm:$0xff] %v4206_v32 }
  0x85   : > { %v4158_v23 = vsel %vm423_vm1, %v442_v21, 0.0  ;;  %v4160_v24 = vsel %vm423_vm1, %v447_v22, 0.0  ;;  %v3406_v31 = vld [vmem:[%s6366_s3 + $0x9] ss:$0 sm:$0xff]  ;;  %s4210_s1 = scalar_lea.vmem [#allocation7], %s3386_s28  ;;  %v698_v34 = vadd.s32 1, %v4206_v32 }
  0x86   : > { %6502 = vst [vmem:[#allocation20_spill] sm:$0xff] %v4158_v23  ;;  %6503 = vst [vmem:[#allocation21_spill] sm:$0xff] %v4160_v24  ;;  %v403_v33 = vld [vmem:[%s4210_s1] sm:$0xff]  ;;  %v3409_v35 = vld [vmem:[%s6366_s3 + $0xa] ss:$0 sm:$0xff]  ;;  %v712_v36 = vrot.slane %v4122_v4, 1 }
  0x87   : > { %492 = vperm.xlu0 %3636, %v3389_v19   ;;  %v713_v37 = vrot.slane %v4125_v5, 1  ;;  %v715_v38 = vrot.slane %v403_v33, 1  ;;  %vm6435_vm2 = vcmask 1046528   ;;  %v404_v39 = vld [vmem:[%s4210_s1 + $0x8] sm:$0xff]  ;;  %vm702_vm3 = vcmp.lt.s32.totalorder %v698_v34, 16  ;;  %v4278_v56 = vld [vmem:[%s4109_s26 + $0x10] sm:$0xff] }
  0x88   : > { %517 = vperm.xlu1 %3637, %v3393_v20   ;;  %v3410_v40 = vld [vmem:[%s6366_s3 + $0xb] ss:$0 sm:$0xff]  ;;  %v717_v41 = vrot.slane %v4130_v8, 1  ;;  %v718_v44 = vrot.slane %v4133_v9, 1  ;;  %v720_v45 = vrot.slane %v404_v39, 1  ;;  %v4283_v57 = vld [vmem:[%s4099_s11 + $0x20] sm:$0xff] }
  0x89   : > { %v4231_v42 = vsel %vm6435_vm2, %v712_v36, %v713_v37  ;;  %v716_v43 = vsel %vm6435_vm2, %v713_v37, %v715_v38  ;;  %v3413_v50 = vld [vmem:[%s6366_s3 + $0xc] ss:$0 sm:$0xff]  ;;  %v3414_v51 = vld [vmem:[%s6366_s3 + $0xd] ss:$0 sm:$0xff]  ;;  %v3417_v52 = vld [vmem:[%s6366_s3 + $0xe] ss:$0 sm:$0xff] }
  0x8a   : > { %6505 = vst [vmem:[#allocation23_spill] sm:$0xff] %v4231_v42  ;;  %v4237_v46 = vsel %vm702_vm3, %v716_v43, 0.0  ;;  %v4240_v47 = vsel %vm6435_vm2, %v717_v41, %v718_v44  ;;  %v721_v48 = vsel %vm6435_vm2, %v718_v44, %v720_v45  ;;  %v3418_v53 = vld [vmem:[%s6366_s3 + $0xf] ss:$0 sm:$0xff]  ;;  %v3421_v54 = vld [vmem:[%s6366_s3 + $0x10] ss:$0 sm:$0xff] }
  0x8b   : > { %462 = vrot.lane.b32.xlu0 %v4158_v23, %s3847_s30  ;;  %6506 = vst [vmem:[#allocation24_spill] sm:$0xff] %v4237_v46  ;;  %6507 = vst [vmem:[#allocation25_spill] sm:$0xff] %v4240_v47  ;;  %v4247_v49 = vsel %vm702_vm3, %v721_v48, 0.0  ;;  %v3422_v55 = vld [vmem:[%s6366_s3 + $0x11] ss:$0 sm:$0xff]  ;;  %v4286_v58 = vld [vmem:[%s4099_s11 + $0x28] sm:$0xff] }
  0x8c   : > { %466 = vrot.lane.b32.xlu1 %v4160_v24, %s3847_s30  ;;  %6508 = vst [vmem:[#allocation26_spill] sm:$0xff] %v4247_v49  ;;  %v4293_v59 = vld [vmem:[%s4210_s1 + $0x10] sm:$0xff]  ;;  %v4296_v60 = vld [vmem:[%s4109_s26 + $0x18] sm:$0xff]  ;;  %vm6430_vm5 = vcmask 7168   ;;  %vm6474_vm6 = vcmask 121856   ;;  %vm6472_vm10 = vcmask 1041408  }
  0x8d   : > { %v4303_v61 = vld [vmem:[%s4099_s11 + $0x30] sm:$0xff]  ;;  %v4306_v62 = vld [vmem:[%s4099_s11 + $0x38] sm:$0xff]  ;;  %s3849_s15 = smov 2   ;;  %s3850_s24 = smov 126   ;;  %vm6470_vm13 = vcmask 1045504   ;;  %vm6473_vm1 = vcmask 15360  }
  0x8e   : > { %v4313_v63 = vld [vmem:[%s4210_s1 + $0x18] sm:$0xff]  ;;  %v3425_v0 = vld [vmem:[%s6366_s3 + $0x12] ss:$0 sm:$0xff]  ;;  %v3426_v3 = vld [vmem:[%s6366_s3 + $0x13] ss:$0 sm:$0xff]  ;;  %vm6429_vm3 = vcmask 113664  }
  0x8f   : > { %521 = vperm.xlu0 %3636, %v3394_v25   ;;  %s3851_s7 = smov 4   ;;  %s3852_s22 = smov 124  }
  0x90   : > { %532 = vrot.lane.b32.xlu1 %v4158_v23, %s3848_s20  ;;  %s3855_s10 = smov 120   ;;  %p6888_p6 = scmp.ne.s32.totalorder %s6486_s6, 0 }
  0x93   : > { %534 = vrot.lane.b32.xlu0 %v4141_v15, %s3848_s20 }
  0x94   : > { %536 = vrot.lane.b32.xlu1 %v4160_v24, %s3848_s20 }
  0x97   : > { %538 = vrot.lane.b32.xlu0 %v4146_v18, %s3848_s20 }
  0x98   : > { %563 = vperm.xlu1 %3637, %v3397_v26  }
  0x9b   : > { %567 = vperm.xlu0 %3636, %v3398_v27  }
  0x9c   : > { %578 = vrot.lane.b32.xlu1 %v4122_v4, %s3847_s30 }
  0x9f   : > { %580 = vrot.lane.b32.xlu0 %v4125_v5, %s3847_s30 }
  0xa0   : > { %582 = vrot.lane.b32.xlu1 %v4130_v8, %s3847_s30 }
  0xa3   : > { %584 = vrot.lane.b32.xlu0 %v4133_v9, %s3847_s30 }
  0xa4   : > { %608 = vperm.xlu1 %3637, %v3401_v28  }
  0xa7   : > { %612 = vperm.xlu0 %3636, %v3402_v29  }
  0xa8   : > { %637 = vperm.xlu1 %3637, %v3405_v30  }
  0xab   : > { %641 = vperm.xlu0 %3636, %v3406_v31  }
  0xac   : > { %652 = vrot.lane.b32.xlu1 %v4122_v4, %s3848_s20  ;;  %v3429_v4 = vld [vmem:[%s6366_s3 + $0x14] ss:$0 sm:$0xff] }
  0xaf   : > { %654 = vrot.lane.b32.xlu0 %v4125_v5, %s3848_s20  ;;  %v3430_v5 = vld [vmem:[%s6366_s3 + $0x15] ss:$0 sm:$0xff] }
  0xb0   : > { %656 = vrot.lane.b32.xlu1 %v4130_v8, %s3848_s20 }
  0xb3   : > { %658 = vrot.lane.b32.xlu0 %v4133_v9, %s3848_s20 }
  0xb4   : > { %682 = vperm.xlu1 %3637, %v3409_v35  }
  0xb7   : > { %686 = vperm.xlu0 %3636, %v3410_v40  }
  0xb8   : > { %734 = vrot.lane.b32.xlu1 %v4231_v42, %s3847_s30 }
  0xbb   : > { %736 = vrot.lane.b32.xlu0 %v4237_v46, %s3847_s30 }
  0xbc   : > { %738 = vrot.lane.b32.xlu1 %v4240_v47, %s3847_s30 }
  0xbf   : > { %740 = vrot.lane.b32.xlu0 %v4247_v49, %s3847_s30 }
  0xc0   : > { %764 = vperm.xlu1 %3637, %v3413_v50  }
  0xc3   : > { %768 = vperm.xlu0 %3636, %v3414_v51  }
  0xc4   : > { %793 = vperm.xlu1 %3637, %v3417_v52  }
  0xc7   : > { %797 = vperm.xlu0 %3636, %v3418_v53  }
  0xc8   : > { %808 = vrot.lane.b32.xlu1 %v4231_v42, %s3848_s20 }
  0xcb   : > { %810 = vrot.lane.b32.xlu0 %v4237_v46, %s3848_s20 }
  0xcc   : > { %812 = vrot.lane.b32.xlu1 %v4240_v47, %s3848_s20 }
  0xcf   : > { %814 = vrot.lane.b32.xlu0 %v4247_v49, %s3848_s20  ;;  %v4430_v49 = vand.u32 127, %v411_v1  ;;  %v1002_v1 = vand.u32 1, %v4206_v32 }
  0xd0   : > { %838 = vperm.xlu1 %3637, %v3421_v54  }
  0xd1   : > { %6551 = vst [vmem:[#allocation69_spill] sm:$0xff] %v4430_v49  ;;  %vm4452_vm7 = vcmp.eq.s32.totalorder %v1002_v1, 0  ;;  %v6561_v1 = vmov 0 }
  0xd3   : > { %842 = vperm.xlu0 %3636, %v3422_v55  }
  0xd4   : > { %861 = vrot.lane.b32.xlu1 %v4278_v56, %s3848_s20 }
  0xd7   : > { %863 = vrot.lane.b32.xlu0 %v4283_v57, %s3848_s20 }
  0xd8   : > { %865 = vrot.lane.b32.xlu1 %v4286_v58, %s3848_s20 }
  0xdb   : > { %867 = vrot.lane.b32.xlu0 %v4293_v59, %s3848_s20 }
  0xdc   : > { %869 = vrot.lane.b32.xlu1 %v4296_v60, %s3848_s20 }
  0xdf   : > { %871 = vrot.lane.b32.xlu0 %v4303_v61, %s3848_s20 }
  0xe0   : > { %873 = vrot.lane.b32.xlu1 %v4306_v62, %s3848_s20 }
  0xe3   : > { %875 = vrot.lane.b32.xlu0 %v4313_v63, %s3848_s20 }
  0xe4   : > { %893 = vrot.lane.b32.xlu1 %v4278_v56, %s3847_s30 }
  0xe7   : > { %895 = vrot.lane.b32.xlu0 %v4283_v57, %s3847_s30 }
  0xe8   : > { %897 = vrot.lane.b32.xlu1 %v4286_v58, %s3847_s30 }
  0xeb   : > { %899 = vrot.lane.b32.xlu0 %v4293_v59, %s3847_s30 }
  0xec   : > { %901 = vrot.lane.b32.xlu1 %v4296_v60, %s3847_s30 }
  0xef   : > { %903 = vrot.lane.b32.xlu0 %v4303_v61, %s3847_s30 }
  0xf0   : > { %905 = vrot.lane.b32.xlu1 %v4306_v62, %s3847_s30 }
  0xf3   : > { %907 = vrot.lane.b32.xlu0 %v4313_v63, %s3847_s30 }
  0xf4   : > { %1105 = vperm.xlu1 %3637, %v3425_v0  }
  0xf5   : > { %v4347_v7 = vpop.permute.xlu0 %464 }
  0xf6   : > { %6510 = vst [vmem:[#allocation28_spill] sm:$0xff] %v4347_v7 }
  0xf7   : > { %1109 = vperm.xlu0 %3636, %v3426_v3  }
  0xf8   : > { %1130 = vperm.xlu1 %3637, %v3429_v4  }
  0xfb   : > { %1134 = vperm.xlu0 %3636, %v3430_v5  }
  0xff   : > { %v4345_v6 = vpop.permute.xlu1 %496 }
 0x100   : > { %6509 = vst [vmem:[#allocation27_spill] sm:$0xff] %v4345_v6 }
 0x103   : > { %v4349_v8 = vpop.permute.xlu1 %468 }
 0x104   : > { %6511 = vst [vmem:[#allocation29_spill] sm:$0xff] %v4349_v8 }
 0x106   : > { %v4351_v9 = vpop.permute.xlu0 %492 }
 0x107   : > { %6512 = vst [vmem:[#allocation30_spill] sm:$0xff] %v4351_v9  ;;  %v4353_v10 = vpop.permute.xlu1 %517 }
 0x108   : > { %6513 = vst [vmem:[#allocation31_spill] sm:$0xff] %v4353_v10 }
 0x10a   : > { %v4355_v11 = vpop.permute.xlu0 %462 }
 0x10b   : > { %6514 = vst [vmem:[#allocation32_spill] sm:$0xff] %v4355_v11  ;;  %v4357_v12 = vpop.permute.xlu1 %466 }
 0x10c   : > { %6515 = vst [vmem:[#allocation33_spill] sm:$0xff] %v4357_v12 }
 0x10e   : > { %v4359_v13 = vpop.permute.xlu0 %521 }
 0x10f   : > { %6516 = vst [vmem:[#allocation34_spill] sm:$0xff] %v4359_v13  ;;  %v4361_v14 = vpop.permute.xlu1 %532 }
 0x110   : > { %6517 = vst [vmem:[#allocation35_spill] sm:$0xff] %v4361_v14 }
 0x112   : > { %v4363_v16 = vpop.permute.xlu0 %534 }
 0x113   : > { %6518 = vst [vmem:[#allocation36_spill] sm:$0xff] %v4363_v16  ;;  %v4365_v17 = vpop.permute.xlu1 %536 }
 0x114   : > { %6519 = vst [vmem:[#allocation37_spill] sm:$0xff] %v4365_v17 }
 0x116   : > { %v4367_v19 = vpop.permute.xlu0 %538 }
 0x117   : > { %6520 = vst [vmem:[#allocation38_spill] sm:$0xff] %v4367_v19  ;;  %v4369_v20 = vpop.permute.xlu1 %563 }
 0x118   : > { %6521 = vst [vmem:[#allocation39_spill] sm:$0xff] %v4369_v20 }
 0x11a   : > { %v4371_v21 = vpop.permute.xlu0 %567 }
 0x11b   : > { %6522 = vst [vmem:[#allocation40_spill] sm:$0xff] %v4371_v21  ;;  %v4373_v22 = vpop.permute.xlu1 %578 }
 0x11c   : > { %6523 = vst [vmem:[#allocation41_spill] sm:$0xff] %v4373_v22 }
 0x11e   : > { %v4375_v25 = vpop.permute.xlu0 %580 }
 0x11f   : > { %6524 = vst [vmem:[#allocation42_spill] sm:$0xff] %v4375_v25  ;;  %v4377_v26 = vpop.permute.xlu1 %582 }
 0x120   : > { %6525 = vst [vmem:[#allocation43_spill] sm:$0xff] %v4377_v26 }
 0x122   : > { %v4379_v27 = vpop.permute.xlu0 %584 }
 0x123   : > { %6526 = vst [vmem:[#allocation44_spill] sm:$0xff] %v4379_v27  ;;  %v4381_v28 = vpop.permute.xlu1 %608 }
 0x124   : > { %6527 = vst [vmem:[#allocation45_spill] sm:$0xff] %v4381_v28 }
 0x126   : > { %v4383_v29 = vpop.permute.xlu0 %612 }
 0x127   : > { %6528 = vst [vmem:[#allocation46_spill] sm:$0xff] %v4383_v29  ;;  %v4385_v30 = vpop.permute.xlu1 %637 }
 0x128   : > { %6529 = vst [vmem:[#allocation47_spill] sm:$0xff] %v4385_v30 }
 0x12a   : > { %v4387_v31 = vpop.permute.xlu0 %641 }
 0x12b   : > { %6530 = vst [vmem:[#allocation48_spill] sm:$0xff] %v4387_v31  ;;  %v4389_v33 = vpop.permute.xlu1 %652 }
 0x12c   : > { %6531 = vst [vmem:[#allocation49_spill] sm:$0xff] %v4389_v33 }
 0x12e   : > { %v4391_v34 = vpop.permute.xlu0 %654 }
 0x12f   : > { %6532 = vst [vmem:[#allocation50_spill] sm:$0xff] %v4391_v34  ;;  %v4393_v35 = vpop.permute.xlu1 %656 }
 0x130   : > { %6533 = vst [vmem:[#allocation51_spill] sm:$0xff] %v4393_v35 }
 0x132   : > { %v4395_v36 = vpop.permute.xlu0 %658 }
 0x133   : > { %6534 = vst [vmem:[#allocation52_spill] sm:$0xff] %v4395_v36  ;;  %v4397_v37 = vpop.permute.xlu1 %682 }
 0x134   : > { %6535 = vst [vmem:[#allocation53_spill] sm:$0xff] %v4397_v37 }
 0x136   : > { %v4399_v38 = vpop.permute.xlu0 %686 }
 0x137   : > { %6536 = vst [vmem:[#allocation54_spill] sm:$0xff] %v4399_v38  ;;  %v4401_v39 = vpop.permute.xlu1 %734  ;;  %v6555_v38 = vmov 0 }
 0x138   : > { %6537 = vst [vmem:[#allocation55_spill] sm:$0xff] %v4401_v39  ;;  %v6556_v38 = vsel %vm4452_vm7, 4294967295, %v6555_v38 }
 0x139   : > { %6557 = vst [vmem:[#allocation71_spill] sm:$0xff] %v6556_v38 }
 0x13a   : > { %v4403_v40 = vpop.permute.xlu0 %736 }
 0x13b   : > { %6538 = vst [vmem:[#allocation56_spill] sm:$0xff] %v4403_v40  ;;  %v4405_v41 = vpop.permute.xlu1 %738 }
 0x13c   : > { %6539 = vst [vmem:[#allocation57_spill] sm:$0xff] %v4405_v41 }
 0x13e   : > { %v4407_v43 = vpop.permute.xlu0 %740 }
 0x13f   : > { %6540 = vst [vmem:[#allocation58_spill] sm:$0xff] %v4407_v43  ;;  %v4409_v44 = vpop.permute.xlu1 %764 }
 0x140   : > { %6541 = vst [vmem:[#allocation59_spill] sm:$0xff] %v4409_v44 }
 0x142   : > { %v4411_v45 = vpop.permute.xlu0 %768 }
 0x143   : > { %6542 = vst [vmem:[#allocation60_spill] sm:$0xff] %v4411_v45  ;;  %v4413_v48 = vpop.permute.xlu1 %793 }
 0x144   : > { %6543 = vst [vmem:[#allocation61_spill] sm:$0xff] %v4413_v48 }
 0x146   : > { %v4415_v50 = vpop.permute.xlu0 %797 }
 0x147   : > { %6544 = vst [vmem:[#allocation62_spill] sm:$0xff] %v4415_v50  ;;  %v4417_v51 = vpop.permute.xlu1 %808 }
 0x148   : > { %6545 = vst [vmem:[#allocation63_spill] sm:$0xff] %v4417_v51  ;;  %v925_v51 = vand.u32 1, %v4430_v49 }
 0x14a   : > { %v4419_v52 = vpop.permute.xlu0 %810  ;;  %vm4436_vm4 = vcmp.eq.s32.totalorder %v925_v51, 0  ;;  %v1001_v51 = vand.u32 1, %v4116_v2 }
 0x14b   : > { %6546 = vst [vmem:[#allocation64_spill] sm:$0xff] %v4419_v52  ;;  %v4421_v53 = vpop.permute.xlu1 %812 }
 0x14c   : > { %6547 = vst [vmem:[#allocation65_spill] sm:$0xff] %v4421_v53  ;;  %v4434_v53 = vadd.s32 16, %v4116_v2  ;;  %vm4470_vm9 = vcmp.eq.s32.totalorder %v1001_v51, 0 }
 0x14d   : > { %v6562_v1 = vsel %vm4470_vm9, 4294967295, %v6561_v1 }
 0x14e   : > { %v4423_v54 = vpop.permute.xlu0 %814  ;;  %6552 = vst [vmem:[#allocation70_spill] sm:$0xff] %v4434_v53  ;;  %v1003_v44 = vand.u32 1, %v4434_v53  ;;  %6563 = vst [vmem:[#allocation73_spill] sm:$0xff] %v6562_v1 }
 0x14f   : > { %6548 = vst [vmem:[#allocation66_spill] sm:$0xff] %v4423_v54  ;;  %v4425_v55 = vpop.permute.xlu1 %838 }
 0x150   : > { %6549 = vst [vmem:[#allocation67_spill] sm:$0xff] %v4425_v55  ;;  %vm4466_vm8 = vcmp.eq.s32.totalorder %v1003_v44, 0 }
 0x152   : > { %v4427_v0 = vpop.permute.xlu0 %842 }
 0x153   : > { %6550 = vst [vmem:[#allocation68_spill] sm:$0xff] %v4427_v0  ;;  %v862_v3 = vpop.permute.xlu1 %861 }
 0x154   : > { %v885_v48 = vsel %vm6474_vm6, %v862_v3, 0.0 }
 0x156   : > { %v864_v4 = vpop.permute.xlu0 %863 }
 0x157   : > { %v866_v5 = vpop.permute.xlu1 %865  ;;  %v886_v40 = vsel %vm6474_vm6, %v864_v4, 0.0  ;;  %v6558_v4 = vmov 0 }
 0x158   : > { %v6559_v4 = vsel %vm4466_vm8, 4294967295, %v6558_v4 }
 0x159   : > { %6560 = vst [vmem:[#allocation72_spill] sm:$0xff] %v6559_v4 }
 0x15a   : > { %v868_v47 = vpop.permute.xlu0 %867 }
 0x15b   : > { %v870_v50 = vpop.permute.xlu1 %869 }
 0x15c   : > { %v889_v35 = vsel %vm6474_vm6, %v870_v50, 0.0 }
 0x15e   : > { %v872_v46 = vpop.permute.xlu0 %871 }
 0x15f   : > { %v874_v52 = vpop.permute.xlu1 %873  ;;  %v890_v31 = vsel %vm6474_vm6, %v872_v46, 0.0 }
 0x162   : > { %v4440_v0 = vpop.permute.xlu0 %875 }
 0x163   : > { %v894_v55 = vpop.permute.xlu1 %893 }
 0x164   : > { %v917_v42 = vsel %vm6430_vm5, 0.0, %v894_v55  ;;  %v4457_v55 = vadd.s32 4294967294, %v4116_v2 }
 0x165   : > { %v929_v45 = vsel %vm4436_vm4, %v885_v48, %v917_v42  ;;  %v887_v42 = vsel %vm6474_vm6, %v866_v5, 0.0  ;;  %v888_v5 = vsel %vm6474_vm6, %v868_v47, 0.0 }
 0x166   : > { %v937_v43 = vmax.f32 %v4278_v56, %v929_v45  ;;  %v896_v41 = vpop.permute.xlu0 %895  ;;  %vm1035_vm11 = vcmp.ge.s32.totalorder %v4457_v55, 0  ;;  %v3433_v55 = vld [vmem:[%s6366_s3 + $0x16] ss:$0 sm:$0xff] }
 0x167   : > { %v918_v39 = vsel %vm6430_vm5, 0.0, %v896_v41  ;;  %v898_v3 = vpop.permute.xlu1 %897 }
 0x168   : > { %v977_v48 = vrot.slane %v937_v43, 7  ;;  %v930_v36 = vsel %vm4436_vm4, %v886_v40, %v918_v39  ;;  %v919_v56 = vsel %vm6430_vm5, 0.0, %v898_v3  ;;  %v953_v39 = vrot.slane %v937_v43, 1 }
 0x169   : > { %v938_v45 = vmax.f32 %v4283_v57, %v930_v36  ;;  %v931_v41 = vsel %vm4436_vm4, %v887_v42, %v919_v56 }
 0x16a   : > { %v4477_v40 = vmax.f32 %v4286_v58, %v931_v41  ;;  %v900_v57 = vpop.permute.xlu0 %899  ;;  %v999_v56 = vsel %vm6434_vm0, 0.0, %v977_v48 }
 0x16b   : > { %v954_v36 = vrot.slane %v938_v45, 1  ;;  %v978_v3 = vrot.slane %v938_v45, 7  ;;  %v920_v44 = vsel %vm6430_vm5, 0.0, %v900_v57  ;;  %v902_v42 = vpop.permute.xlu1 %901 }
 0x16c   : > { %v956_v51 = vrot.slane %v4477_v40, 1  ;;  %v932_v47 = vsel %vm4436_vm4, %v888_v5, %v920_v44  ;;  %v921_v50 = vsel %vm6430_vm5, 0.0, %v902_v42  ;;  %v6564_v46 = vrot.slane %v4477_v40, 7 }
 0x16d   : > { %v979_v58 = vsel %vm6434_vm0, %v977_v48, %v978_v3  ;;  %v4489_v41 = vmax.f32 %v4293_v59, %v932_v47  ;;  %v933_v57 = vsel %vm4436_vm4, %v889_v35, %v921_v50  ;;  %v955_v34 = vsel %vm6435_vm2, %v953_v39, %v954_v36 }
 0x16e   : > { %v957_v37 = vsel %vm6435_vm2, %v954_v36, %v956_v51  ;;  %v941_v5 = vmax.f32 %v4296_v60, %v933_v57  ;;  %v904_v44 = vpop.permute.xlu0 %903  ;;  %v1017_v42 = vsel %vm4470_vm9, %v955_v34, %v999_v56  ;;  %v891_v48 = vsel %vm6474_vm6, %v874_v52, 0.0 }
 0x16f   : > { %v1018_v59 = vsel %vm4452_vm7, %v957_v37, %v979_v58  ;;  %v958_v47 = vrot.slane %v4489_v41, 1  ;;  %v922_v35 = vsel %vm6430_vm5, 0.0, %v904_v44  ;;  %v906_v39 = vpop.permute.xlu1 %905  ;;  %v981_v36 = vsel %vm6434_vm0, %v978_v3, %v6564_v46 }
 0x170   : > { %v4507_v50 = vmax.f32 %v938_v45, %v1018_v59  ;;  %v984_v60 = vrot.slane %v941_v5, 7  ;;  %v934_v34 = vsel %vm4436_vm4, %v890_v31, %v922_v35  ;;  %v923_v56 = vsel %vm6430_vm5, 0.0, %v906_v39 }
 0x171   : > { %v959_v52 = vsel %vm6435_vm2, %v956_v51, %v958_v47  ;;  %v942_v37 = vmax.f32 %v4303_v61, %v934_v34  ;;  %v1025_v58 = vmax.f32 %v937_v43, %v1017_v42  ;;  %v892_v57 = vsel %vm6474_vm6, %v4440_v0, 0.0 }
 0x172   : > { %6565 = vst [vmem:[#allocation74_spill] sm:$0xff] %v4507_v50  ;;  %v1019_v45 = vsel %vm4466_vm8, %v959_v52, %v981_v36  ;;  %v935_v3 = vsel %vm4436_vm4, %v891_v48, %v923_v56  ;;  %v908_v44 = vpop.permute.xlu0 %907  ;;  %v1053_v31 = vrot.slane %v4507_v50, 6  ;;  %v960_v43 = vrot.slane %v941_v5, 1 }
 0x173   : > { %v4524_v59 = vmax.f32 %v4477_v40, %v1019_v45  ;;  %v961_v51 = vrot.slane %v942_v37, 1  ;;  %v985_v61 = vrot.slane %v942_v37, 7  ;;  %v4527_v35 = vmax.f32 %v4306_v62, %v935_v3 }
 0x174   : > { %v924_v0 = vsel %vm6430_vm5, 0.0, %v908_v44  ;;  %v1052_v42 = vrot.slane %v1025_v58, 6  ;;  %v1000_v39 = vsel %vm6434_vm0, 0.0, %v984_v60 }
 0x175   : > { %6566 = vst [vmem:[#allocation75_spill] sm:$0xff] %v4524_v59  ;;  %v986_v46 = vsel %vm6434_vm0, %v984_v60, %v985_v61  ;;  %v963_v48 = vrot.slane %v4527_v35, 1  ;;  %v987_v36 = vrot.slane %v4527_v35, 7  ;;  %v936_v34 = vsel %vm4436_vm4, %v892_v57, %v924_v0 }
 0x176   : > { %v4537_v52 = vmax.f32 %v4313_v63, %v936_v34  ;;  %v1054_v62 = vsel %vm6472_vm10, %v1052_v42, %v1053_v31  ;;  %v1055_v56 = vrot.slane %v4524_v59, 6  ;;  %v962_v58 = vsel %vm6435_vm2, %v960_v43, %v961_v51 }
 0x177   : > { %v964_v45 = vsel %vm6435_vm2, %v961_v51, %v963_v48  ;;  %v4545_v60 = vsel %vm1035_vm11, %v1054_v62, 0.0  ;;  %v1021_v3 = vsel %vm4470_vm9, %v962_v58, %v1000_v39  ;;  %v988_v0 = vsel %vm6434_vm0, %v985_v61, %v987_v36  ;;  %v3438_v58 = vld [vmem:[%s6366_s3 + $0x19] ss:$0 sm:$0xff] }
 0x178   : > { %6567 = vst [vmem:[#allocation76_spill] sm:$0xff] %v4545_v60  ;;  %v1022_v57 = vsel %vm4452_vm7, %v964_v45, %v986_v46  ;;  %v965_v63 = vrot.slane %v4537_v52, 1  ;;  %1074 = vrot.lane.b32.xlu1 %v4545_v60, %s3849_s15  ;;  %v4557_v51 = vsel %vm6472_vm10, %v1053_v31, %v1055_v56  ;;  %v1029_v43 = vmax.f32 %v941_v5, %v1021_v3  ;;  %v3437_v56 = vld [vmem:[%s6366_s3 + $0x18] ss:$0 sm:$0xff] }
 0x179   : > { %v4554_v44 = vmax.f32 %v942_v37, %v1022_v57  ;;  %6569 = vst [vmem:[#allocation78_spill] sm:$0xff] %v4557_v51  ;;  %1076 = vrot.lane.b32.xlu0 %v4557_v51, %s3849_s15  ;;  %v4603_v62 = vadd.s32 24, %v4116_v2  ;;  %v982_v45 = vrot.slane %v4489_v41, 7  ;;  %v3441_v57 = vld [vmem:[%s6366_s3 + $0x1a] ss:$0 sm:$0xff] }
 0x17a   : > { %v966_v42 = vsel %vm6435_vm2, %v963_v48, %v965_v63  ;;  %v1057_v46 = vrot.slane %v1029_v43, 6  ;;  %v3442_v43 = vld [vmem:[%s6366_s3 + $0x1b] ss:$0 sm:$0xff] }
 0x17b   : > { %6568 = vst [vmem:[#allocation77_spill] sm:$0xff] %v4554_v44  ;;  %v1023_v39 = vsel %vm4466_vm8, %v966_v42, %v988_v0  ;;  %v1058_v34 = vrot.slane %v4554_v44, 6  ;;  %v1004_v3 = vand.u32 1, %v4603_v62  ;;  %v989_v0 = vrot.slane %v4537_v52, 7 }
 0x17c   : > { %v4567_v37 = vmax.f32 %v4527_v35, %v1023_v39  ;;  %v3434_v35 = vld [vmem:[%s6366_s3 + $0x17] ss:$0 sm:$0xff]  ;;  %v975_v42 = vsel %vm6435_vm2, %v958_v47, 0.0  ;;  %v6573_v39 = vrot.slane %v4477_v40, 7 }
 0x17d   : > { %v1059_v31 = vsel %vm6472_vm10, %v1057_v46, %v1058_v34  ;;  %vm4628_vm12 = vcmp.eq.s32.totalorder %v1004_v3, 0 }
 0x17e   : > { %6570 = vst [vmem:[#allocation79_spill] sm:$0xff] %v4567_v37  ;;  %v4572_v5 = vsel %vm1035_vm11, %v1059_v31, 0.0  ;;  %v1060_v61 = vrot.slane %v4567_v37, 6  ;;  %v983_v46 = vsel %vm6434_vm0, %v6573_v39, %v982_v45  ;;  %v1325_v45 = vrot.slane %v4507_v50, 2 }
 0x17f   : > { %6571 = vst [vmem:[#allocation80_spill] sm:$0xff] %v4572_v5  ;;  %1078 = vrot.lane.b32.xlu1 %v4572_v5, %s3849_s15  ;;  %v1020_v31 = vsel %vm4628_vm12, %v975_v42, %v983_v46  ;;  %v1330_v42 = vrot.slane %v4554_v44, 2 }
 0x180   : > { %v4578_v48 = vsel %vm6472_vm10, %v1058_v34, %v1060_v61  ;;  %v6574_v34 = vmov 0  ;;  %v976_v61 = vsel %vm6435_vm2, %v965_v63, 0.0  ;;  %v1028_v40 = vmax.f32 %v4489_v41, %v1020_v31 }
 0x181   : > { %6572 = vst [vmem:[#allocation81_spill] sm:$0xff] %v4578_v48  ;;  %1080 = vrot.lane.b32.xlu0 %v4578_v48, %s3849_s15  ;;  %v6575_v34 = vsel %vm4628_vm12, 4294967295, %v6574_v34  ;;  %v1311_v63 = vadd.s32 2, %v4206_v32 }
 0x182   : > { %6576 = vst [vmem:[#allocation82_spill] sm:$0xff] %v6575_v34 }
 0x183   : > { %1145 = vrot.lane.b32.xlu1 %v4545_v60, %s3850_s24  ;;  %vm1315_vm14 = vcmp.lt.s32.totalorder %v1311_v63, 16  ;;  %v4706_v63 = vld [vmem:[%s4109_s26 + $0x20] sm:$0xff] }
 0x185   : > { %1147 = vrot.lane.b32.xlu0 %v4557_v51, %s3850_s24 }
 0x187   : > { %1149 = vrot.lane.b32.xlu1 %v4572_v5, %s3850_s24 }
 0x189   : > { %1151 = vrot.lane.b32.xlu0 %v4578_v48, %s3850_s24 }
 0x18b   : > { %1176 = vperm.xlu1 %3637, %v3433_v55   ;;  %v990_v55 = vsel %vm6434_vm0, %v987_v36, %v989_v0  ;;  %v1326_v36 = vrot.slane %v4524_v59, 2 }
 0x18c   : > { %v1024_v47 = vsel %vm4628_vm12, %v976_v61, %v990_v55  ;;  %v3449_v61 = vld [vmem:[%s6366_s3 + $0x1e] ss:$0 sm:$0xff]  ;;  %v3450_v55 = vld [vmem:[%s6366_s3 + $0x1f] ss:$0 sm:$0xff] }
 0x18d   : > { %1180 = vperm.xlu0 %3636, %v3434_v35   ;;  %v3445_v35 = vld [vmem:[%s6366_s3 + $0x1c] ss:$0 sm:$0xff]  ;;  %v1032_v41 = vmax.f32 %v4537_v52, %v1024_v47  ;;  %v4660_v0 = vsel %vm6470_vm13, %v1325_v45, %v1326_v36  ;;  %v3454_v47 = vld [vmem:[%s6366_s3 + $0x21] ss:$0 sm:$0xff]  ;;  %v4724_v45 = vld [vmem:[%s4109_s26 + $0x28] sm:$0xff] }
 0x18e   : > { %6577 = vst [vmem:[#allocation83_spill] sm:$0xff] %v4660_v0 }
 0x18f   : > { %1191 = vrot.lane.b32.xlu1 %v4507_v50, %s3849_s15 }
 0x191   : > { %1193 = vrot.lane.b32.xlu0 %v4524_v59, %s3849_s15 }
 0x193   : > { %1195 = vrot.lane.b32.xlu1 %v4554_v44, %s3849_s15 }
 0x195   : > { %1197 = vrot.lane.b32.xlu0 %v4567_v37, %s3849_s15 }
 0x197   : > { %1221 = vperm.xlu1 %3637, %v3437_v56   ;;  %v1328_v56 = vrot.slane %v1028_v40, 2  ;;  %v3453_v40 = vld [vmem:[%s6366_s3 + $0x20] ss:$0 sm:$0xff] }
 0x199   : > { %1225 = vperm.xlu0 %3636, %v3438_v58   ;;  %v3446_v58 = vld [vmem:[%s6366_s3 + $0x1d] ss:$0 sm:$0xff]  ;;  %v1329_v3 = vsel %vm6470_vm13, %v1326_v36, %v1328_v56  ;;  %v3458_v36 = vld [vmem:[%s6366_s3 + $0x23] ss:$0 sm:$0xff] }
 0x19a   : > { %v4664_v52 = vsel %vm1315_vm14, %v1329_v3, 0.0  ;;  %v4709_v56 = vld [vmem:[%s4099_s11 + $0x40] sm:$0xff]  ;;  %v4729_v3 = vld [vmem:[%s4099_s11 + $0x50] sm:$0xff] }
 0x19b   : > { %1250 = vperm.xlu1 %3637, %v3441_v57   ;;  %v1331_v57 = vrot.slane %v4567_v37, 2  ;;  %6578 = vst [vmem:[#allocation84_spill] sm:$0xff] %v4664_v52 }
 0x19d   : > { %1254 = vperm.xlu0 %3636, %v3442_v43   ;;  %v1333_v43 = vrot.slane %v1032_v41, 2  ;;  %v4671_v46 = vsel %vm6470_vm13, %v1330_v42, %v1331_v57  ;;  %v4714_v41 = vld [vmem:[%s4099_s11 + $0x48] sm:$0xff]  ;;  %v4761_v42 = vpop.permute.xlu1 %1105 }
 0x19e   : > { %6579 = vst [vmem:[#allocation85_spill] sm:$0xff] %v4671_v46  ;;  %6581 = vst [vmem:[#allocation87_spill] sm:$0xff] %v4761_v42 }
 0x19f   : > { %1265 = vrot.lane.b32.xlu1 %v4507_v50, %s3850_s24  ;;  %v1334_v39 = vsel %vm6470_vm13, %v1331_v57, %v1333_v43  ;;  %v4734_v57 = vld [vmem:[%s4099_s11 + $0x58] sm:$0xff]  ;;  %v4739_v43 = vld [vmem:[%s4210_s1 + $0x28] sm:$0xff] }
 0x1a0   : > { %v4675_v31 = vsel %vm1315_vm14, %v1334_v39, 0.0  ;;  %v4763_v39 = vpop.permute.xlu0 %1109 }
 0x1a1   : > { %1267 = vrot.lane.b32.xlu0 %v4524_v59, %s3850_s24  ;;  %6580 = vst [vmem:[#allocation86_spill] sm:$0xff] %v4675_v31  ;;  %6582 = vst [vmem:[#allocation88_spill] sm:$0xff] %v4763_v39 }
 0x1a3   : > { %1269 = vrot.lane.b32.xlu1 %v4554_v44, %s3850_s24 }
 0x1a5   : > { %1271 = vrot.lane.b32.xlu0 %v4567_v37, %s3850_s24 }
 0x1a7   : > { %1295 = vperm.xlu1 %3637, %v3445_v35   ;;  %v3457_v35 = vld [vmem:[%s6366_s3 + $0x22] ss:$0 sm:$0xff] }
 0x1a9   : > { %1299 = vperm.xlu0 %3636, %v3446_v58   ;;  %v4719_v58 = vld [vmem:[%s4210_s1 + $0x20] sm:$0xff] }
 0x1ab   : > { %1347 = vrot.lane.b32.xlu1 %v4660_v0, %s3849_s15 }
 0x1ad   : > { %1349 = vrot.lane.b32.xlu0 %v4664_v52, %s3849_s15 }
 0x1af   : > { %1351 = vrot.lane.b32.xlu1 %v4671_v46, %s3849_s15 }
 0x1b1   : > { %1353 = vrot.lane.b32.xlu0 %v4675_v31, %s3849_s15 }
 0x1b3   : > { %1377 = vperm.xlu1 %3637, %v3449_v61   ;;  %v4765_v61 = vpop.permute.xlu1 %1130 }
 0x1b4   : > { %6583 = vst [vmem:[#allocation89_spill] sm:$0xff] %v4765_v61 }
 0x1b5   : > { %1381 = vperm.xlu0 %3636, %v3450_v55   ;;  %v4767_v55 = vpop.permute.xlu0 %1134 }
 0x1b6   : > { %6584 = vst [vmem:[#allocation90_spill] sm:$0xff] %v4767_v55 }
 0x1b7   : > { %1406 = vperm.xlu1 %3637, %v3453_v40  }
 0x1b9   : > { %1410 = vperm.xlu0 %3636, %v3454_v47  }
 0x1bb   : > { %1421 = vrot.lane.b32.xlu1 %v4660_v0, %s3850_s24 }
 0x1bd   : > { %1423 = vrot.lane.b32.xlu0 %v4664_v52, %s3850_s24 }
 0x1bf   : > { %1425 = vrot.lane.b32.xlu1 %v4671_v46, %s3850_s24 }
 0x1c1   : > { %1427 = vrot.lane.b32.xlu0 %v4675_v31, %s3850_s24 }
 0x1c3   : > { %1451 = vperm.xlu1 %3637, %v3457_v35  }
 0x1c5   : > { %1455 = vperm.xlu0 %3636, %v3458_v36  }
 0x1c7   : > { %1474 = vrot.lane.b32.xlu1 %v4706_v63, %s3848_s20 }
 0x1c9   : > { %1476 = vrot.lane.b32.xlu0 %v4709_v56, %s3848_s20 }
 0x1cb   : > { %1478 = vrot.lane.b32.xlu1 %v4714_v41, %s3848_s20 }
 0x1cd   : > { %1480 = vrot.lane.b32.xlu0 %v4719_v58, %s3848_s20 }
 0x1cf   : > { %1482 = vrot.lane.b32.xlu1 %v4724_v45, %s3848_s20 }
 0x1d1   : > { %1484 = vrot.lane.b32.xlu0 %v4729_v3, %s3848_s20 }
 0x1d3   : > { %1486 = vrot.lane.b32.xlu1 %v4734_v57, %s3848_s20 }
 0x1d5   : > { %1488 = vrot.lane.b32.xlu0 %v4739_v43, %s3848_s20 }
 0x1d7   : > { %1506 = vrot.lane.b32.xlu1 %v4706_v63, %s3847_s30 }
 0x1d9   : > { %1508 = vrot.lane.b32.xlu0 %v4709_v56, %s3847_s30 }
 0x1db   : > { %1510 = vrot.lane.b32.xlu1 %v4714_v41, %s3847_s30 }
 0x1dd   : > { %1512 = vrot.lane.b32.xlu0 %v4719_v58, %s3847_s30 }
 0x1df   : > { %1514 = vrot.lane.b32.xlu1 %v4724_v45, %s3847_s30 }
 0x1e1   : > { %1516 = vrot.lane.b32.xlu0 %v4729_v3, %s3847_s30 }
 0x1e3   : > { %1518 = vrot.lane.b32.xlu1 %v4734_v57, %s3847_s30 }
 0x1e5   : > { %1520 = vrot.lane.b32.xlu0 %v4739_v43, %s3847_s30 }
 0x1ea   : > { %v4769_v40 = vpop.permute.xlu1 %1074 }
 0x1eb   : > { %6585 = vst [vmem:[#allocation91_spill] sm:$0xff] %v4769_v40  ;;  %v4771_v47 = vpop.permute.xlu0 %1076  ;;  %v1776_v40 = vand.u32 2, %v4434_v53 }
 0x1ec   : > { %6586 = vst [vmem:[#allocation92_spill] sm:$0xff] %v4771_v47 }
 0x1ed   : > { %vm4979_vm11 = vcmp.eq.s32.totalorder %v1776_v40, 0 }
 0x1f1   : > { %v4773_v35 = vpop.permute.xlu1 %1078 }
 0x1f2   : > { %6587 = vst [vmem:[#allocation93_spill] sm:$0xff] %v4773_v35 }
 0x1f3   : > { %v4775_v36 = vpop.permute.xlu0 %1080 }
 0x1f4   : > { %6588 = vst [vmem:[#allocation94_spill] sm:$0xff] %v4775_v36 }
 0x1f5   : > { %v4777_v31 = vpop.permute.xlu1 %1145 }
 0x1f6   : > { %6589 = vst [vmem:[#allocation95_spill] sm:$0xff] %v4777_v31 }
 0x1f7   : > { %v4779_v46 = vpop.permute.xlu0 %1147 }
 0x1f8   : > { %6590 = vst [vmem:[#allocation96_spill] sm:$0xff] %v4779_v46 }
 0x1f9   : > { %v4781_v52 = vpop.permute.xlu1 %1149 }
 0x1fa   : > { %6591 = vst [vmem:[#allocation97_spill] sm:$0xff] %v4781_v52 }
 0x1fb   : > { %v4783_v0 = vpop.permute.xlu0 %1151 }
 0x1fc   : > { %6592 = vst [vmem:[#allocation98_spill] sm:$0xff] %v4783_v0 }
 0x20a   : > { %v4785_v37 = vpop.permute.xlu1 %1176 }
 0x20b   : > { %6593 = vst [vmem:[#allocation99_spill] sm:$0xff] %v4785_v37 }
 0x20c   : > { %v4787_v44 = vpop.permute.xlu0 %1180 }
 0x20d   : > { %6594 = vst [vmem:[#allocation100_spill] sm:$0xff] %v4787_v44 }
 0x20e   : > { %v4789_v59 = vpop.permute.xlu1 %1191 }
 0x20f   : > { %6595 = vst [vmem:[#allocation101_spill] sm:$0xff] %v4789_v59 }
 0x210   : > { %v4791_v50 = vpop.permute.xlu0 %1193 }
 0x211   : > { %6596 = vst [vmem:[#allocation102_spill] sm:$0xff] %v4791_v50 }
 0x212   : > { %v4793_v39 = vpop.permute.xlu1 %1195 }
 0x213   : > { %6597 = vst [vmem:[#allocation103_spill] sm:$0xff] %v4793_v39 }
 0x214   : > { %v4795_v48 = vpop.permute.xlu0 %1197 }
 0x215   : > { %6598 = vst [vmem:[#allocation104_spill] sm:$0xff] %v4795_v48 }
 0x216   : > { %v4797_v55 = vpop.permute.xlu1 %1221 }
 0x217   : > { %6599 = vst [vmem:[#allocation105_spill] sm:$0xff] %v4797_v55 }
 0x218   : > { %v4799_v31 = vpop.permute.xlu0 %1225 }
 0x219   : > { %6600 = vst [vmem:[#allocation106_spill] sm:$0xff] %v4799_v31 }
 0x21a   : > { %v4801_v46 = vpop.permute.xlu1 %1250 }
 0x21b   : > { %6601 = vst [vmem:[#allocation107_spill] sm:$0xff] %v4801_v46 }
 0x21c   : > { %v4803_v52 = vpop.permute.xlu0 %1254 }
 0x21d   : > { %6602 = vst [vmem:[#allocation108_spill] sm:$0xff] %v4803_v52 }
 0x21e   : > { %v4805_v0 = vpop.permute.xlu1 %1265 }
 0x21f   : > { %6603 = vst [vmem:[#allocation109_spill] sm:$0xff] %v4805_v0 }
 0x220   : > { %v4807_v37 = vpop.permute.xlu0 %1267 }
 0x221   : > { %6604 = vst [vmem:[#allocation110_spill] sm:$0xff] %v4807_v37 }
 0x222   : > { %v4809_v44 = vpop.permute.xlu1 %1269 }
 0x223   : > { %6605 = vst [vmem:[#allocation111_spill] sm:$0xff] %v4809_v44 }
 0x224   : > { %v4811_v59 = vpop.permute.xlu0 %1271 }
 0x225   : > { %6606 = vst [vmem:[#allocation112_spill] sm:$0xff] %v4811_v59 }
 0x226   : > { %v4813_v50 = vpop.permute.xlu1 %1295 }
 0x227   : > { %6607 = vst [vmem:[#allocation113_spill] sm:$0xff] %v4813_v50 }
 0x228   : > { %v4815_v39 = vpop.permute.xlu0 %1299 }
 0x229   : > { %6608 = vst [vmem:[#allocation114_spill] sm:$0xff] %v4815_v39 }
 0x22a   : > { %v4817_v48 = vpop.permute.xlu1 %1347 }
 0x22b   : > { %6609 = vst [vmem:[#allocation115_spill] sm:$0xff] %v4817_v48 }
 0x22c   : > { %v4819_v55 = vpop.permute.xlu0 %1349 }
 0x22d   : > { %6610 = vst [vmem:[#allocation116_spill] sm:$0xff] %v4819_v55 }
 0x22e   : > { %v4821_v31 = vpop.permute.xlu1 %1351 }
 0x22f   : > { %6611 = vst [vmem:[#allocation117_spill] sm:$0xff] %v4821_v31 }
 0x230   : > { %v4823_v46 = vpop.permute.xlu0 %1353 }
 0x231   : > { %6612 = vst [vmem:[#allocation118_spill] sm:$0xff] %v4823_v46 }
 0x232   : > { %v4825_v52 = vpop.permute.xlu1 %1377 }
 0x233   : > { %6613 = vst [vmem:[#allocation119_spill] sm:$0xff] %v4825_v52 }
 0x234   : > { %v4827_v0 = vpop.permute.xlu0 %1381 }
 0x235   : > { %6614 = vst [vmem:[#allocation120_spill] sm:$0xff] %v4827_v0 }
 0x236   : > { %v4829_v37 = vpop.permute.xlu1 %1406 }
 0x237   : > { %6615 = vst [vmem:[#allocation121_spill] sm:$0xff] %v4829_v37 }
 0x238   : > { %v4831_v44 = vpop.permute.xlu0 %1410 }
 0x239   : > { %6616 = vst [vmem:[#allocation122_spill] sm:$0xff] %v4831_v44 }
 0x23a   : > { %v4833_v59 = vpop.permute.xlu1 %1421 }
 0x23b   : > { %6617 = vst [vmem:[#allocation123_spill] sm:$0xff] %v4833_v59 }
 0x23c   : > { %v4835_v50 = vpop.permute.xlu0 %1423 }
 0x23d   : > { %6618 = vst [vmem:[#allocation124_spill] sm:$0xff] %v4835_v50 }
 0x23e   : > { %v4837_v39 = vpop.permute.xlu1 %1425 }
 0x23f   : > { %6619 = vst [vmem:[#allocation125_spill] sm:$0xff] %v4837_v39 }
 0x240   : > { %v4839_v48 = vpop.permute.xlu0 %1427 }
 0x241   : > { %6620 = vst [vmem:[#allocation126_spill] sm:$0xff] %v4839_v48 }
 0x242   : > { %v4841_v55 = vpop.permute.xlu1 %1451 }
 0x243   : > { %6621 = vst [vmem:[#allocation127_spill] sm:$0xff] %v4841_v55 }
 0x244   : > { %v4843_v31 = vpop.permute.xlu0 %1455 }
 0x245   : > { %6622 = vst [vmem:[#allocation128_spill] sm:$0xff] %v4843_v31 }
 0x246   : > { %v1475_v46 = vpop.permute.xlu1 %1474 }
 0x247   : > { %v1498_v59 = vsel %vm6474_vm6, %v1475_v46, 0.0 }
 0x248   : > { %v1477_v52 = vpop.permute.xlu0 %1476 }
 0x249   : > { %v1499_v55 = vsel %vm6474_vm6, %v1477_v52, 0.0 }
 0x24a   : > { %v1479_v5 = vpop.permute.xlu1 %1478 }
 0x24b   : > { %v1500_v42 = vsel %vm6474_vm6, %v1479_v5, 0.0 }
 0x24c   : > { %v1481_v0 = vpop.permute.xlu0 %1480 }
 0x24e   : > { %v1483_v51 = vpop.permute.xlu1 %1482 }
 0x250   : > { %v1485_v37 = vpop.permute.xlu0 %1484 }
 0x252   : > { %v1487_v36 = vpop.permute.xlu1 %1486 }
 0x254   : > { %v1489_v44 = vpop.permute.xlu0 %1488 }
 0x256   : > { %v1507_v35 = vpop.permute.xlu1 %1506 }
 0x257   : > { %v1530_v50 = vsel %vm6430_vm5, 0.0, %v1507_v35 }
 0x258   : > { %v1538_v48 = vsel %vm4436_vm4, %v1498_v59, %v1530_v50  ;;  %v1509_v39 = vpop.permute.xlu0 %1508 }
 0x259   : > { %v4851_v31 = vmax.f32 %v4706_v63, %v1538_v48  ;;  %v1531_v61 = vsel %vm6430_vm5, 0.0, %v1509_v39  ;;  %v1501_v48 = vsel %vm6474_vm6, %v1481_v0, 0.0 }
 0x25a   : > { %v1539_v60 = vsel %vm4436_vm4, %v1499_v55, %v1531_v61  ;;  %v1511_v47 = vpop.permute.xlu1 %1510  ;;  %v1503_v61 = vsel %vm6474_vm6, %v1485_v37, 0.0 }
 0x25b   : > { %v4858_v46 = vmax.f32 %v4709_v56, %v1539_v60  ;;  %v1532_v35 = vsel %vm6430_vm5, 0.0, %v1511_v47  ;;  %1562 = vrot.lane.b32.xlu1 %v4851_v31, %s3850_s24  ;;  %v1502_v56 = vsel %vm6474_vm6, %v1483_v51, 0.0 }
 0x25c   : > { %v1540_v50 = vsel %vm4436_vm4, %v1500_v42, %v1532_v35  ;;  %v1513_v59 = vpop.permute.xlu0 %1512  ;;  %v1504_v35 = vsel %vm6474_vm6, %v1487_v36, 0.0 }
 0x25d   : > { %v4867_v52 = vmax.f32 %v4714_v41, %v1540_v50  ;;  %v1533_v63 = vsel %vm6430_vm5, 0.0, %v1513_v59  ;;  %1564 = vrot.lane.b32.xlu0 %v4858_v46, %s3850_s24 }
 0x25e   : > { %v1541_v60 = vsel %vm4436_vm4, %v1501_v48, %v1533_v63  ;;  %v1515_v5 = vpop.permute.xlu1 %1514  ;;  %v1505_v48 = vsel %vm6474_vm6, %v1489_v44, 0.0 }
 0x25f   : > { %v4876_v39 = vmax.f32 %v4719_v58, %v1541_v60  ;;  %v1534_v42 = vsel %vm6430_vm5, 0.0, %v1515_v5  ;;  %1566 = vrot.lane.b32.xlu1 %v4867_v52, %s3850_s24 }
 0x260   : > { %v1542_v0 = vsel %vm4436_vm4, %v1502_v56, %v1534_v42  ;;  %v1517_v41 = vpop.permute.xlu0 %1516 }
 0x261   : > { %v4885_v55 = vmax.f32 %v4724_v45, %v1542_v0  ;;  %v1535_v47 = vsel %vm6430_vm5, 0.0, %v1517_v41  ;;  %1568 = vrot.lane.b32.xlu0 %v4876_v39, %s3850_s24  ;;  %v1626_v0 = vand.u32 2, %v4430_v49 }
 0x262   : > { %v1543_v51 = vsel %vm4436_vm4, %v1503_v61, %v1535_v47  ;;  %v1519_v58 = vpop.permute.xlu1 %1518  ;;  %v6623_v47 = vmov 0 }
 0x263   : > { %v4894_v50 = vmax.f32 %v4729_v3, %v1543_v51  ;;  %v1536_v59 = vsel %vm6430_vm5, 0.0, %v1519_v58  ;;  %1570 = vrot.lane.b32.xlu1 %v4885_v55, %s3850_s24  ;;  %vm4934_vm15 = vcmp.eq.s32.totalorder %v1626_v0, 0 }
 0x264   : > { %v1544_v37 = vsel %vm4436_vm4, %v1504_v35, %v1536_v59  ;;  %v1521_v45 = vpop.permute.xlu0 %1520  ;;  %v6624_v47 = vsel %vm4934_vm15, 4294967295, %v6623_v47 }
 0x265   : > { %v4903_v63 = vmax.f32 %v4734_v57, %v1544_v37  ;;  %v1537_v60 = vsel %vm6430_vm5, 0.0, %v1521_v45  ;;  %1572 = vrot.lane.b32.xlu0 %v4894_v50, %s3850_s24  ;;  %6625 = vst [vmem:[#allocation129_spill] sm:$0xff] %v6624_v47  ;;  %vm6455_vm5 = vcmask 1043456  }
 0x266   : > { %v1545_v3 = vsel %vm4436_vm4, %v1505_v48, %v1537_v60 }
 0x267   : > { %v4911_v36 = vmax.f32 %v4739_v43, %v1545_v3  ;;  %1574 = vrot.lane.b32.xlu1 %v4903_v63, %s3850_s24 }
 0x269   : > { %1576 = vrot.lane.b32.xlu0 %v4911_v36, %s3850_s24 }
 0x26b   : > { %1594 = vrot.lane.b32.xlu1 %v4851_v31, %s3849_s15 }
 0x26d   : > { %1596 = vrot.lane.b32.xlu0 %v4858_v46, %s3849_s15 }
 0x26f   : > { %1598 = vrot.lane.b32.xlu1 %v4867_v52, %s3849_s15 }
 0x271   : > { %1600 = vrot.lane.b32.xlu0 %v4876_v39, %s3849_s15 }
 0x273   : > { %1602 = vrot.lane.b32.xlu1 %v4885_v55, %s3849_s15 }
 0x275   : > { %1604 = vrot.lane.b32.xlu0 %v4894_v50, %s3849_s15 }
 0x277   : > { %1606 = vrot.lane.b32.xlu1 %v4903_v63, %s3849_s15 }
 0x279   : > { %1608 = vrot.lane.b32.xlu0 %v4911_v36, %s3849_s15 }
 0x2cd   : > { %v1563_v44 = vpop.permute.xlu1 %1562 }
 0x2ce   : > { %v1586_v58 = vsel %vm6429_vm3, %v1563_v44, 0.0 }
 0x2cf   : > { %v1565_v57 = vpop.permute.xlu0 %1564 }
 0x2d0   : > { %v1587_v45 = vsel %vm6429_vm3, %v1565_v57, 0.0 }
 0x2d1   : > { %v1567_v43 = vpop.permute.xlu1 %1566 }
 0x2d2   : > { %v1588_v44 = vsel %vm6429_vm3, %v1567_v43, 0.0 }
 0x2d3   : > { %v1569_v5 = vpop.permute.xlu0 %1568 }
 0x2d5   : > { %v1571_v56 = vpop.permute.xlu1 %1570 }
 0x2d7   : > { %v1573_v42 = vpop.permute.xlu0 %1572 }
 0x2d9   : > { %v1575_v41 = vpop.permute.xlu1 %1574 }
 0x2da   : > { %v1592_v25 = vsel %vm6429_vm3, %v1575_v41, 0.0 }
 0x2db   : > { %v1577_v61 = vpop.permute.xlu0 %1576 }
 0x2dc   : > { %v1593_v22 = vsel %vm6429_vm3, %v1577_v61, 0.0 }
 0x2dd   : > { %v1595_v51 = vpop.permute.xlu1 %1594 }
 0x2de   : > { %v1618_v35 = vsel %vm6473_vm1, 0.0, %v1595_v51 }
 0x2df   : > { %v1630_v59 = vsel %vm4934_vm15, %v1586_v58, %v1618_v35  ;;  %v1597_v37 = vpop.permute.xlu0 %1596 }
 0x2e0   : > { %v1638_v48 = vmax.f32 %v4851_v31, %v1630_v59  ;;  %v1619_v60 = vsel %vm6473_vm1, 0.0, %v1597_v37  ;;  %v1775_v31 = vand.u32 2, %v4206_v32  ;;  %v1774_v59 = vand.u32 2, %v4116_v2 }
 0x2e1   : > { %v1631_v3 = vsel %vm4934_vm15, %v1587_v45, %v1619_v60  ;;  %v1599_v0 = vpop.permute.xlu1 %1598  ;;  %v4956_v37 = vadd.s32 4294967292, %v4116_v2 }
 0x2e2   : > { %v1678_v33 = vrot.slane %v1638_v48, 7  ;;  %v1639_v51 = vmax.f32 %v4858_v46, %v1631_v3  ;;  %v1620_v58 = vsel %vm6473_vm1, 0.0, %v1599_v0  ;;  %v1654_v45 = vrot.slane %v1638_v48, 1 }
 0x2e3   : > { %v1632_v57 = vsel %vm4934_vm15, %v1588_v44, %v1620_v58  ;;  %v1601_v35 = vpop.permute.xlu0 %1600  ;;  %v1589_v46 = vsel %vm6429_vm3, %v1569_v5, 0.0  ;;  %v1590_v3 = vsel %vm6429_vm3, %v1571_v56, 0.0  ;;  %v1591_v0 = vsel %vm6429_vm3, %v1573_v42, 0.0 }
 0x2e4   : > { %v1655_v60 = vrot.slane %v1639_v51, 1  ;;  %v1679_v30 = vrot.slane %v1639_v51, 7  ;;  %v1640_v43 = vmax.f32 %v4867_v52, %v1632_v57  ;;  %v1621_v44 = vsel %vm6473_vm1, 0.0, %v1601_v35 }
 0x2e5   : > { %v1603_v58 = vpop.permute.xlu1 %1602  ;;  %v1700_v29 = vsel %vm6434_vm0, 0.0, %v1678_v33  ;;  %v1633_v5 = vsel %vm4934_vm15, %v1589_v46, %v1621_v44  ;;  %vm4994_vm14 = vcmp.eq.s32.totalorder %v1775_v31, 0  ;;  %vm5017_vm3 = vcmp.eq.s32.totalorder %v1774_v59, 0 }
 0x2e6   : > { %v1656_v27 = vsel %vm6435_vm2, %v1654_v45, %v1655_v60  ;;  %v1657_v2 = vrot.slane %v1640_v43, 1  ;;  %v1681_v26 = vrot.slane %v1640_v43, 7  ;;  %v1622_v56 = vsel %vm6473_vm1, 0.0, %v1603_v58 }
 0x2e7   : > { %v1702_v52 = vsel %vm4470_vm9, %v1656_v27, %v1700_v29  ;;  %v1605_v42 = vpop.permute.xlu0 %1604  ;;  %v1680_v57 = vsel %vm6434_vm0, %v1678_v33, %v1679_v30  ;;  %v1641_v45 = vmax.f32 %v4876_v39, %v1633_v5  ;;  %v6626_v27 = vmov 0 }
 0x2e8   : > { %v4972_v35 = vmax.f32 %v1638_v48, %v1702_v52  ;;  %v1658_v28 = vsel %vm6435_vm2, %v1655_v60, %v1657_v2  ;;  %v6627_v27 = vsel %vm4979_vm11, 4294967295, %v6626_v27  ;;  %v1634_v29 = vsel %vm4934_vm15, %v1590_v3, %v1622_v56 }
 0x2e9   : > { %v1703_v41 = vsel %vm4452_vm7, %v1658_v28, %v1680_v57  ;;  %6628 = vst [vmem:[#allocation130_spill] sm:$0xff] %v6627_v27  ;;  %v1623_v33 = vsel %vm6473_vm1, 0.0, %v1605_v42  ;;  %v1607_v48 = vpop.permute.xlu1 %1606  ;;  %v1682_v46 = vsel %vm6434_vm0, %v1679_v30, %v1681_v26  ;;  %v1659_v39 = vrot.slane %v1641_v45, 1 }
 0x2ea   : > { %v4987_v60 = vmax.f32 %v1639_v51, %v1703_v41  ;;  %v1683_v44 = vrot.slane %v1641_v45, 7  ;;  %v1642_v28 = vmax.f32 %v4885_v55, %v1634_v29  ;;  %v1635_v40 = vsel %vm4934_vm15, %v1591_v0, %v1623_v33 }
 0x2eb   : > { %v1624_v58 = vsel %vm6473_vm1, 0.0, %v1607_v48  ;;  %v6629_v3 = vmov 0  ;;  %v1660_v30 = vsel %vm6435_vm2, %v1657_v2, %v1659_v39  ;;  %v1676_v51 = vsel %vm6435_vm2, %v1659_v39, 0.0  ;;  %v1609_v5 = vpop.permute.xlu0 %1608 }
 0x2ec   : > { %v6630_v3 = vsel %vm4994_vm14, 4294967295, %v6629_v3  ;;  %v1727_v52 = vrot.slane %v4987_v60, 2  ;;  %v1726_v56 = vrot.slane %v4972_v35, 2  ;;  %v1751_v55 = vrot.slane %v4987_v60, 6 }
 0x2ed   : > { %6631 = vst [vmem:[#allocation131_spill] sm:$0xff] %v6630_v3  ;;  %v1684_v42 = vsel %vm6434_vm0, %v1681_v26, %v1683_v44  ;;  %v1704_v0 = vsel %vm4466_vm8, %v1660_v30, %v1682_v46  ;;  %v1685_v31 = vrot.slane %v1642_v28, 7  ;;  %v1643_v2 = vmax.f32 %v4894_v50, %v1635_v40 }
 0x2ee   : > { %v1705_v57 = vsel %vm4628_vm12, %v1676_v51, %v1684_v42  ;;  %v5008_v41 = vmax.f32 %v1640_v43, %v1704_v0  ;;  %v1636_v29 = vsel %vm4934_vm15, %v1592_v25, %v1624_v58  ;;  %v1661_v48 = vrot.slane %v1642_v28, 1 }
 0x2ef   : > { %v5013_v33 = vmax.f32 %v1641_v45, %v1705_v57  ;;  %v1644_v39 = vmax.f32 %v4903_v63, %v1636_v29  ;;  %v1625_v26 = vsel %vm6473_vm1, 0.0, %v1609_v5  ;;  %v6632_v46 = vmov 0 }
 0x2f0   : > { %v6633_v46 = vsel %vm5017_vm3, 4294967295, %v6632_v46  ;;  %v1729_v44 = vrot.slane %v5008_v41, 2  ;;  %v6431_v43 = vrot.slane %v5008_v41, 6  ;;  %v1662_v30 = vrot.slane %v1643_v2, 1 }
 0x2f1   : > { %6634 = vst [vmem:[#allocation132_spill] sm:$0xff] %v6633_v46  ;;  %v1686_v50 = vrot.slane %v1643_v2, 7  ;;  %v6432_v25 = vrot.slane %v5013_v33, 2  ;;  %v1701_v45 = vsel %vm6434_vm0, 0.0, %v1685_v31  ;;  %v1664_v40 = vrot.slane %v1644_v39, 1 }
 0x2f2   : > { %v1688_v58 = vrot.slane %v1644_v39, 7  ;;  %v1754_v63 = vsel %vm6472_vm10, %v1751_v55, %v6431_v43  ;;  %v1663_v59 = vsel %vm6435_vm2, %v1661_v48, %v1662_v30  ;;  %v1637_v5 = vsel %vm4934_vm15, %v1593_v22, %v1625_v26 }
 0x2f3   : > { %v1687_v51 = vsel %vm6434_vm0, %v1685_v31, %v1686_v50  ;;  %v1732_v42 = vsel %vm6470_vm13, %v1729_v44, %v6432_v25  ;;  %v1706_v0 = vsel %vm4470_vm9, %v1663_v59, %v1701_v45  ;;  %v1665_v57 = vsel %vm6435_vm2, %v1662_v30, %v1664_v40 }
 0x2f4   : > { %v1689_v29 = vsel %vm6434_vm0, %v1686_v50, %v1688_v58  ;;  %v1792_v43 = vsel %vm4979_vm11, %v1732_v42, %v1754_v63  ;;  %v1714_v48 = vmax.f32 %v1642_v28, %v1706_v0  ;;  %v1707_v31 = vsel %vm4452_vm7, %v1665_v57, %v1687_v51 }
 0x2f5   : > { %v1645_v22 = vmax.f32 %v4911_v36, %v1637_v5  ;;  %v1715_v26 = vmax.f32 %v1643_v2, %v1707_v31  ;;  %v1730_v61 = vsel %vm6470_vm13, %v1727_v52, %v1729_v44  ;;  %v6635_v25 = vrot.slane %v4972_v35, 6 }
 0x2f6   : > { %v5049_v30 = vmax.f32 %v5008_v41, %v1792_v43  ;;  %v1757_v50 = vrot.slane %v1714_v48, 6 }
 0x2f7   : > { %v1752_v45 = vsel %vm6472_vm10, %v6635_v25, %v1751_v55  ;;  %v1666_v59 = vrot.slane %v1645_v22, 1  ;;  %v1690_v21 = vrot.slane %v1645_v22, 7  ;;  %v1734_v63 = vrot.slane %v1715_v26, 2 }
 0x2f8   : > { %v1791_v28 = vsel %vm4994_vm14, %v1730_v61, %v1752_v45  ;;  %v1758_v51 = vrot.slane %v1715_v26, 6  ;;  %v1828_v2 = vrot.slane %v5049_v30, 4  ;;  %v1728_v25 = vsel %vm6470_vm13, %v1726_v56, %v1727_v52 }
 0x2f9   : > { %v5054_v36 = vmax.f32 %v4987_v60, %v1791_v28  ;;  %v1667_v44 = vsel %vm6435_vm2, %v1664_v40, %v1666_v59  ;;  %v1677_v55 = vsel %vm6435_vm2, %v1666_v59, 0.0  ;;  %v1691_v43 = vsel %vm6434_vm0, %v1688_v58, %v1690_v21 }
 0x2fa   : > { %v1708_v5 = vsel %vm4466_vm8, %v1667_v44, %v1689_v29  ;;  %v1709_v61 = vsel %vm4628_vm12, %v1677_v55, %v1691_v43  ;;  %v6636_v60 = vrot.slane %v4972_v35, 6  ;;  %v1777_v21 = vand.u32 2, %v4603_v62 }
 0x2fb   : > { %v1826_v42 = vrot.slane %v5054_v36, 4  ;;  %v1716_v57 = vmax.f32 %v1644_v39, %v1708_v5  ;;  %v1717_v40 = vmax.f32 %v1645_v22, %v1709_v61  ;;  %vm1808_vm0 = vcmp.ge.s32.totalorder %v4956_v37, 0  ;;  %v3466_v37 = vld [vmem:[%s6366_s3 + $0x27] ss:$0 sm:$0xff] }
 0x2fc   : > { %v1772_v0 = vsel %vm6472_vm10, 0.0, %v6636_v60  ;;  %v1733_v58 = vrot.slane %v1714_v48, 2  ;;  %v1759_v39 = vsel %vm6472_vm10, %v1757_v50, %v1758_v51  ;;  %v1773_v44 = vsel %vm6472_vm10, 0.0, %v1757_v50 }
 0x2fd   : > { %v1790_v31 = vsel %vm5017_vm3, %v1728_v25, %v1772_v0  ;;  %v5075_v52 = vsel %vm6455_vm5, %v1826_v42, %v1828_v2  ;;  %v1736_v29 = vrot.slane %v1716_v57, 2  ;;  %v1738_v45 = vrot.slane %v1717_v40, 2 }
 0x2fe   : > { %v1798_v56 = vmax.f32 %v4972_v35, %v1790_v31  ;;  %v1760_v59 = vrot.slane %v1716_v57, 6  ;;  %1849 = vrot.lane.b32.xlu0 %v5075_v52, %s3851_s7  ;;  %v1762_v62 = vrot.slane %v1717_v40, 6  ;;  %v1735_v28 = vsel %vm6470_vm13, %v1733_v58, %v1734_v63 }
 0x2ff   : > { %v1739_v35 = vsel %vm6470_vm13, %v1736_v29, %v1738_v45  ;;  %v1737_v43 = vsel %vm6470_vm13, %v1734_v63, %v1736_v29  ;;  %v1794_v25 = vsel %vm5017_vm3, %v1735_v28, %v1773_v44  ;;  %vm5104_vm2 = vcmp.eq.s32.totalorder %v1777_v21, 0  ;;  %v3465_v28 = vld [vmem:[%s6366_s3 + $0x26] ss:$0 sm:$0xff]  ;;  %v3470_v44 = vld [vmem:[%s6366_s3 + $0x29] ss:$0 sm:$0xff] }
 0x300   : > { %v1825_v22 = vrot.slane %v1798_v56, 4  ;;  %v1761_v55 = vsel %vm6472_vm10, %v1758_v51, %v1760_v59  ;;  %v1795_v60 = vsel %vm4994_vm14, %v1737_v43, %v1759_v39  ;;  %v1802_v0 = vmax.f32 %v1714_v48, %v1794_v25  ;;  %v3473_v25 = vld [vmem:[%s6366_s3 + $0x2a] ss:$0 sm:$0xff] }
 0x301   : > { %v1796_v5 = vsel %vm4979_vm11, %v1739_v35, %v1761_v55  ;;  %v5098_v31 = vmax.f32 %v1715_v26, %v1795_v60  ;;  %v6637_v63 = vmov 0  ;;  %v1763_v56 = vsel %vm6472_vm10, %v1760_v59, %v1762_v62  ;;  %v3461_v62 = vld [vmem:[%s6366_s3 + $0x24] ss:$0 sm:$0xff]  ;;  %v3469_v35 = vld [vmem:[%s6366_s3 + $0x28] ss:$0 sm:$0xff] }
 0x302   : > { %v1827_v61 = vsel %vm6455_vm5, %v1825_v22, %v1826_v42  ;;  %v5100_v51 = vmax.f32 %v1716_v57, %v1796_v5  ;;  %v6638_v63 = vsel %vm5104_vm2, 4294967295, %v6637_v63  ;;  %v1749_v42 = vsel %vm6470_vm13, %v1738_v45, 0.0  ;;  %v3474_v55 = vld [vmem:[%s6366_s3 + $0x2b] ss:$0 sm:$0xff]  ;;  %v3478_v5 = vld [vmem:[%s6366_s3 + $0x2d] ss:$0 sm:$0xff] }
 0x303   : > { %v5096_v50 = vsel %vm1808_vm0, %v1827_v61, 0.0  ;;  %6639 = vst [vmem:[#allocation133_spill] sm:$0xff] %v6638_v63  ;;  %v1831_v48 = vrot.slane %v5098_v31, 4  ;;  %v1830_v29 = vrot.slane %v1802_v0, 4  ;;  %v1797_v26 = vsel %vm5104_vm2, %v1749_v42, %v1763_v56  ;;  %v3477_v61 = vld [vmem:[%s6366_s3 + $0x2c] ss:$0 sm:$0xff] }
 0x304   : > { %1847 = vrot.lane.b32.xlu1 %v5096_v50, %s3851_s7  ;;  %v1833_v58 = vrot.slane %v5100_v51, 4  ;;  %v1805_v57 = vmax.f32 %v1717_v40, %v1797_v26  ;;  %v3462_v40 = vld [vmem:[%s6366_s3 + $0x25] ss:$0 sm:$0xff]  ;;  %v1755_v43 = vrot.slane %v5013_v33, 6  ;;  %v6640_v60 = vrot.slane %v5013_v33, 2 }
 0x305   : > { %v1832_v21 = vsel %vm6455_vm5, %v1830_v29, %v1831_v48  ;;  %v6641_v42 = vrot.slane %v5008_v41, 6  ;;  %v2084_v41 = vadd.s32 4, %v4206_v32  ;;  %v3482_v26 = vld [vmem:[%s6366_s3 + $0x2f] ss:$0 sm:$0xff] }
 0x306   : > { %v5115_v39 = vsel %vm6455_vm5, %v1831_v48, %v1833_v58  ;;  %v5122_v45 = vsel %vm1808_vm0, %v1832_v21, 0.0  ;;  %v2099_v59 = vrot.slane %v1805_v57, 4  ;;  %v1748_v0 = vsel %vm6470_vm13, %v6640_v60, 0.0 }
 0x307   : > { %1853 = vrot.lane.b32.xlu0 %v5115_v39, %s3851_s7  ;;  %v1756_v56 = vsel %vm6472_vm10, %v6641_v42, %v1755_v43  ;;  %vm2088_vm0 = vcmp.lt.s32.totalorder %v2084_v41, 16  ;;  %v3486_v43 = vld [vmem:[%s6366_s3 + $0x31] ss:$0 sm:$0xff]  ;;  %vm6648_vm13 = vcmask 7168  }
 0x308   : > { %1851 = vrot.lane.b32.xlu1 %v5122_v45, %s3851_s7  ;;  %v5133_v22 = vsel %vm6455_vm5, %v1833_v58, %v2099_v59  ;;  %v1793_v48 = vsel %vm5104_vm2, %v1748_v0, %v1756_v56  ;;  %v5211_v59 = vld [vmem:[%s4099_s11 + $0x60] sm:$0xff]  ;;  %vm6649_vm10 = vmmov %vm6648_vm13 }
 0x309   : > { %v1801_v58 = vmax.f32 %v5013_v33, %v1793_v48  ;;  %v3481_v33 = vld [vmem:[%s6366_s3 + $0x2e] ss:$0 sm:$0xff] }
 0x30b   : > { %1882 = vperm.xlu0 %3636, %v3462_v40   ;;  %v2097_v29 = vrot.slane %v1801_v58, 4  ;;  %v5214_v40 = vld [vmem:[%s4109_s26 + $0x30] sm:$0xff] }
 0x30c   : > { %1878 = vperm.xlu1 %3637, %v3461_v62   ;;  %v5224_v62 = vld [vmem:[%s4099_s11 + $0x68] sm:$0xff] }
 0x30d   : > { %v2098_v57 = vsel %vm6455_vm5, %v1828_v2, %v2097_v29  ;;  %v5221_v2 = vld [vmem:[%s4210_s1 + $0x30] sm:$0xff]  ;;  %vm6475_vm5 = vcmask 97280  }
 0x30e   : > { %v5204_v21 = vsel %vm2088_vm0, %v2098_v57, 0.0 }
 0x30f   : > { %1907 = vperm.xlu0 %3636, %v3466_v37   ;;  %6642 = vst [vmem:[#allocation134_spill] sm:$0xff] %v5204_v21  ;;  %v5231_v37 = vld [vmem:[%s4099_s11 + $0x70] sm:$0xff] }
 0x310   : > { %1903 = vperm.xlu1 %3637, %v3465_v28   ;;  %v5234_v28 = vld [vmem:[%s4109_s26 + $0x38] sm:$0xff]  ;;  %s3856_s26 = smov [#allocation8]  }
 0x313   : > { %1920 = vrot.lane.b32.xlu0 %v5075_v52, %s3852_s22 }
 0x314   : > { %1918 = vrot.lane.b32.xlu1 %v5096_v50, %s3852_s22 }
 0x317   : > { %1924 = vrot.lane.b32.xlu0 %v5115_v39, %s3852_s22 }
 0x318   : > { %1922 = vrot.lane.b32.xlu1 %v5122_v45, %s3852_s22 }
 0x31b   : > { %1953 = vperm.xlu0 %3636, %v3470_v44   ;;  %v5241_v44 = vld [vmem:[%s4210_s1 + $0x38] sm:$0xff] }
 0x31c   : > { %1949 = vperm.xlu1 %3637, %v3469_v35   ;;  %v5244_v35 = vld [vmem:[%s4099_s11 + $0x78] sm:$0xff] }
 0x31f   : > { %1966 = vrot.lane.b32.xlu0 %v5049_v30, %s3851_s7 }
 0x320   : > { %1964 = vrot.lane.b32.xlu1 %v5054_v36, %s3851_s7 }
 0x323   : > { %1970 = vrot.lane.b32.xlu0 %v5100_v51, %s3851_s7 }
 0x324   : > { %1968 = vrot.lane.b32.xlu1 %v5098_v31, %s3851_s7 }
 0x327   : > { %1998 = vperm.xlu0 %3636, %v3474_v55   ;;  %v5268_v55 = vsel %vm2088_vm0, %v5133_v22, 0.0  ;;  %v3490_v22 = vld [vmem:[%s6366_s3 + $0x33] ss:$0 sm:$0xff]  ;;  %vm1859_vm0 = vcmask 31744  }
 0x328   : > { %1994 = vperm.xlu1 %3637, %v3473_v25   ;;  %6643 = vst [vmem:[#allocation135_spill] sm:$0xff] %v5268_v55  ;;  %v3485_v25 = vld [vmem:[%s6366_s3 + $0x30] ss:$0 sm:$0xff] }
 0x32b   : > { %2027 = vperm.xlu0 %3636, %v3478_v5   ;;  %v3489_v5 = vld [vmem:[%s6366_s3 + $0x32] ss:$0 sm:$0xff] }
 0x32c   : > { %2023 = vperm.xlu1 %3637, %v3477_v61   ;;  %v3493_v61 = vld [vmem:[%s6366_s3 + $0x34] ss:$0 sm:$0xff] }
 0x32f   : > { %2040 = vrot.lane.b32.xlu0 %v5049_v30, %s3852_s22 }
 0x330   : > { %2038 = vrot.lane.b32.xlu1 %v5054_v36, %s3852_s22 }
 0x333   : > { %2044 = vrot.lane.b32.xlu0 %v5100_v51, %s3852_s22 }
 0x334   : > { %2042 = vrot.lane.b32.xlu1 %v5098_v31, %s3852_s22 }
 0x337   : > { %2072 = vperm.xlu0 %3636, %v3482_v26  }
 0x338   : > { %2068 = vperm.xlu1 %3637, %v3481_v33  }
 0x33b   : > { %2113 = vrot.lane.b32.xlu0 %v5204_v21, %s3851_s7 }
 0x33c   : > { %2111 = vrot.lane.b32.xlu1 %v5075_v52, %s3851_s7 }
 0x33f   : > { %2240 = vrot.lane.b32.xlu0 %v5211_v59, %s3848_s20 }
 0x340   : > { %2238 = vrot.lane.b32.xlu1 %v5214_v40, %s3848_s20 }
 0x343   : > { %2244 = vrot.lane.b32.xlu0 %v5221_v2, %s3848_s20 }
 0x344   : > { %2242 = vrot.lane.b32.xlu1 %v5224_v62, %s3848_s20 }
 0x347   : > { %2248 = vrot.lane.b32.xlu0 %v5231_v37, %s3848_s20 }
 0x348   : > { %2246 = vrot.lane.b32.xlu1 %v5234_v28, %s3848_s20 }
 0x34b   : > { %2252 = vrot.lane.b32.xlu0 %v5241_v44, %s3848_s20 }
 0x34c   : > { %2250 = vrot.lane.b32.xlu1 %v5244_v35, %s3848_s20  ;;  %s3756_s20 = sshll.u32 %s3856_s26, 4  ;;  %s3757_s20 = int_to_ptr.vmem [resolvable:$false] %s3756_s20 }
 0x34d   : > { %s3758_s1 = scalar_lea.vmem %s3757_s20, 4096 }
 0x34f   : > { %2272 = vrot.lane.b32.xlu0 %v5211_v59, %s3847_s30 }
 0x350   : > { %2270 = vrot.lane.b32.xlu1 %v5214_v40, %s3847_s30 }
 0x353   : > { %2276 = vrot.lane.b32.xlu0 %v5221_v2, %s3847_s30 }
 0x354   : > { %2274 = vrot.lane.b32.xlu1 %v5224_v62, %s3847_s30 }
 0x357   : > { %2280 = vrot.lane.b32.xlu0 %v5231_v37, %s3847_s30 }
 0x358   : > { %2278 = vrot.lane.b32.xlu1 %v5234_v28, %s3847_s30 }
 0x35b   : > { %2284 = vrot.lane.b32.xlu0 %v5241_v44, %s3847_s30 }
 0x35c   : > { %2282 = vrot.lane.b32.xlu1 %v5244_v35, %s3847_s30 }
 0x35f   : > { %2117 = vrot.lane.b32.xlu0 %v5268_v55, %s3851_s7 }
 0x360   : > { %2115 = vrot.lane.b32.xlu1 %v5115_v39, %s3851_s7 }
 0x363   : > { %2145 = vperm.xlu0 %3636, %v3486_v43  }
 0x364   : > { %2141 = vperm.xlu1 %3637, %v3485_v25  }
 0x367   : > { %2174 = vperm.xlu0 %3636, %v3490_v22  }
 0x368   : > { %2170 = vperm.xlu1 %3637, %v3489_v5  }
 0x36b   : > { %2187 = vrot.lane.b32.xlu0 %v5204_v21, %s3852_s22 }
 0x36c   : > { %2185 = vrot.lane.b32.xlu1 %v5075_v52, %s3852_s22 }
 0x36f   : > { %2191 = vrot.lane.b32.xlu0 %v5268_v55, %s3852_s22 }
 0x370   : > { %2189 = vrot.lane.b32.xlu1 %v5115_v39, %s3852_s22  ;;  %v1850_v60 = vpop.permute.xlu0 %1849 }
 0x371   : > { %v1861_v32 = vsel %vm1859_vm0, 0.0, %v1850_v60 }
 0x374   : > { %2215 = vperm.xlu1 %3637, %v3493_v61  }
 0x376   : > { %v1848_v0 = vpop.permute.xlu1 %1847 }
 0x377   : > { %v1860_v34 = vsel %vm1859_vm0, 0.0, %v1848_v0 }
 0x379   : > { %v1854_v42 = vpop.permute.xlu0 %1853 }
 0x37a   : > { %v1852_v56 = vpop.permute.xlu1 %1851  ;;  %v1863_v4 = vsel %vm1859_vm0, 0.0, %v1854_v42 }
 0x37b   : > { %v1862_v38 = vsel %vm1859_vm0, 0.0, %v1852_v56 }
 0x38a   : > { %v1883_v48 = vpop.permute.xlu0 %1882 }
 0x38b   : > { %v1879_v58 = vpop.permute.xlu1 %1878  ;;  %v1887_v49 = vmul.f32 %v1883_v48, %v1862_v38  ;;  %v1888_v47 = vmul.f32 %v1883_v48, %v1863_v4 }
 0x38c   : > { %v1885_v21 = vmul.f32 %v1879_v58, %v1860_v34 }
 0x38e   : > { %v1908_v41 = vpop.permute.xlu0 %1907 }
 0x38f   : > { %v1904_v29 = vpop.permute.xlu1 %1903  ;;  %v1912_v1 = vmul.f32 %v1908_v41, %v5122_v45  ;;  %v1913_v55 = vmul.f32 %v1908_v41, %v5115_v39 }
 0x390   : > { %v1911_v42 = vmul.f32 %v1904_v29, %v5075_v52 }
 0x391   : > { %v1916_v34 = vadd.f32 %v1912_v1, %v1887_v49 }
 0x392   : > { %v5297_v26 = vpop.permute.xlu0 %1920 }
 0x393   : > { %v5299_v33 = vpop.permute.xlu1 %1918 }
 0x396   : > { %v1925_v57 = vpop.permute.xlu0 %1924 }
 0x397   : > { %v1923_v43 = vpop.permute.xlu1 %1922 }
 0x398   : > { %v1933_v45 = vsel %vm6475_vm5, %v1923_v43, 0.0 }
 0x39a   : > { %v1954_v25 = vpop.permute.xlu0 %1953 }
 0x39b   : > { %v5301_v22 = vpop.permute.xlu1 %1949  ;;  %v1958_v48 = vmul.f32 %v1954_v25, %v1933_v45 }
 0x39e   : > { %v5303_v5 = vpop.permute.xlu0 %1966 }
 0x39f   : > { %v5305_v61 = vpop.permute.xlu1 %1964 }
 0x3a2   : > { %v5307_v19 = vpop.permute.xlu0 %1970 }
 0x3a3   : > { %v5309_v20 = vpop.permute.xlu1 %1968 }
 0x3a6   : > { %v5311_v17 = vpop.permute.xlu0 %1998 }
 0x3a7   : > { %v5313_v16 = vpop.permute.xlu1 %1994 }
 0x3aa   : > { %v5315_v14 = vpop.permute.xlu0 %2027 }
 0x3ab   : > { %v5317_v18 = vpop.permute.xlu1 %2023 }
 0x3ae   : > { %v5319_v13 = vpop.permute.xlu0 %2040 }
 0x3af   : > { %v5321_v24 = vpop.permute.xlu1 %2038 }
 0x3b2   : > { %v5323_v15 = vpop.permute.xlu0 %2044 }
 0x3b3   : > { %v5325_v10 = vpop.permute.xlu1 %2042 }
 0x3b6   : > { %v5327_v23 = vpop.permute.xlu0 %2072 }
 0x3b7   : > { %6644 = vst [vmem:[#allocation136_spill] sm:$0xff] %v5327_v23  ;;  %v5329_v9 = vpop.permute.xlu1 %2068 }
 0x3b8   : > { %6645 = vst [vmem:[#allocation137_spill] sm:$0xff] %v5329_v9  ;;  %v1910_v9 = vmul.f32 %v1904_v29, %v5096_v50  ;;  %v1934_v50 = vsel %vm6475_vm5, %v1925_v57, 0.0 }
 0x3b9   : > { %v1959_v41 = vmul.f32 %v1954_v25, %v1934_v50 }
 0x3ba   : > { %v5331_v6 = vpop.permute.xlu0 %2113 }
 0x3bb   : > { %6646 = vst [vmem:[#allocation138_spill] sm:$0xff] %v5331_v6  ;;  %v5333_v12 = vpop.permute.xlu1 %2111  ;;  %v1886_v6 = vmul.f32 %v1879_v58, %v1861_v32 }
 0x3bc   : > { %6647 = vst [vmem:[#allocation139_spill] sm:$0xff] %v5333_v12 }
 0x3be   : > { %v2241_v7 = vpop.permute.xlu0 %2240 }
 0x3bf   : > { %v2239_v11 = vpop.permute.xlu1 %2238  ;;  %v2263_v60 = vsel %vm6474_vm6, %v2241_v7, 0.0 }
 0x3c0   : > { %v2262_v56 = vsel %vm6474_vm6, %v2239_v11, 0.0 }
 0x3c2   : > { %v2245_v8 = vpop.permute.xlu0 %2244 }
 0x3c3   : > { %v2243_v53 = vpop.permute.xlu1 %2242  ;;  %v2265_v49 = vsel %vm6474_vm6, %v2245_v8, 0.0  ;;  %v1932_v8 = vsel %vm6475_vm5, %v5297_v26, 0.0  ;;  %v1977_v26 = vsel %vm1859_vm0, 0.0, %v5303_v5  ;;  %v1978_v5 = vsel %vm1859_vm0, 0.0, %v5309_v20 }
 0x3c4   : > { %v1957_v43 = vmul.f32 %v5301_v22, %v1932_v8  ;;  %v2032_v20 = vmul.f32 %v5315_v14, %v5098_v31 }
 0x3c6   : > { %v2249_v63 = vpop.permute.xlu0 %2248 }
 0x3c7   : > { %v2247_v46 = vpop.permute.xlu1 %2246 }
 0x3ca   : > { %v5335_v27 = vpop.permute.xlu0 %2252 }
 0x3cb   : > { %v5337_v3 = vpop.permute.xlu1 %2250 }
 0x3ce   : > { %v2273_v12 = vpop.permute.xlu0 %2272 }
 0x3cf   : > { %v2295_v23 = vsel %vm6648_vm13, 0.0, %v2273_v12  ;;  %v2271_v0 = vpop.permute.xlu1 %2270  ;;  %v1917_v12 = vadd.f32 %v1913_v55, %v1888_v47  ;;  %v2264_v47 = vsel %vm6474_vm6, %v2243_v53, 0.0  ;;  %vm6650_vm13 = vmmov %vm6649_vm10  ;;  %v1962_v53 = vadd.f32 %v1958_v48, %v1916_v34 }
 0x3d0   : > { %v2303_v38 = vsel %vm4436_vm4, %v2263_v60, %v2295_v23  ;;  %v2294_v4 = vsel %vm6649_vm10, 0.0, %v2271_v0  ;;  %v1914_v23 = vadd.f32 %v1910_v9, %v1885_v21  ;;  %v1931_v9 = vsel %vm6475_vm5, %v5299_v33, 0.0 }
 0x3d1   : > { %v5355_v32 = vmax.f32 %v5211_v59, %v2303_v38  ;;  %v2302_v7 = vsel %vm4436_vm4, %v2262_v56, %v2294_v4  ;;  %v1915_v59 = vadd.f32 %v1911_v42, %v1886_v6  ;;  %v1956_v57 = vmul.f32 %v5301_v22, %v1931_v9 }
 0x3d2   : > { %v5361_v11 = vmax.f32 %v5214_v40, %v2302_v7  ;;  %v2277_v58 = vpop.permute.xlu0 %2276  ;;  %v1963_v0 = vadd.f32 %v1959_v41, %v1917_v12  ;;  %v2267_v33 = vsel %vm6474_vm6, %v2249_v63, 0.0  ;;  %v1976_v56 = vsel %vm1859_vm0, 0.0, %v5305_v61 }
 0x3d3   : > { %v2297_v1 = vsel %vm6649_vm10, 0.0, %v2277_v58  ;;  %v2275_v29 = vpop.permute.xlu1 %2274  ;;  %2328 = vrot.lane.b32.xlu1 %v5355_v32, %s3850_s24  ;;  %v2266_v22 = vsel %vm6474_vm6, %v2247_v46, 0.0  ;;  %v1979_v63 = vsel %vm1859_vm0, 0.0, %v5307_v19  ;;  %v2003_v61 = vmul.f32 %v5311_v17, %v1978_v5 }
 0x3d4   : > { %v2305_v55 = vsel %vm4436_vm4, %v2265_v49, %v2297_v1  ;;  %v2296_v40 = vsel %vm6650_vm13, 0.0, %v2275_v29  ;;  %2326 = vrot.lane.b32.xlu0 %v5361_v11, %s3850_s24  ;;  %vm6651_vm13 = vmmov %vm6649_vm10  ;;  %v2004_v34 = vmul.f32 %v5311_v17, %v1979_v63  ;;  %v2001_v45 = vmul.f32 %v5313_v16, %v1976_v56 }
 0x3d5   : > { %v5378_v21 = vmax.f32 %v5221_v2, %v2305_v55  ;;  %v2304_v6 = vsel %vm4436_vm4, %v2264_v47, %v2296_v40  ;;  %v2002_v19 = vmul.f32 %v5313_v16, %v1977_v26  ;;  %v2033_v17 = vmul.f32 %v5315_v14, %v5100_v51 }
 0x3d6   : > { %v5385_v25 = vmax.f32 %v5224_v62, %v2304_v6  ;;  %v2281_v60 = vpop.permute.xlu0 %2280  ;;  %v1961_v58 = vadd.f32 %v1957_v43, %v1915_v59  ;;  %v2007_v14 = vadd.f32 %v2003_v61, %v1962_v53  ;;  %v2008_v51 = vadd.f32 %v2004_v34, %v1963_v0  ;;  %v6654_v6 = vld [vmem:[#allocation137_spill] sm:$0xff] }
 0x3d7   : > { %v2299_v2 = vsel %vm6649_vm10, 0.0, %v2281_v60  ;;  %v2279_v42 = vpop.permute.xlu1 %2278  ;;  %2332 = vrot.lane.b32.xlu1 %v5378_v21, %s3850_s24  ;;  %v2030_v55 = vmul.f32 %v5317_v18, %v5054_v36  ;;  %v2053_v40 = vsel %vm6475_vm5, %v5323_v15, 0.0  ;;  %v2051_v36 = vsel %vm6475_vm5, %v5319_v13, 0.0  ;;  %v6655_v60 = vld [vmem:[#allocation138_spill] sm:$0xff]  ;;  %v6656_v13 = vld [vmem:[#allocation139_spill] sm:$0xff] }
 0x3d8   : > { %v2307_v62 = vsel %vm4436_vm4, %v2267_v33, %v2299_v2  ;;  %v2298_v38 = vsel %vm6651_vm13, 0.0, %v2279_v42  ;;  %2330 = vrot.lane.b32.xlu0 %v5385_v25, %s3850_s24  ;;  %vm6652_vm13 = vmmov %vm6649_vm10  ;;  %v2006_v47 = vadd.f32 %v2002_v19, %v1961_v58  ;;  %v2036_v54 = vadd.f32 %v2032_v20, %v2007_v14  ;;  %v6657_v19 = vld [vmem:[#allocation135_spill] sm:$0xff] }
 0x3d9   : > { %v5406_v4 = vmax.f32 %v5231_v37, %v2307_v62  ;;  %v2306_v46 = vsel %vm4436_vm4, %v2266_v22, %v2298_v38  ;;  %v2269_v37 = vsel %vm6474_vm6, %v5335_v27, 0.0  ;;  %v1960_v27 = vadd.f32 %v1956_v57, %v1914_v23 }
 0x3da   : > { %v5414_v7 = vmax.f32 %v5234_v28, %v2306_v46  ;;  %v2285_v12 = vpop.permute.xlu0 %2284  ;;  %v2268_v28 = vsel %vm6474_vm6, %v5337_v3, 0.0  ;;  %v2031_v23 = vmul.f32 %v5317_v18, %v5049_v30  ;;  %v2050_v18 = vsel %vm6475_vm5, %v5321_v24, 0.0  ;;  %v6653_v30 = vld [vmem:[#allocation136_spill] sm:$0xff] }
 0x3db   : > { %v2301_v50 = vsel %vm6649_vm10, 0.0, %v2285_v12  ;;  %v2283_v48 = vpop.permute.xlu1 %2282  ;;  %2336 = vrot.lane.b32.xlu1 %v5406_v4, %s3850_s24  ;;  %v2005_v29 = vadd.f32 %v2001_v45, %v1960_v27  ;;  %v2078_v9 = vmul.f32 %v6653_v30, %v2053_v40  ;;  %v2075_v53 = vmul.f32 %v6654_v6, %v2050_v18 }
 0x3dc   : > { %v2309_v16 = vsel %vm4436_vm4, %v2269_v37, %v2301_v50  ;;  %v2300_v31 = vsel %vm6652_vm13, 0.0, %v2283_v48  ;;  %2334 = vrot.lane.b32.xlu0 %v5414_v7, %s3850_s24  ;;  %v2076_v15 = vmul.f32 %v6654_v6, %v2051_v36  ;;  %v2124_v0 = vsel %vm1859_vm0, 0.0, %v6655_v60 }
 0x3dd   : > { %v5434_v41 = vmax.f32 %v5241_v44, %v2309_v16  ;;  %v2308_v49 = vsel %vm4436_vm4, %v2268_v28, %v2300_v31  ;;  %v2037_v44 = vadd.f32 %v2033_v17, %v2008_v51  ;;  %v2123_v26 = vsel %vm1859_vm0, 0.0, %v6656_v13  ;;  %v6658_v28 = vld [vmem:[#allocation134_spill] sm:$0xff]  ;;  %v3494_v51 = vld [vmem:[%s6366_s3 + $0x35] ss:$0 sm:$0xff] }
 0x3de   : > { %v5439_v3 = vmax.f32 %v5244_v35, %v2308_v49  ;;  %v2118_v1 = vpop.permute.xlu0 %2117  ;;  %v2052_v35 = vsel %vm6475_vm5, %v5325_v10, 0.0  ;;  %v2034_v42 = vadd.f32 %v2030_v55, %v2005_v29  ;;  %v2035_v56 = vadd.f32 %v2031_v23, %v2006_v47 }
 0x3df   : > { %v2116_v59 = vpop.permute.xlu1 %2115  ;;  %2340 = vrot.lane.b32.xlu1 %v5434_v41, %s3850_s24  ;;  %v2077_v8 = vmul.f32 %v6653_v30, %v2052_v35  ;;  %v2126_v57 = vsel %vm1859_vm0, 0.0, %v2118_v1  ;;  %v2082_v63 = vadd.f32 %v2078_v9, %v2037_v44  ;;  %vm6659_vm4 = vcmask 113664  }
 0x3e0   : > { %2338 = vrot.lane.b32.xlu0 %v5439_v3, %s3850_s24  ;;  %v2125_v10 = vsel %vm1859_vm0, 0.0, %v2116_v59  ;;  %v2079_v5 = vadd.f32 %v2075_v53, %v2034_v42  ;;  %v2080_v46 = vadd.f32 %v2076_v15, %v2035_v56  ;;  %vm6660_vm10 = vmmov %vm6659_vm4 }
 0x3e1   : > { %v2081_v38 = vadd.f32 %v2077_v8, %v2036_v54  ;;  %vm6662_vm13 = vmmov %vm6659_vm4 }
 0x3e2   : > { %v2146_v43 = vpop.permute.xlu0 %2145 }
 0x3e3   : > { %v2150_v24 = vmul.f32 %v2146_v43, %v2125_v10  ;;  %v2151_v33 = vmul.f32 %v2146_v43, %v2126_v57  ;;  %v2142_v2 = vpop.permute.xlu1 %2141  ;;  %2360 = vrot.lane.b32.xlu1 %v5355_v32, %s3849_s15 }
 0x3e4   : > { %v2148_v22 = vmul.f32 %v2142_v2, %v2123_v26  ;;  %v2149_v62 = vmul.f32 %v2142_v2, %v2124_v0  ;;  %2358 = vrot.lane.b32.xlu0 %v5361_v11, %s3849_s15 }
 0x3e5   : > { %v2154_v34 = vadd.f32 %v2150_v24, %v2081_v38  ;;  %v2155_v45 = vadd.f32 %v2151_v33, %v2082_v63 }
 0x3e6   : > { %v2175_v61 = vpop.permute.xlu0 %2174  ;;  %v2152_v50 = vadd.f32 %v2148_v22, %v2079_v5  ;;  %v2153_v48 = vadd.f32 %v2149_v62, %v2080_v46 }
 0x3e7   : > { %v2179_v12 = vmul.f32 %v2175_v61, %v5115_v39  ;;  %v2180_v20 = vmul.f32 %v2175_v61, %v6657_v19  ;;  %v2171_v37 = vpop.permute.xlu1 %2170  ;;  %2364 = vrot.lane.b32.xlu1 %v5378_v21, %s3849_s15 }
 0x3e8   : > { %v2177_v17 = vmul.f32 %v2171_v37, %v5075_v52  ;;  %v2178_v16 = vmul.f32 %v2171_v37, %v6658_v28  ;;  %2362 = vrot.lane.b32.xlu0 %v5385_v25, %s3849_s15 }
 0x3e9   : > { %v5479_v31 = vadd.f32 %v2179_v12, %v2154_v34  ;;  %v5481_v27 = vadd.f32 %v2180_v20, %v2155_v45 }
 0x3ea   : > { %v2181_v39 = vadd.f32 %v2177_v17, %v2152_v50  ;;  %v2182_v58 = vadd.f32 %v2178_v16, %v2153_v48  ;;  %v2188_v52 = vpop.permute.xlu0 %2187 }
 0x3eb   : > { %v2186_v49 = vpop.permute.xlu1 %2185  ;;  %2368 = vrot.lane.b32.xlu1 %v5406_v4, %s3849_s15  ;;  %v2198_v1 = vsel %vm6475_vm5, %v2188_v52, 0.0 }
 0x3ec   : > { %2366 = vrot.lane.b32.xlu0 %v5414_v7, %s3849_s15  ;;  %v2197_v29 = vsel %vm6475_vm5, %v2186_v49, 0.0 }
 0x3ee   : > { %v5502_v44 = vpop.permute.xlu0 %2191 }
 0x3ef   : > { %v5487_v14 = vpop.permute.xlu1 %2189  ;;  %2372 = vrot.lane.b32.xlu1 %v5434_v41, %s3849_s15 }
 0x3f0   : > { %2370 = vrot.lane.b32.xlu0 %v5439_v3, %s3849_s15  ;;  %s3854_s15 = smov 8  }
 0x3f3   : > { %v2216_v47 = vpop.permute.xlu1 %2215 }
 0x3f4   : > { %v2222_v55 = vmul.f32 %v2216_v47, %v2197_v29  ;;  %v2223_v23 = vmul.f32 %v2216_v47, %v2198_v1  ;;  %2219 = vperm.xlu0 %3636, %v3494_v51   ;;  %v3853_v1 = vmov 0.0  }
 0x3f6   : > { %v5498_v59 = vadd.f32 %v2222_v55, %v2181_v39  ;;  %v5500_v54 = vadd.f32 %v2223_v23, %v2182_v58 }
 0x445   : > { %v2329_v40 = vpop.permute.xlu1 %2328 }
 0x446   : > { %v2327_v35 = vpop.permute.xlu0 %2326  ;;  %v2351_v15 = vsel %vm6659_vm4, %v2329_v40, 0.0 }
 0x447   : > { %v2350_v43 = vsel %vm6660_vm10, %v2327_v35, 0.0  ;;  %vm6663_vm10 = vmmov %vm6659_vm4  ;;  %v6667_v35 = vld [vmem:[#allocation69_spill] sm:$0xff] }
 0x449   : > { %v2333_v36 = vpop.permute.xlu1 %2332 }
 0x44a   : > { %v2331_v18 = vpop.permute.xlu0 %2330  ;;  %v2353_v42 = vsel %vm6662_vm13, %v2333_v36, 0.0  ;;  %vm6664_vm13 = vmmov %vm6659_vm4  ;;  %v2478_v36 = vand.u32 4, %v6667_v35 }
 0x44b   : > { %v2352_v62 = vsel %vm6659_vm4, %v2331_v18, 0.0 }
 0x44d   : > { %v2337_v30 = vpop.permute.xlu1 %2336 }
 0x44e   : > { %v2335_v8 = vpop.permute.xlu0 %2334  ;;  %v2355_v61 = vsel %vm6663_vm10, %v2337_v30, 0.0  ;;  %vm6665_vm10 = vmmov %vm6659_vm4 }
 0x44f   : > { %v2354_v12 = vsel %vm6664_vm13, %v2335_v8, 0.0  ;;  %vm6670_vm13 = vcmask 1046528  }
 0x451   : > { %v2341_v9 = vpop.permute.xlu1 %2340 }
 0x452   : > { %v2339_v6 = vpop.permute.xlu0 %2338  ;;  %v2357_v48 = vsel %vm6659_vm4, %v2341_v9, 0.0  ;;  %vm6671_vm4 = vcmask 1040384  }
 0x453   : > { %v2356_v16 = vsel %vm6665_vm10, %v2339_v6, 0.0  ;;  %vm6673_vm10 = vmmov %vm6671_vm4 }
 0x454   : > { %vm6676_vm6 = vmmov %vm6673_vm10 }
 0x455   : > { %v2361_v53 = vpop.permute.xlu1 %2360 }
 0x456   : > { %v2383_v57 = vsel %vm6473_vm1, 0.0, %v2361_v53  ;;  %v2359_v10 = vpop.permute.xlu0 %2358 }
 0x457   : > { %v2391_v0 = vsel %vm4934_vm15, %v2351_v15, %v2383_v57  ;;  %v2382_v13 = vsel %vm6473_vm1, 0.0, %v2359_v10 }
 0x458   : > { %v5511_v26 = vmax.f32 %v5355_v32, %v2391_v0  ;;  %v2390_v24 = vsel %vm4934_vm15, %v2350_v43, %v2382_v13 }
 0x459   : > { %v5516_v33 = vmax.f32 %v5361_v11, %v2390_v24  ;;  %v2365_v2 = vpop.permute.xlu1 %2364 }
 0x45a   : > { %v2385_v56 = vsel %vm6473_vm1, 0.0, %v2365_v2  ;;  %2416 = vrot.lane.b32.xlu0 %v5511_v26, %s3852_s22  ;;  %v2363_v22 = vpop.permute.xlu0 %2362 }
 0x45b   : > { %v2393_v32 = vsel %vm4934_vm15, %v2353_v42, %v2385_v56  ;;  %v2384_v38 = vsel %vm6473_vm1, 0.0, %v2363_v22  ;;  %2414 = vrot.lane.b32.xlu1 %v5516_v33, %s3852_s22 }
 0x45c   : > { %v5529_v11 = vmax.f32 %v5378_v21, %v2393_v32  ;;  %v2392_v63 = vsel %vm4934_vm15, %v2352_v62, %v2384_v38 }
 0x45d   : > { %v5534_v5 = vmax.f32 %v5385_v25, %v2392_v63  ;;  %v2369_v46 = vpop.permute.xlu1 %2368 }
 0x45e   : > { %v2387_v34 = vsel %vm6473_vm1, 0.0, %v2369_v46  ;;  %2420 = vrot.lane.b32.xlu0 %v5529_v11, %s3852_s22  ;;  %v2367_v45 = vpop.permute.xlu0 %2366 }
 0x45f   : > { %v2395_v21 = vsel %vm4934_vm15, %v2355_v61, %v2387_v34  ;;  %v2386_v19 = vsel %vm6473_vm1, 0.0, %v2367_v45  ;;  %2418 = vrot.lane.b32.xlu1 %v5534_v5, %s3852_s22 }
 0x460   : > { %v5547_v25 = vmax.f32 %v5406_v4, %v2395_v21  ;;  %v2394_v20 = vsel %vm4934_vm15, %v2354_v12, %v2386_v19 }
 0x461   : > { %v5552_v37 = vmax.f32 %v5414_v7, %v2394_v20  ;;  %v2373_v50 = vpop.permute.xlu1 %2372 }
 0x462   : > { %v2389_v17 = vsel %vm6473_vm1, 0.0, %v2373_v50  ;;  %2424 = vrot.lane.b32.xlu0 %v5547_v25, %s3852_s22  ;;  %v2371_v28 = vpop.permute.xlu0 %2370 }
 0x463   : > { %v2397_v4 = vsel %vm4934_vm15, %v2357_v48, %v2389_v17  ;;  %v2388_v39 = vsel %vm6473_vm1, 0.0, %v2371_v28  ;;  %2422 = vrot.lane.b32.xlu1 %v5552_v37, %s3852_s22 }
 0x464   : > { %v5565_v7 = vmax.f32 %v5434_v41, %v2397_v4  ;;  %v2396_v58 = vsel %vm4934_vm15, %v2356_v16, %v2388_v39  ;;  %v2199_v41 = vsel %vm6475_vm5, %v5487_v14, 0.0  ;;  %vm5607_vm15 = vcmp.eq.s32.totalorder %v2478_v36, 0 }
 0x465   : > { %v5570_v49 = vmax.f32 %v5439_v3, %v2396_v58 }
 0x466   : > { %2428 = vrot.lane.b32.xlu0 %v5565_v7, %s3852_s22 }
 0x467   : > { %2426 = vrot.lane.b32.xlu1 %v5570_v49, %s3852_s22 }
 0x46a   : > { %2448 = vrot.lane.b32.xlu0 %v5511_v26, %s3851_s7 }
 0x46b   : > { %2446 = vrot.lane.b32.xlu1 %v5516_v33, %s3851_s7 }
 0x46e   : > { %2452 = vrot.lane.b32.xlu0 %v5529_v11, %s3851_s7 }
 0x46f   : > { %2450 = vrot.lane.b32.xlu1 %v5534_v5, %s3851_s7 }
 0x472   : > { %2456 = vrot.lane.b32.xlu0 %v5547_v25, %s3851_s7 }
 0x473   : > { %2454 = vrot.lane.b32.xlu1 %v5552_v37, %s3851_s7  ;;  %v5590_v3 = vpop.permute.xlu0 %2219 }
 0x474   : > { %v2224_v52 = vmul.f32 %v5590_v3, %v2199_v41 }
 0x476   : > { %2460 = vrot.lane.b32.xlu0 %v5565_v7, %s3851_s7  ;;  %v5596_v51 = vadd.f32 %v2224_v52, %v5479_v31 }
 0x477   : > { %2458 = vrot.lane.b32.xlu1 %v5570_v49, %s3851_s7 }
 0x478   : > { %6666 = vst [vmem:[#allocation136_spill] sm:$0xff] %v5596_v51 }
 0x47b   : > { %3639 = vrot.lane.b32.xlu1 %v3853_v1, %s3854_s15 }
 0x4cc   : > { %v2417_v14 = vpop.permute.xlu0 %2416 }
 0x4cd   : > { %v2415_v29 = vpop.permute.xlu1 %2414  ;;  %v2439_v9 = vsel %vm6475_vm5, %v2417_v14, 0.0 }
 0x4ce   : > { %v2438_v15 = vsel %vm6475_vm5, %v2415_v29, 0.0 }
 0x4d0   : > { %v2421_v47 = vpop.permute.xlu0 %2420 }
 0x4d1   : > { %v2419_v55 = vpop.permute.xlu1 %2418  ;;  %v2441_v24 = vsel %vm6475_vm5, %v2421_v47, 0.0 }
 0x4d2   : > { %v2440_v2 = vsel %vm6475_vm5, %v2419_v55, 0.0 }
 0x4d4   : > { %v2425_v23 = vpop.permute.xlu0 %2424 }
 0x4d5   : > { %v2423_v40 = vpop.permute.xlu1 %2422  ;;  %v2443_v61 = vsel %vm6475_vm5, %v2425_v23, 0.0  ;;  %vm6677_vm5 = vmmov %vm6676_vm6 }
 0x4d8   : > { %v5603_v18 = vpop.permute.xlu0 %2428 }
 0x4d9   : > { %v5605_v31 = vpop.permute.xlu1 %2426 }
 0x4dc   : > { %v2449_v8 = vpop.permute.xlu0 %2448 }
 0x4dd   : > { %v2471_v6 = vsel %vm1859_vm0, 0.0, %v2449_v8  ;;  %v2447_v53 = vpop.permute.xlu1 %2446 }
 0x4de   : > { %v2483_v57 = vsel %vm5607_vm15, %v2439_v9, %v2471_v6  ;;  %v2470_v10 = vsel %vm1859_vm0, 0.0, %v2447_v53 }
 0x4df   : > { %v2491_v43 = vmax.f32 %v5511_v26, %v2483_v57  ;;  %v2482_v60 = vsel %vm5607_vm15, %v2438_v15, %v2470_v10 }
 0x4e0   : > { %v2490_v0 = vmax.f32 %v5516_v33, %v2482_v60  ;;  %v2453_v13 = vpop.permute.xlu0 %2452 }
 0x4e1   : > { %v2507_v42 = vrot.slane %v2491_v43, 1  ;;  %v2473_v56 = vsel %vm1859_vm0, 0.0, %v2453_v13  ;;  %v2451_v22 = vpop.permute.xlu1 %2450  ;;  %v2531_v63 = vrot.slane %v2491_v43, 7 }
 0x4e2   : > { %v2506_v62 = vrot.slane %v2490_v0, 1  ;;  %v2530_v32 = vrot.slane %v2490_v0, 7  ;;  %v2485_v38 = vsel %vm5607_vm15, %v2441_v24, %v2473_v56  ;;  %v2472_v26 = vsel %vm1859_vm0, 0.0, %v2451_v22  ;;  %v6682_v22 = vld [vmem:[#allocation22_spill] sm:$0xff] }
 0x4e3   : > { %v2493_v46 = vmax.f32 %v5529_v11, %v2485_v38  ;;  %v2484_v33 = vsel %vm5607_vm15, %v2440_v2, %v2472_v26 }
 0x4e4   : > { %v2508_v34 = vsel %vm6670_vm13, %v2506_v62, %v2507_v42  ;;  %v2552_v45 = vsel %vm6671_vm4, 0.0, %v2530_v32  ;;  %v2492_v12 = vmax.f32 %v5534_v5, %v2484_v33  ;;  %v2457_v21 = vpop.permute.xlu0 %2456  ;;  %v2532_v39 = vsel %vm6673_vm10, %v2530_v32, %v2531_v63  ;;  %vm6674_vm4 = vmmov %vm6670_vm13 }
 0x4e5   : > { %v2554_v20 = vsel %vm4470_vm9, %v2508_v34, %v2552_v45  ;;  %v2511_v50 = vrot.slane %v2493_v46, 1  ;;  %v2535_v48 = vrot.slane %v2493_v46, 7  ;;  %v2475_v17 = vsel %vm1859_vm0, 0.0, %v2457_v21  ;;  %v2455_v11 = vpop.permute.xlu1 %2454  ;;  %vm6675_vm1 = vmmov %vm6674_vm4 }
 0x4e6   : > { %v2509_v28 = vrot.slane %v2492_v12, 1  ;;  %v2533_v16 = vrot.slane %v2492_v12, 7  ;;  %v2487_v4 = vsel %vm5607_vm15, %v2443_v61, %v2475_v17  ;;  %v2562_v58 = vmax.f32 %v2490_v0, %v2554_v20 }
 0x4e7   : > { %v2528_v41 = vsel %vm6670_vm13, %v2511_v50, 0.0  ;;  %v5644_v14 = vmax.f32 %v5547_v25, %v2487_v4  ;;  %v2474_v29 = vsel %vm1859_vm0, 0.0, %v2455_v11  ;;  %vm6679_vm10 = vcmask 97280  }
 0x4e8   : > { %v2510_v5 = vsel %vm6674_vm4, %v2507_v42, %v2509_v28  ;;  %v2512_v52 = vsel %vm6675_vm1, %v2509_v28, %v2511_v50  ;;  %v2534_v47 = vsel %vm6676_vm6, %v2531_v63, %v2533_v16  ;;  %v2536_v55 = vsel %vm6677_vm5, %v2533_v16, %v2535_v48  ;;  %v2461_v2 = vpop.permute.xlu0 %2460  ;;  %vm6687_vm4 = vmmov %vm6679_vm10 }
 0x4e9   : > { %v2555_v35 = vsel %vm4452_vm7, %v2510_v5, %v2532_v39  ;;  %v2442_v36 = vsel %vm6679_vm10, %v2423_v40, 0.0  ;;  %v2556_v9 = vsel %vm4466_vm8, %v2512_v52, %v2534_v47  ;;  %v2557_v53 = vsel %vm4628_vm12, %v2528_v41, %v2536_v55  ;;  %v2459_v34 = vpop.permute.xlu1 %2458 }
 0x4ea   : > { %v2563_v15 = vmax.f32 %v2491_v43, %v2555_v35  ;;  %v2602_v25 = vrot.slane %v2562_v58, 6  ;;  %v5656_v57 = vmax.f32 %v2492_v12, %v2556_v9  ;;  %v5658_v10 = vmax.f32 %v2493_v46, %v2557_v53 }
 0x4eb   : > { %v2486_v60 = vsel %vm5607_vm15, %v2442_v36, %v2474_v29  ;;  %v2514_v24 = vrot.slane %v5644_v14, 1  ;;  %v2679_v62 = vand.u32 4, %v6682_v22  ;;  %v2578_v32 = vrot.slane %v2562_v58, 2 }
 0x4ec   : > { %v2579_v0 = vrot.slane %v2563_v15, 2  ;;  %v2603_v13 = vrot.slane %v2563_v15, 6  ;;  %v2494_v40 = vmax.f32 %v5552_v37, %v2486_v60  ;;  %v2581_v42 = vrot.slane %v5656_v57, 2 }
 0x4ed   : > { %v2583_v56 = vrot.slane %v5658_v10, 2  ;;  %v2605_v43 = vrot.slane %v5656_v57, 6  ;;  %vm6683_vm5 = vcmask 1041408   ;;  %vm6684_vm6 = vcmask 1045504  }
 0x4ee   : > { %v2604_v38 = vsel %vm6683_vm5, %v2602_v25, %v2603_v13  ;;  %v2513_v26 = vrot.slane %v2494_v40, 1  ;;  %v2537_v63 = vrot.slane %v2494_v40, 7  ;;  %v2582_v46 = vsel %vm6684_vm6, %v2579_v0, %v2581_v42  ;;  %vm6685_vm1 = vmmov %vm6684_vm6 }
 0x4ef   : > { %v2584_v37 = vsel %vm6685_vm1, %v2581_v42, %v2583_v56  ;;  %vm6686_vm13 = vmmov %vm6683_vm5  ;;  %v2477_v61 = vsel %vm1859_vm0, 0.0, %v2461_v2  ;;  %v2445_v45 = vsel %vm6687_vm4, %v5603_v18, 0.0  ;;  %v2627_v21 = vsel %vm4994_vm14, %v2582_v46, %v2604_v38 }
 0x4f0   : > { %v2606_v33 = vsel %vm6686_vm13, %v2603_v13, %v2605_v43  ;;  %vm6690_vm10 = vcmask 1046528   ;;  %vm6691_vm5 = vmmov %vm6687_vm4  ;;  %v2635_v28 = vmax.f32 %v2563_v15, %v2627_v21  ;;  %v2489_v39 = vsel %vm5607_vm15, %v2445_v45, %v2477_v61 }
 0x4f1   : > { %v2628_v50 = vsel %vm4979_vm11, %v2584_v37, %v2606_v33  ;;  %v2515_v48 = vsel %vm6690_vm10, %v2513_v26, %v2514_v24  ;;  %v2444_v17 = vsel %vm6691_vm5, %v5605_v31, 0.0  ;;  %vm6692_vm6 = vmmov %vm6685_vm1  ;;  %v2476_v41 = vsel %vm1859_vm0, 0.0, %v2459_v34 }
 0x4f2   : > { %v2580_v11 = vsel %vm6692_vm6, %v2578_v32, %v2579_v0  ;;  %v5688_v16 = vmax.f32 %v5656_v57, %v2628_v50  ;;  %vm6693_vm1 = vmmov %vm6686_vm13  ;;  %vm6694_vm13 = vcmask 1040384   ;;  %v2651_v5 = vrot.slane %v2635_v28, 4 }
 0x4f3   : > { %v2624_v4 = vsel %vm6693_vm1, 0.0, %v2602_v25  ;;  %v2553_v18 = vsel %vm6694_vm13, 0.0, %v2537_v63  ;;  %v2538_v52 = vrot.slane %v5644_v14, 7  ;;  %v2497_v29 = vmax.f32 %v5565_v7, %v2489_v39  ;;  %vm6700_vm4 = vmmov %vm6694_vm13 }
 0x4f4   : > { %v2558_v31 = vsel %vm4470_vm9, %v2515_v48, %v2553_v18  ;;  %v2653_v47 = vrot.slane %v5688_v16, 4  ;;  %v2488_v35 = vsel %vm5607_vm15, %v2444_v17, %v2476_v41  ;;  %v2626_v9 = vsel %vm5017_vm3, %v2580_v11, %v2624_v4  ;;  %vm6698_vm9 = vmmov %vm6690_vm10 }
 0x4f5   : > { %v2566_v55 = vmax.f32 %v2494_v40, %v2558_v31  ;;  %v2518_v53 = vrot.slane %v2497_v29, 1  ;;  %v2542_v15 = vrot.slane %v2497_v29, 7  ;;  %v2496_v25 = vmax.f32 %v5570_v49, %v2488_v35  ;;  %vm6701_vm10 = vmmov %vm6698_vm9 }
 0x4f6   : > { %v2634_v60 = vmax.f32 %v2562_v58, %v2626_v9  ;;  %vm5705_vm0 = vcmp.eq.s32.totalorder %v2679_v62, 0  ;;  %v2607_v7 = vrot.slane %v5658_v10, 6  ;;  %vm6699_vm15 = vcmask 1043456   ;;  %vm6702_vm5 = vmmov %vm6698_vm9 }
 0x4f7   : > { %v2529_v19 = vsel %vm6698_vm9, %v2518_v53, 0.0  ;;  %v2516_v13 = vrot.slane %v2496_v25, 1  ;;  %v2540_v40 = vrot.slane %v2496_v25, 7  ;;  %v5714_v30 = vsel %vm6699_vm15, %v2651_v5, %v2653_v47  ;;  %vm6703_vm6 = vmmov %vm6700_vm4 }
 0x4f8   : > { %v2539_v2 = vsel %vm6700_vm4, %v2537_v63, %v2538_v52  ;;  %v2609_v42 = vrot.slane %v2566_v55, 6  ;;  %v2650_v49 = vrot.slane %v2634_v60, 4  ;;  %vm6704_vm1 = vmmov %vm6700_vm4  ;;  %v2585_v34 = vrot.slane %v2566_v55, 2 }
 0x4f9   : > { %v2517_v58 = vsel %vm6701_vm10, %v2514_v24, %v2516_v13  ;;  %v2519_v22 = vsel %vm6702_vm5, %v2516_v13, %v2518_v53  ;;  %v2541_v62 = vsel %vm6703_vm6, %v2538_v52, %v2540_v40  ;;  %v2543_v32 = vsel %vm6704_vm1, %v2540_v40, %v2542_v15  ;;  %vm6705_vm13 = vmmov %vm6699_vm15  ;;  %v3501_v53 = vld [vmem:[%s6366_s3 + $0x38] ss:$0 sm:$0xff] }
 0x4fa   : > { %v2559_v38 = vsel %vm4452_vm7, %v2517_v58, %v2539_v2  ;;  %v2560_v26 = vsel %vm4466_vm8, %v2519_v22, %v2541_v62  ;;  %v2561_v46 = vsel %vm4628_vm12, %v2529_v19, %v2543_v32  ;;  %v2652_v63 = vsel %vm6705_vm13, %v2650_v49, %v2651_v5  ;;  %v6719_v2 = vld [vmem:[#allocation70_spill] sm:$0xff]  ;;  %v3502_v32 = vld [vmem:[%s6366_s3 + $0x39] ss:$0 sm:$0xff] }
 0x4fb   : > { %v2567_v37 = vmax.f32 %v5644_v14, %v2559_v38  ;;  %v2568_v24 = vmax.f32 %v2496_v25, %v2560_v26  ;;  %v2569_v33 = vmax.f32 %v2497_v29, %v2561_v46  ;;  %v2695_v61 = vsel %vm5705_vm0, %v5714_v30, %v2652_v63  ;;  %v3506_v38 = vld [vmem:[%s6366_s3 + $0x3b] ss:$0 sm:$0xff] }
 0x4fc   : > { %v5732_v45 = vmax.f32 %v2635_v28, %v2695_v61  ;;  %vm6706_vm7 = vcmask 1045504   ;;  %vm6707_vm8 = vcmask 1041408   ;;  %v3513_v61 = vld [vmem:[%s6366_s3 + $0x3e] ss:$0 sm:$0xff] }
 0x4fd   : > { %v2586_v23 = vrot.slane %v2567_v37, 2  ;;  %v2588_v21 = vrot.slane %v2568_v24, 2  ;;  %v2590_v8 = vrot.slane %v2569_v33, 2  ;;  %v2610_v50 = vrot.slane %v2567_v37, 6  ;;  %vm6708_vm12 = vmmov %vm6707_vm8 }
 0x4fe   : > { %v2600_v6 = vsel %vm6706_vm7, %v2583_v56, 0.0  ;;  %v2608_v14 = vsel %vm6707_vm8, %v2605_v43, %v2607_v7  ;;  %v2612_v48 = vrot.slane %v2568_v24, 6  ;;  %2732 = vrot.lane.b32.xlu0 %v5732_v45, %s3854_s15  ;;  %v2625_v17 = vsel %vm6708_vm12, 0.0, %v2609_v42  ;;  %vm6709_vm9 = vmmov %vm6706_vm7  ;;  %v3497_v56 = vld [vmem:[%s6366_s3 + $0x36] ss:$0 sm:$0xff] }
 0x4ff   : > { %v2587_v11 = vsel %vm6709_vm9, %v2585_v34, %v2586_v23  ;;  %vm6710_vm15 = vmmov %vm6706_vm7  ;;  %v2614_v18 = vrot.slane %v2569_v33, 6  ;;  %v2629_v9 = vsel %vm5104_vm2, %v2600_v6, %v2608_v14  ;;  %v3518_v34 = vld [vmem:[%s6366_s3 + $0x41] ss:$0 sm:$0xff]  ;;  %v3530_v6 = vld [vmem:[%s6366_s3 + $0x47] ss:$0 sm:$0xff] }
 0x500   : > { %v2589_v28 = vsel %vm6710_vm15, %v2586_v23, %v2588_v21  ;;  %vm6711_vm4 = vmmov %vm6706_vm7  ;;  %v2630_v39 = vsel %vm5017_vm3, %v2587_v11, %v2625_v17  ;;  %v2637_v20 = vmax.f32 %v5658_v10, %v2629_v9  ;;  %v3498_v10 = vld [vmem:[%s6366_s3 + $0x37] ss:$0 sm:$0xff]  ;;  %v3522_v23 = vld [vmem:[%s6366_s3 + $0x43] ss:$0 sm:$0xff]  ;;  %vm6726_vm7 = vcmask 7168  }
 0x501   : > { %v2591_v4 = vsel %vm6711_vm4, %v2588_v21, %v2590_v8  ;;  %vm6712_vm10 = vmmov %vm6707_vm8  ;;  %v2638_v52 = vmax.f32 %v2566_v55, %v2630_v39  ;;  %v3517_v21 = vld [vmem:[%s6366_s3 + $0x40] ss:$0 sm:$0xff]  ;;  %v3525_v14 = vld [vmem:[%s6366_s3 + $0x44] ss:$0 sm:$0xff]  ;;  %vm6742_vm15 = vcmask 121856  }
 0x502   : > { %v2611_v57 = vsel %vm6712_vm10, %v2609_v42, %v2610_v50  ;;  %vm6713_vm5 = vmmov %vm6707_vm8  ;;  %2761 = vperm.xlu0 %3636, %v3497_v56   ;;  %v2680_v42 = vand.u32 4, %v6719_v2  ;;  %v2655_v49 = vrot.slane %v2637_v20, 4  ;;  %v3531_v17 = vld [vmem:[%s6367_s4] ss:$0 sm:$0xff]  ;;  %v3533_v11 = vld [vmem:[%s6367_s4 + $0x2] ss:$0 sm:$0xff] }
 0x503   : > { %v2613_v43 = vsel %vm6713_vm5, %v2610_v50, %v2612_v48  ;;  %v2631_v41 = vsel %vm4994_vm14, %v2589_v28, %v2611_v57  ;;  %v2657_v15 = vrot.slane %v2638_v52, 4  ;;  %vm6715_vm6 = vmmov %vm6711_vm4  ;;  %v3521_v50 = vld [vmem:[%s6366_s3 + $0x42] ss:$0 sm:$0xff]  ;;  %v3535_v28 = vld [vmem:[%s6367_s4 + $0x4] ss:$0 sm:$0xff] }
 0x504   : > { %v2632_v5 = vsel %vm4979_vm11, %v2591_v4, %v2613_v43  ;;  %v2639_v31 = vmax.f32 %v2567_v37, %v2631_v41  ;;  %v2601_v36 = vsel %vm6715_vm6, %v2590_v8, 0.0  ;;  %vm6716_vm3 = vmmov %vm6713_vm5  ;;  %v3526_v8 = vld [vmem:[%s6366_s3 + $0x45] ss:$0 sm:$0xff]  ;;  %v3532_v4 = vld [vmem:[%s6367_s4 + $0x1] ss:$0 sm:$0xff] }
 0x505   : > { %v2640_v29 = vmax.f32 %v2568_v24, %v2632_v5  ;;  %v2615_v12 = vsel %vm6716_vm3, %v2612_v48, %v2614_v18  ;;  %vm6717_vm11 = vmmov %vm6705_vm13  ;;  %v3514_v24 = vld [vmem:[%s6366_s3 + $0x3f] ss:$0 sm:$0xff]  ;;  %v3529_v48 = vld [vmem:[%s6366_s3 + $0x46] ss:$0 sm:$0xff]  ;;  %vm2742_vm13 = vcmask 64512  }
 0x506   : > { %v2658_v25 = vrot.slane %v2639_v31, 4  ;;  %2786 = vperm.xlu0 %3636, %v3501_v53   ;;  %vm6718_vm14 = vmmov %vm6717_vm11  ;;  %v2633_v19 = vsel %vm5104_vm2, %v2601_v36, %v2615_v12  ;;  %vm5781_vm2 = vcmp.eq.s32.totalorder %v2680_v42, 0  ;;  %v3537_v56 = vld [vmem:[%s6367_s4 + $0x6] ss:$0 sm:$0xff]  ;;  %v3534_v57 = vld [vmem:[%s6367_s4 + $0x3] ss:$0 sm:$0xff] }
 0x507   : > { %v2660_v60 = vrot.slane %v2640_v29, 4  ;;  %v2641_v58 = vmax.f32 %v2569_v33, %v2633_v19  ;;  %v3509_v33 = vld [vmem:[%s6366_s3 + $0x3c] ss:$0 sm:$0xff]  ;;  %v3536_v43 = vld [vmem:[%s6367_s4 + $0x5] ss:$0 sm:$0xff]  ;;  %vm6728_vm8 = vmmov %vm6726_vm7 }
 0x508   : > { %v2659_v7 = vsel %vm6718_vm14, %v2657_v15, %v2658_v25  ;;  %v3538_v18 = vld [vmem:[%s6367_s4 + $0x7] ss:$0 sm:$0xff]  ;;  %v6729_v42 = vld [vmem:[#allocation28_spill] sm:$0xff]  ;;  %vm6730_vm12 = vmmov %vm6726_vm7 }
 0x509   : > { %v2661_v55 = vsel %vm6717_vm11, %v2658_v25, %v2660_v60  ;;  %v2662_v62 = vrot.slane %v2641_v58, 4  ;;  %v6731_v58 = vld [vmem:[#allocation33_spill] sm:$0xff]  ;;  %vm6732_vm9 = vmmov %vm6726_vm7 }
 0x50a   : > { %v2699_v13 = vsel %vm5705_vm0, %v2661_v55, %v2659_v7  ;;  %3644 = vrot.lane.b32.xlu0 %v3853_v1, %s3855_s10  ;;  %vm6722_vm0 = vmmov %vm6717_vm11 }
 0x50b   : > { %v5771_v40 = vmax.f32 %v2639_v31, %v2699_v13  ;;  %v2656_v22 = vsel %vm6722_vm0, %v2653_v47, %v2655_v49  ;;  %vm6723_vm1 = vmmov %vm6722_vm0  ;;  %v5904_v31 = vpop.permute.xlu1 %3639  ;;  %v476_v49 = vsel %vm6730_vm12, 0.0, %v6729_v42 }
 0x50c   : > { %v2696_v26 = vsel %vm5781_vm2, %v2656_v22, %v5714_v30  ;;  %v2663_v46 = vsel %vm6723_vm1, %v2660_v60, %v2662_v62  ;;  %v3505_v30 = vld [vmem:[%s6366_s3 + $0x3a] ss:$0 sm:$0xff]  ;;  %v6733_v62 = vld [vmem:[#allocation27_spill] sm:$0xff]  ;;  %vm6744_vm4 = vmmov %vm6742_vm15 }
 0x50d   : > { %2736 = vrot.lane.b32.xlu1 %v5771_v40, %s3854_s15  ;;  %v5801_v47 = vmax.f32 %v5688_v16, %v2696_v26  ;;  %v2700_v63 = vsel %vm5781_vm2, %v2663_v46, %v2661_v55  ;;  %v3510_v16 = vld [vmem:[%s6366_s3 + $0x3d] ss:$0 sm:$0xff]  ;;  %v6727_v55 = vld [vmem:[#allocation32_spill] sm:$0xff]  ;;  %vm6746_vm10 = vmmov %vm6744_vm4 }
 0x50e   : > { %2807 = vrot.lane.b32.xlu0 %v5771_v40, %s3855_s10  ;;  %v5812_v37 = vmax.f32 %v2640_v29, %v2700_v63  ;;  %v6725_v60 = vld [vmem:[#allocation29_spill] sm:$0xff]  ;;  %v475_v7 = vsel %vm6728_vm8, 0.0, %v6727_v55  ;;  %v6735_v46 = vld [vmem:[#allocation20_spill] sm:$0xff]  ;;  %v6736_v63 = vld [vmem:[#allocation31_spill] sm:$0xff] }
 0x50f   : > { %v478_v20 = vsel %vm6726_vm7, 0.0, %v6725_v60  ;;  %vm6750_vm5 = vmmov %vm6744_vm4 }
 0x510   : > { %6724 = vst [vmem:[#allocation137_spill] sm:$0xff] %v5812_v37  ;;  %vm6753_vm6 = vmmov %vm6726_vm7 }
 0x511   : > { %2765 = vperm.xlu1 %3637, %v3498_v10   ;;  %v477_v10 = vsel %vm6732_vm9, 0.0, %v6731_v58  ;;  %v6755_v58 = vld [vmem:[#allocation42_spill] sm:$0xff]  ;;  %vm6756_vm3 = vmmov %vm6753_vm6 }
 0x512   : > { %2835 = vperm.xlu0 %3636, %v3506_v38   ;;  %v6734_v38 = vld [vmem:[#allocation30_spill] sm:$0xff]  ;;  %vm6758_vm11 = vmmov %vm6756_vm3 }
 0x513   : > { %v500_v26 = vmul.f32 %v6734_v38, %v476_v49  ;;  %vm6760_vm14 = vmmov %vm6756_vm3 }
 0x514   : > { %vm6764_vm2 = vmmov %vm6744_vm4 }
 0x515   : > { %2790 = vperm.xlu1 %3637, %v3502_v32   ;;  %v502_v32 = vmul.f32 %v6733_v62, %v478_v20  ;;  %vm6767_vm0 = vmmov %vm6764_vm2 }
 0x516   : > { %2852 = vrot.lane.b32.xlu0 %v5801_v47, %s3854_s15  ;;  %vm6770_vm1 = vmmov %vm6767_vm0 }
 0x517   : > { %vm6772_vm7 = vmmov %vm6767_vm0 }
 0x518   : > { %vm6775_vm8 = vmmov %vm6756_vm3 }
 0x519   : > { %2803 = vrot.lane.b32.xlu1 %v5732_v45, %s3855_s10  ;;  %vm6777_vm12 = vmmov %vm6756_vm3 }
 0x51a   : > { %2856 = vrot.lane.b32.xlu0 %v5812_v37, %s3854_s15  ;;  %vm6779_vm9 = vmmov %vm6756_vm3 }
 0x51d   : > { %2831 = vperm.xlu1 %3637, %v3505_v30   ;;  %v524_v30 = vmul.f32 %v6736_v63, %v6735_v46  ;;  %v6759_v46 = vld [vmem:[#allocation44_spill] sm:$0xff] }
 0x51e   : > { %2884 = vperm.xlu0 %3636, %v3510_v16   ;;  %v6737_v16 = vld [vmem:[#allocation18_spill] sm:$0xff] }
 0x521   : > { %2850 = vrot.lane.b32.xlu1 %v5732_v45, %s3854_s15 }
 0x522   : > { %2913 = vperm.xlu0 %3636, %v3514_v24   ;;  %v525_v24 = vmul.f32 %v6736_v63, %v6737_v16  ;;  %v593_v63 = vsel %vm6760_vm14, 0.0, %v6759_v46 }
 0x524   : > { %v529_v60 = vadd.f32 %v525_v24, %v500_v26 }
 0x525   : > { %2854 = vrot.lane.b32.xlu1 %v5771_v40, %s3854_s15 }
 0x526   : > { %2926 = vrot.lane.b32.xlu0 %v5801_v47, %s3855_s10 }
 0x529   : > { %2880 = vperm.xlu1 %3637, %v3509_v33   ;;  %v499_v33 = vmul.f32 %v6734_v38, %v475_v7  ;;  %v6754_v7 = vld [vmem:[#allocation45_spill] sm:$0xff] }
 0x52a   : > { %2930 = vrot.lane.b32.xlu0 %v5812_v37, %s3855_s10 }
 0x52b   : > { %v528_v20 = vadd.f32 %v524_v30, %v499_v33 }
 0x52d   : > { %2909 = vperm.xlu1 %3637, %v3513_v61  }
 0x52e   : > { %2958 = vperm.xlu0 %3636, %v3518_v34   ;;  %v501_v34 = vmul.f32 %v6733_v62, %v477_v10  ;;  %v591_v10 = vsel %vm6756_vm3, 0.0, %v6755_v58 }
 0x52f   : > { %v616_v30 = vmul.f32 %v6754_v7, %v591_v10 }
 0x531   : > { %2924 = vrot.lane.b32.xlu1 %v5732_v45, %s3855_s10 }
 0x532   : > { %3023 = vperm.xlu0 %3636, %v3522_v23   ;;  %v6738_v23 = vld [vmem:[#allocation21_spill] sm:$0xff] }
 0x535   : > { %2928 = vrot.lane.b32.xlu1 %v5771_v40, %s3855_s10 }
 0x536   : > { %3052 = vperm.xlu0 %3636, %v3526_v8  }
 0x539   : > { %2954 = vperm.xlu1 %3637, %v3517_v21   ;;  %v6739_v21 = vld [vmem:[#allocation34_spill] sm:$0xff] }
 0x53a   : > { %3097 = vperm.xlu0 %3636, %v3530_v6   ;;  %v526_v8 = vmul.f32 %v6739_v21, %v6738_v23  ;;  %v6762_v23 = vld [vmem:[#allocation47_spill] sm:$0xff] }
 0x53c   : > { %v530_v42 = vadd.f32 %v526_v8, %v501_v34  ;;  %v3658_v34 = vld [vmem:[%s4099_s11] sm:$0xff] }
 0x53d   : > { %3019 = vperm.xlu1 %3637, %v3521_v50   ;;  %v6740_v50 = vld [vmem:[#allocation19_spill] sm:$0xff] }
 0x53e   : > { %3649 = vrot.lane.b32.xlu0 %v3853_v1, %s3854_s15  ;;  %v527_v6 = vmul.f32 %v6739_v21, %v6740_v50  ;;  %v644_v21 = vmul.f32 %v3658_v34, %v6762_v23 }
 0x540   : > { %v531_v49 = vadd.f32 %v527_v6, %v502_v32  ;;  %v6761_v32 = vld [vmem:[#allocation46_spill] sm:$0xff]  ;;  %v3659_v6 = vld [vmem:[%s4099_s11 + $0x8] sm:$0xff] }
 0x541   : > { %3048 = vperm.xlu1 %3637, %v3525_v14   ;;  %v6741_v14 = vld [vmem:[#allocation35_spill] sm:$0xff] }
 0x542   : > { %3157 = vperm.xlu0 %3636, %v3531_v17  }
 0x545   : > { %3093 = vperm.xlu1 %3637, %v3529_v48   ;;  %v545_v48 = vsel %vm6742_vm15, %v6741_v14, 0.0  ;;  %v645_v14 = vmul.f32 %v3659_v6, %v6762_v23  ;;  %v6776_v23 = vld [vmem:[#allocation56_spill] sm:$0xff]  ;;  %vm6781_vm15 = vmmov %vm6756_vm3 }
 0x546   : > { %3165 = vperm.xlu0 %3636, %v3533_v11   ;;  %vm6803_vm3 = vmmov %vm6767_vm0 }
 0x549   : > { %2989 = vrot.lane.b32.xlu1 %v5801_v47, %s3854_s15 }
 0x54a   : > { %3173 = vperm.xlu0 %3636, %v3535_v28   ;;  %v6743_v28 = vld [vmem:[#allocation36_spill] sm:$0xff] }
 0x54d   : > { %2993 = vrot.lane.b32.xlu1 %v5812_v37, %s3854_s15 }
 0x54e   : > { %3181 = vperm.xlu0 %3636, %v3537_v56   ;;  %v6745_v56 = vld [vmem:[#allocation37_spill] sm:$0xff] }
 0x551   : > { %3161 = vperm.xlu1 %3637, %v3532_v4   ;;  %v546_v4 = vsel %vm6744_vm4, %v6743_v28, 0.0  ;;  %vm6792_vm4 = vcmask 15360  }
 0x552   : > { %3063 = vrot.lane.b32.xlu0 %v5801_v47, %s3855_s10  ;;  %vm6809_vm14 = vmmov %vm6792_vm4 }
 0x555   : > { %3169 = vperm.xlu1 %3637, %v3534_v57   ;;  %v547_v57 = vsel %vm6746_vm10, %v6745_v56, 0.0  ;;  %v6765_v56 = vld [vmem:[#allocation48_spill] sm:$0xff]  ;;  %vm6795_vm10 = vmmov %vm6767_vm0 }
 0x556   : > { %3067 = vrot.lane.b32.xlu0 %v5812_v37, %s3855_s10 }
 0x559   : > { %3177 = vperm.xlu1 %3637, %v3536_v43   ;;  %v6747_v43 = vld [vmem:[#allocation39_spill] sm:$0xff] }
 0x55d   : > { %3185 = vperm.xlu1 %3637, %v3538_v18   ;;  %v570_v18 = vmul.f32 %v6747_v43, %v545_v48  ;;  %v6763_v48 = vld [vmem:[#allocation49_spill] sm:$0xff] }
 0x55e   : > { %v664_v28 = vsel %vm6764_vm2, %v6763_v48, 0.0  ;;  %vm6811_vm2 = vmmov %vm6767_vm0 }
 0x55f   : > { %v574_v26 = vadd.f32 %v570_v18, %v528_v20 }
 0x561   : > { %3654 = vrot.lane.b32.xlu1 %v3853_v1, %s3855_s10 }
 0x570   : > { %v2733_v39 = vpop.permute.xlu0 %2732 }
 0x571   : > { %v2744_v41 = vsel %vm2742_vm13, 0.0, %v2733_v39 }
 0x57f   : > { %v2737_v53 = vpop.permute.xlu1 %2736 }
 0x580   : > { %v2746_v1 = vsel %vm2742_vm13, 0.0, %v2737_v53  ;;  %v6751_v53 = vld [vmem:[#allocation40_spill] sm:$0xff] }
 0x581   : > { %v5901_v5 = vpop.permute.xlu0 %2761 }
 0x582   : > { %v2769_v52 = vmul.f32 %v5901_v5, %v2744_v41  ;;  %v6749_v41 = vld [vmem:[#allocation38_spill] sm:$0xff] }
 0x585   : > { %v5906_v29 = vpop.permute.xlu0 %2786 }
 0x586   : > { %v2794_v35 = vmul.f32 %v5906_v29, %v5732_v45 }
 0x588   : > { %v5910_v9 = vadd.f32 %v2794_v35, %v2769_v52  ;;  %v548_v52 = vsel %vm6750_vm5, %v6749_v41, 0.0  ;;  %v571_v35 = vmul.f32 %v6747_v43, %v546_v4  ;;  %v3660_v4 = vld [vmem:[%s4099_s11 + $0x10] sm:$0xff]  ;;  %v3661_v43 = vld [vmem:[%s4099_s11 + $0x18] sm:$0xff]  ;;  %v6766_v41 = vld [vmem:[#allocation50_spill] sm:$0xff]  ;;  %s6196_s11 = scalar_lea.vmem [#allocation8], %s3385_s14  ;;  %s3548_s14 = sshll.u32 %s3830_s21, 11 }
 0x589   : > { %v5912_v15 = vpop.permute.xlu0 %3644  ;;  %v573_v55 = vmul.f32 %v6751_v53, %v548_v52  ;;  %v647_v18 = vmul.f32 %v3661_v43, %v6765_v56  ;;  %v665_v52 = vsel %vm6767_vm0, %v6766_v41, 0.0  ;;  %v6783_v43 = vld [vmem:[#allocation60_spill] sm:$0xff]  ;;  %vm6799_vm5 = vmmov %vm6767_vm0  ;;  %vm6819_vm0 = vcmask 113664   ;;  %s3237_s10 = sshll.u32 %s6196_s11, 4  ;;  %s6306_s8 = scalar_lea.hbm %s6368_s5, %s3548_s14  ;;  %s6309_s10 = int_to_ptr.vmem [resolvable:$true] %s3237_s10 }
 0x58a   : > { %v575_v24 = vadd.f32 %v571_v35, %v529_v60  ;;  %v6768_v35 = vld [vmem:[#allocation53_spill] sm:$0xff]  ;;  %s3222_s21 = scalar_lea.sflag [#allocation4], %s4093_s29  ;;  %s3752_s13 = scalar_lea.vmem %s6309_s10, 2048 }
 0x58b   : > { %v577_v8 = vadd.f32 %v573_v55, %v531_v49  ;;  %v690_v20 = vmul.f32 %v6768_v35, %v665_v52  ;;  %v6771_v49 = vld [vmem:[#allocation52_spill] sm:$0xff]  ;;  %v6784_v52 = vld [vmem:[#allocation23_spill] sm:$0xff]  ;;  %p3753_p0 = scmp.ne.s32.totalorder %s6309_s10, %s3752_s13  ;;  %p3759_p12 = scmp.lt.s32.totalorder %s6309_s10, %s3757_s20 }
 0x58c   : > { %v667_v58 = vsel %vm6772_vm7, %v6771_v49, 0.0  ;;  %vm6823_vm7 = vmmov %vm6819_vm0  ;;  %p3760_p4 = scmp.lt.s32.totalorder %s3758_s1, %s3752_s13 }
 0x58d   : > { %v2808_v12 = vpop.permute.xlu0 %2807  ;;  %p3754_p8 = pnand %p3753_p0, %p6888_p6 }
 0x58e   : > { %v2816_v13 = vsel %vm2742_vm13, %v2808_v12, 0.0  ;;  %v6752_v12 = vld [vmem:[#allocation41_spill] sm:$0xff]  ;;  %p3761_p10 = por %p3760_p4, %p3759_p12 }
 0x58f   : > { %p3755_p9 = pneg %p3754_p8 }
 0x590   : > { %v5915_v36 = vpop.permute.xlu1 %2765 }
 0x591   : > { %v2771_v25 = vmul.f32 %v5915_v36, %v2746_v1  ;;  %v5925_v2 = vpop.permute.xlu0 %2835  ;;  %v572_v1 = vmul.f32 %v6751_v53, %v547_v57  ;;  %v646_v57 = vmul.f32 %v3660_v4, %v6765_v56  ;;  %v689_v53 = vmul.f32 %v6768_v35, %v664_v28  ;;  %v6785_v35 = vld [vmem:[#allocation61_spill] sm:$0xff]  ;;  %p3762_p13 = pnand %p3761_p10, %p3755_p9 }
 0x592   : > { %v2841_v22 = vmul.f32 %v5925_v2, %v2816_v13 }
 0x593   : > { %v576_v33 = vadd.f32 %v572_v1, %v530_v42 }
 0x594   : > { %v5922_v19 = vpop.permute.xlu1 %2790 }
 0x595   : > { %v2796_v0 = vmul.f32 %v5922_v19, %v5771_v40  ;;  %v5948_v11 = vpop.permute.xlu0 %2852 }
 0x597   : > { %v2800_v61 = vadd.f32 %v2796_v0, %v2771_v25  ;;  %v590_v25 = vsel %vm6753_vm6, 0.0, %v6752_v12  ;;  %v6757_v0 = vld [vmem:[#allocation43_spill] sm:$0xff]  ;;  %vm6801_vm6 = vmmov %vm6792_vm4 }
 0x598   : > { %v2804_v17 = vpop.permute.xlu1 %2803  ;;  %v615_v13 = vmul.f32 %v6754_v7, %v590_v25  ;;  %v620_v25 = vadd.f32 %v616_v30, %v575_v24 }
 0x599   : > { %v5955_v39 = vadd.f32 %v2841_v22, %v2800_v61  ;;  %v592_v22 = vsel %vm6758_vm11, 0.0, %v6757_v0  ;;  %v5971_v38 = vpop.permute.xlu0 %2856  ;;  %v618_v61 = vmul.f32 %v6761_v32, %v593_v63  ;;  %v6773_v0 = vld [vmem:[#allocation54_spill] sm:$0xff]  ;;  %v2814_v30 = vsel %vm2742_vm13, %v2804_v17, 0.0  ;;  %v6782_v17 = vld [vmem:[#allocation59_spill] sm:$0xff]  ;;  %vm6807_vm11 = vmmov %vm6792_vm4 }
 0x59a   : > { %v617_v16 = vmul.f32 %v6761_v32, %v592_v22  ;;  %v619_v50 = vadd.f32 %v615_v13, %v574_v26  ;;  %v6769_v13 = vld [vmem:[#allocation51_spill] sm:$0xff]  ;;  %v649_v10 = vadd.f32 %v645_v14, %v620_v25  ;;  %v692_v26 = vmul.f32 %v6773_v0, %v667_v58  ;;  %v6780_v14 = vld [vmem:[#allocation58_spill] sm:$0xff]  ;;  %v6786_v25 = vld [vmem:[#allocation24_spill] sm:$0xff] }
 0x59b   : > { %6748 = vst [vmem:[#allocation138_spill] sm:$0xff] %v5955_v39  ;;  %v622_v55 = vadd.f32 %v618_v61, %v577_v8  ;;  %v666_v42 = vsel %vm6770_vm1, %v6769_v13, 0.0  ;;  %v6774_v61 = vld [vmem:[#allocation55_spill] sm:$0xff]  ;;  %v749_v48 = vsel %vm6781_vm15, 0.0, %v6780_v14  ;;  %v2863_v13 = vsel %vm2742_vm13, 0.0, %v5948_v11  ;;  %v6790_v58 = vld [vmem:[#allocation26_spill] sm:$0xff]  ;;  %vm6821_vm1 = vmmov %vm6819_vm0 }
 0x59c   : > { %v5969_v62 = vpop.permute.xlu1 %2831  ;;  %v621_v60 = vadd.f32 %v617_v16, %v576_v33  ;;  %v648_v7 = vadd.f32 %v644_v21, %v619_v50  ;;  %v691_v22 = vmul.f32 %v6773_v0, %v666_v42  ;;  %v694_v33 = vadd.f32 %v690_v20, %v649_v10  ;;  %v6778_v50 = vld [vmem:[#allocation57_spill] sm:$0xff]  ;;  %v6791_v0 = vld [vmem:[#allocation91_spill] sm:$0xff]  ;;  %vm6833_vm15 = vmmov %vm6792_vm4 }
 0x59d   : > { %v5993_v12 = vpop.permute.xlu0 %2884  ;;  %v651_v63 = vadd.f32 %v647_v18, %v622_v55  ;;  %v746_v34 = vsel %vm6775_vm8, 0.0, %v6774_v61  ;;  %v747_v21 = vsel %vm6777_vm12, 0.0, %v6776_v23  ;;  %v2839_v8 = vmul.f32 %v5969_v62, %v2814_v30  ;;  %v6787_v20 = vld [vmem:[#allocation25_spill] sm:$0xff]  ;;  %v6788_v55 = vld [vmem:[#allocation62_spill] sm:$0xff]  ;;  %v6796_v14 = vld [vmem:[#allocation87_spill] sm:$0xff] }
 0x59e   : > { %v650_v46 = vadd.f32 %v646_v57, %v621_v60  ;;  %v693_v32 = vadd.f32 %v689_v53, %v648_v7  ;;  %v748_v6 = vsel %vm6779_vm9, 0.0, %v6778_v50  ;;  %v771_v28 = vmul.f32 %v6782_v17, %v746_v34  ;;  %v6794_v50 = vld [vmem:[#allocation63_spill] sm:$0xff]  ;;  %vm6825_vm8 = vmmov %vm6819_vm0 }
 0x59f   : > { %v772_v4 = vmul.f32 %v6782_v17, %v747_v21  ;;  %v696_v57 = vadd.f32 %v692_v26, %v651_v63  ;;  %v773_v18 = vmul.f32 %v6783_v43, %v748_v6  ;;  %v774_v41 = vmul.f32 %v6783_v43, %v749_v48  ;;  %vm6829_vm12 = vmmov %vm6792_vm4 }
 0x5a0   : > { %v5991_v1 = vpop.permute.xlu1 %2850  ;;  %v695_v56 = vadd.f32 %v691_v22, %v650_v46  ;;  %v800_v53 = vmul.f32 %v6785_v35, %v6784_v52  ;;  %v801_v60 = vmul.f32 %v6785_v35, %v6786_v25  ;;  %v802_v7 = vmul.f32 %v6788_v55, %v6787_v20  ;;  %v6806_v35 = vld [vmem:[#allocation93_spill] sm:$0xff]  ;;  %v6808_v25 = vld [vmem:[#allocation94_spill] sm:$0xff]  ;;  %vm6831_vm9 = vmmov %vm6792_vm4 }
 0x5a1   : > { %v6005_v24 = vpop.permute.xlu0 %2913  ;;  %v803_v10 = vmul.f32 %v6788_v55, %v6790_v58  ;;  %v1087_v22 = vsel %vm6792_vm4, 0.0, %v6791_v0  ;;  %v2843_v26 = vadd.f32 %v2839_v8, %v5910_v9  ;;  %v775_v63 = vadd.f32 %v771_v28, %v693_v32  ;;  %v6798_v32 = vld [vmem:[#allocation64_spill] sm:$0xff]  ;;  %v6810_v20 = vld [vmem:[#allocation66_spill] sm:$0xff] }
 0x5a2   : > { %v776_v30 = vadd.f32 %v772_v4, %v694_v33  ;;  %v777_v61 = vadd.f32 %v773_v18, %v695_v56  ;;  %v778_v34 = vadd.f32 %v774_v41, %v696_v57  ;;  %v820_v6 = vsel %vm6795_vm10, %v6794_v50, 0.0  ;;  %v6800_v28 = vld [vmem:[#allocation92_spill] sm:$0xff]  ;;  %v6802_v56 = vld [vmem:[#allocation65_spill] sm:$0xff]  ;;  %vm6844_vm10 = vmmov %vm6819_vm0 }
 0x5a3   : > { %v804_v11 = vadd.f32 %v800_v53, %v775_v63  ;;  %v1112_v48 = vmul.f32 %v6796_v14, %v1087_v22  ;;  %v821_v33 = vsel %vm6799_vm5, %v6798_v32, 0.0  ;;  %v1088_v4 = vsel %vm6801_vm6, 0.0, %v6800_v28  ;;  %v6804_v18 = vld [vmem:[#allocation76_spill] sm:$0xff]  ;;  %v6805_v41 = vld [vmem:[#allocation89_spill] sm:$0xff]  ;;  %vm6847_vm5 = vmmov %vm6819_vm0 }
 0x5a4   : > { %v6003_v16 = vpop.permute.xlu1 %2854  ;;  %v805_v21 = vadd.f32 %v801_v60, %v776_v30  ;;  %v6047_v9 = vadd.f32 %v802_v7, %v777_v61  ;;  %v6049_v8 = vadd.f32 %v803_v10, %v778_v34  ;;  %v822_v57 = vsel %vm6803_vm3, %v6802_v56, 0.0  ;;  %v6812_v7 = vld [vmem:[#allocation67_spill] sm:$0xff]  ;;  %v6813_v10 = vld [vmem:[#allocation78_spill] sm:$0xff]  ;;  %v6814_v22 = vld [vmem:[#allocation80_spill] sm:$0xff] }
 0x5a5   : > { %v6030_v49 = vpop.permute.xlu0 %2926  ;;  %v1137_v52 = vmul.f32 %v6805_v41, %v6804_v18  ;;  %v1089_v53 = vsel %vm6807_vm11, 0.0, %v6806_v35  ;;  %v1090_v60 = vsel %vm6809_vm14, 0.0, %v6808_v25  ;;  %v823_v55 = vsel %vm6811_vm2, %v6810_v20, 0.0  ;;  %v6816_v63 = vld [vmem:[#allocation81_spill] sm:$0xff]  ;;  %v6817_v28 = vld [vmem:[#allocation88_spill] sm:$0xff]  ;;  %v6818_v56 = vld [vmem:[#allocation95_spill] sm:$0xff] }
 0x5a6   : > { %6789 = vst [vmem:[#allocation139_spill] sm:$0xff] %v6030_v49  ;;  %v846_v58 = vmul.f32 %v6812_v7, %v821_v33  ;;  %v1138_v0 = vmul.f32 %v6805_v41, %v6813_v10  ;;  %v1113_v34 = vmul.f32 %v6796_v14, %v1088_v4  ;;  %v1115_v33 = vmul.f32 %v6817_v28, %v1090_v60  ;;  %v6820_v41 = vld [vmem:[#allocation96_spill] sm:$0xff]  ;;  %v6822_v25 = vld [vmem:[#allocation97_spill] sm:$0xff]  ;;  %v6826_v4 = vld [vmem:[#allocation99_spill] sm:$0xff] }
 0x5a7   : > { %v1141_v61 = vadd.f32 %v1137_v52, %v1112_v48  ;;  %v1158_v18 = vsel %vm6819_vm0, %v6818_v56, 0.0  ;;  %v1159_v35 = vsel %vm6821_vm1, %v6820_v41, 0.0  ;;  %v1160_v20 = vsel %vm6823_vm7, %v6822_v25, 0.0  ;;  %v6824_v48 = vld [vmem:[#allocation98_spill] sm:$0xff]  ;;  %v6827_v10 = vld [vmem:[#allocation100_spill] sm:$0xff]  ;;  %v6832_v41 = vld [vmem:[#allocation103_spill] sm:$0xff] }
 0x5a8   : > { %v6028_v42 = vpop.permute.xlu1 %2880  ;;  %v1161_v14 = vsel %vm6825_vm8, %v6824_v48, 0.0  ;;  %v1183_v52 = vmul.f32 %v6826_v4, %v1158_v18  ;;  %v1142_v56 = vadd.f32 %v1138_v0, %v1113_v34  ;;  %v1205_v25 = vsel %vm6833_vm15, 0.0, %v6832_v41  ;;  %vm6849_vm6 = vmmov %vm6819_vm0 }
 0x5a9   : > { %v2888_v46 = vmul.f32 %v6028_v42, %v2863_v13  ;;  %v6045_v43 = vpop.permute.xlu0 %2930  ;;  %v845_v13 = vmul.f32 %v6812_v7, %v820_v6  ;;  %v1114_v6 = vmul.f32 %v6817_v28, %v1089_v53  ;;  %v1184_v7 = vmul.f32 %v6826_v4, %v1159_v35  ;;  %v6835_v4 = vld [vmem:[#allocation106_spill] sm:$0xff]  ;;  %vm6852_vm3 = vmmov %vm6819_vm0 }
 0x5aa   : > { %6797 = vst [vmem:[#allocation134_spill] sm:$0xff] %v6045_v43  ;;  %v1185_v53 = vmul.f32 %v6827_v10, %v1160_v20  ;;  %v1186_v60 = vmul.f32 %v6827_v10, %v1161_v14  ;;  %v1230_v10 = vmul.f32 %v6835_v4, %v1205_v25  ;;  %v6836_v43 = vld [vmem:[#allocation68_spill] sm:$0xff]  ;;  %v1187_v0 = vadd.f32 %v1183_v52, %v1141_v61  ;;  %vm6855_vm11 = vmmov %vm6792_vm4 }
 0x5ab   : > { %v6038_v23 = vadd.f32 %v2888_v46, %v2843_v26  ;;  %v6815_v26 = vld [vmem:[#allocation90_spill] sm:$0xff]  ;;  %v1188_v34 = vadd.f32 %v1184_v7, %v1142_v56  ;;  %v6108_v49 = vadd.f32 %v845_v13, %v804_v11  ;;  %v6840_v13 = vld [vmem:[#allocation75_spill] sm:$0xff]  ;;  %v6842_v61 = vld [vmem:[#allocation108_spill] sm:$0xff]  ;;  %vm3204_vm8 = vcmask 130048  }
 0x5ac   : > { %v6043_v17 = vpop.permute.xlu1 %2909  ;;  %v1139_v46 = vmul.f32 %v6815_v26, %v6814_v22  ;;  %v1140_v30 = vmul.f32 %v6815_v26, %v6816_v63  ;;  %v6828_v22 = vld [vmem:[#allocation101_spill] sm:$0xff]  ;;  %v6830_v63 = vld [vmem:[#allocation102_spill] sm:$0xff]  ;;  %vm6859_vm14 = vmmov %vm6792_vm4  ;;  %vm6880_vm15 = vcmask 97280  }
 0x5ad   : > { %6793 = vst [vmem:[#allocation135_spill] sm:$0xff] %v6038_v23  ;;  %v6076_v32 = vpop.permute.xlu0 %2958  ;;  %v1203_v26 = vsel %vm6829_vm12, 0.0, %v6828_v22  ;;  %v1204_v28 = vsel %vm6831_vm9, 0.0, %v6830_v63  ;;  %v6834_v23 = vld [vmem:[#allocation105_spill] sm:$0xff]  ;;  %v6105_v22 = vadd.f32 %v846_v58, %v805_v21  ;;  %v847_v63 = vmul.f32 %v6836_v43, %v822_v57  ;;  %v6839_v21 = vld [vmem:[#allocation107_spill] sm:$0xff]  ;;  %v6846_v56 = vld [vmem:[#allocation110_spill] sm:$0xff] }
 0x5ae   : > { %v1228_v48 = vmul.f32 %v6834_v23, %v1203_v26  ;;  %v1229_v18 = vmul.f32 %v6834_v23, %v1204_v28  ;;  %v1143_v20 = vadd.f32 %v1139_v46, %v1114_v6  ;;  %v1144_v14 = vadd.f32 %v1140_v30, %v1115_v33  ;;  %v6837_v28 = vld [vmem:[#allocation104_spill] sm:$0xff]  ;;  %v6838_v6 = vld [vmem:[#allocation74_spill] sm:$0xff]  ;;  %v6843_v7 = vld [vmem:[#allocation109_spill] sm:$0xff] }
 0x5af   : > { %v848_v26 = vmul.f32 %v6836_v43, %v823_v55  ;;  %v1206_v37 = vsel %vm6792_vm4, 0.0, %v6837_v28  ;;  %v1257_v58 = vmul.f32 %v6839_v21, %v6838_v6  ;;  %v1258_v43 = vmul.f32 %v6839_v21, %v6840_v13  ;;  %v6841_v55 = vld [vmem:[#allocation77_spill] sm:$0xff]  ;;  %v6854_v28 = vld [vmem:[#allocation115_spill] sm:$0xff]  ;;  %vm6863_vm2 = vmmov %vm6819_vm0 }
 0x5b0   : > { %v6074_v50 = vpop.permute.xlu1 %2924  ;;  %v1189_v41 = vadd.f32 %v1185_v53, %v1143_v20  ;;  %v1190_v23 = vadd.f32 %v1186_v60, %v1144_v14  ;;  %v1232_v39 = vadd.f32 %v1228_v48, %v1187_v0  ;;  %v1233_v46 = vadd.f32 %v1229_v18, %v1188_v34  ;;  %v6845_v60 = vld [vmem:[#allocation79_spill] sm:$0xff]  ;;  %v6850_v20 = vld [vmem:[#allocation113_spill] sm:$0xff]  ;;  %v6853_v34 = vld [vmem:[#allocation114_spill] sm:$0xff] }
 0x5b1   : > { %v6102_v35 = vpop.permute.xlu0 %3023  ;;  %v1231_v30 = vmul.f32 %v6835_v4, %v1206_v37  ;;  %v1259_v52 = vmul.f32 %v6842_v61, %v6841_v55  ;;  %v1277_v53 = vsel %vm6844_vm10, %v6843_v7, 0.0  ;;  %v1260_v37 = vmul.f32 %v6842_v61, %v6845_v60  ;;  %v6848_v48 = vld [vmem:[#allocation111_spill] sm:$0xff]  ;;  %v6851_v4 = vld [vmem:[#allocation112_spill] sm:$0xff]  ;;  %vm6867_vm0 = vmmov %vm6792_vm4 }
 0x5b2   : > { %v1234_v11 = vadd.f32 %v1230_v10, %v1189_v41  ;;  %v1278_v25 = vsel %vm6847_vm5, %v6846_v56, 0.0  ;;  %v1279_v18 = vsel %vm6849_vm6, %v6848_v48, 0.0  ;;  %v1302_v14 = vmul.f32 %v6850_v20, %v1277_v53  ;;  %v6856_v61 = vld [vmem:[#allocation119_spill] sm:$0xff]  ;;  %vm6870_vm7 = vmmov %vm6867_vm0 }
 0x5b3   : > { %v1280_v10 = vsel %vm6852_vm3, %v6851_v4, 0.0  ;;  %v1303_v0 = vmul.f32 %v6850_v20, %v1278_v25  ;;  %v1304_v41 = vmul.f32 %v6853_v34, %v1279_v18  ;;  %v1359_v6 = vsel %vm6855_vm11, 0.0, %v6854_v28  ;;  %v6858_v4 = vld [vmem:[#allocation116_spill] sm:$0xff]  ;;  %vm6876_vm12 = vmmov %vm6821_vm1 }
 0x5b4   : > { %v6100_v51 = vpop.permute.xlu1 %2928  ;;  %v1235_v21 = vadd.f32 %v1231_v30, %v1190_v23  ;;  %v1261_v13 = vadd.f32 %v1257_v58, %v1232_v39  ;;  %v1305_v55 = vmul.f32 %v6853_v34, %v1280_v10  ;;  %v1384_v7 = vmul.f32 %v6856_v61, %v1359_v6  ;;  %v6860_v23 = vld [vmem:[#allocation83_spill] sm:$0xff]  ;;  %v6861_v30 = vld [vmem:[#allocation121_spill] sm:$0xff]  ;;  %vm6878_vm9 = vmmov %vm6821_vm1 }
 0x5b5   : > { %v6118_v57 = vpop.permute.xlu0 %3052  ;;  %v1262_v53 = vadd.f32 %v1258_v43, %v1233_v46  ;;  %v1263_v48 = vadd.f32 %v1259_v52, %v1234_v11  ;;  %v1360_v25 = vsel %vm6859_vm14, 0.0, %v6858_v4  ;;  %v6148_v18 = vadd.f32 %v847_v63, %v6047_v9  ;;  %v6862_v6 = vld [vmem:[#allocation123_spill] sm:$0xff]  ;;  %v6864_v52 = vld [vmem:[#allocation84_spill] sm:$0xff] }
 0x5b6   : > { %v1264_v20 = vadd.f32 %v1260_v37, %v1235_v21  ;;  %v1306_v28 = vadd.f32 %v1302_v14, %v1261_v13  ;;  %v1385_v39 = vmul.f32 %v6856_v61, %v1360_v25  ;;  %v1413_v58 = vmul.f32 %v6861_v30, %v6860_v23  ;;  %v6865_v63 = vld [vmem:[#allocation127_spill] sm:$0xff]  ;;  %v6866_v13 = vld [vmem:[#allocation117_spill] sm:$0xff]  ;;  %v6871_v4 = vld [vmem:[#allocation120_spill] sm:$0xff] }
 0x5b7   : > { %v1307_v10 = vadd.f32 %v1303_v0, %v1262_v53  ;;  %v1308_v34 = vadd.f32 %v1304_v41, %v1263_v48  ;;  %v6156_v46 = vadd.f32 %v848_v26, %v6049_v8  ;;  %v1414_v9 = vmul.f32 %v6861_v30, %v6864_v52  ;;  %v6868_v41 = vld [vmem:[#allocation124_spill] sm:$0xff] }
 0x5b8   : > { %v6116_v33 = vpop.permute.xlu1 %2954  ;;  %v1309_v11 = vadd.f32 %v1305_v55, %v1264_v20  ;;  %v1388_v43 = vadd.f32 %v1384_v7, %v1306_v28  ;;  %v1361_v0 = vsel %vm6867_vm0, 0.0, %v6866_v13  ;;  %v1434_v61 = vsel %vm6821_vm1, %v6868_v41, 0.0  ;;  %v6869_v55 = vld [vmem:[#allocation118_spill] sm:$0xff] }
 0x5b9   : > { %v6143_v56 = vpop.permute.xlu0 %3097  ;;  %v3641_v8 = vunpack.i.l.bf16 %v5904_v31  ;;  %v3646_v26 = vunpack.i.l.bf16 %v5912_v15  ;;  %v1362_v7 = vsel %vm6870_vm7, 0.0, %v6869_v55  ;;  %v1389_v53 = vadd.f32 %v1385_v39, %v1307_v10 }
 0x5ba   : > { %6857 = vst [vmem:[#allocation129_spill] sm:$0xff] %v6143_v56  ;;  %v1433_v56 = vsel %vm6863_vm2, %v6862_v6, 0.0  ;;  %v1417_v48 = vadd.f32 %v1413_v58, %v1388_v43  ;;  %v1386_v25 = vmul.f32 %v6871_v4, %v1361_v0  ;;  %v1387_v20 = vmul.f32 %v6871_v4, %v1362_v7  ;;  %v6873_v4 = vld [vmem:[#allocation122_spill] sm:$0xff] }
 0x5bb   : > { %v1458_v37 = vmul.f32 %v6865_v63, %v1433_v56  ;;  %v1459_v56 = vmul.f32 %v6865_v63, %v1434_v61  ;;  %v3642_v28 = vunpack.i.h.bf16 %v5904_v31  ;;  %v3647_v23 = vunpack.i.h.bf16 %v5912_v15 }
 0x5bc   : > { %v6141_v60 = vpop.permute.xlu1 %3019  ;;  %v1418_v30 = vadd.f32 %v1414_v9, %v1389_v53  ;;  %v2793_v6 = vmul.f32 0.0, %v5906_v29  ;;  %v2743_v58 = vsel %vm2742_vm13, 0.0, %v3641_v8  ;;  %v2813_v10 = vsel %vm2742_vm13, %v3646_v26, 0.0 }
 0x5bd   : > { %v6163_v21 = vpop.permute.xlu0 %3649  ;;  %v1462_v39 = vadd.f32 %v1458_v37, %v1417_v48  ;;  %v2768_v31 = vmul.f32 %v5901_v5, %v2743_v58  ;;  %v2795_v15 = vmul.f32 0.0, %v5922_v19  ;;  %v2838_v29 = vmul.f32 %v5969_v62, %v2813_v10 }
 0x5be   : > { %v1463_v9 = vadd.f32 %v1459_v56, %v1418_v30  ;;  %v2745_v0 = vsel %vm2742_vm13, 0.0, %v3642_v28  ;;  %v2815_v41 = vsel %vm2742_vm13, %v3647_v23, 0.0  ;;  %v2862_v37 = vsel %vm2742_vm13, 0.0, %v5991_v1  ;;  %v6874_v28 = vld [vmem:[#allocation86_spill] sm:$0xff] }
 0x5bf   : > { %v2864_v61 = vsel %vm2742_vm13, 0.0, %v6003_v16  ;;  %v2797_v5 = vadd.f32 %v2793_v6, %v2768_v31  ;;  %v2770_v19 = vmul.f32 %v5915_v36, %v2745_v0  ;;  %v2840_v62 = vmul.f32 %v5925_v2, %v2815_v41  ;;  %v6872_v36 = vld [vmem:[#allocation85_spill] sm:$0xff] }
 0x5c0   : > { %v6161_v14 = vpop.permute.xlu1 %3048  ;;  %v2887_v1 = vmul.f32 %v6028_v42, %v2862_v37  ;;  %v1391_v8 = vadd.f32 %v1387_v20, %v1309_v11  ;;  %v2889_v48 = vmul.f32 %v5993_v12, %v2864_v61  ;;  %v2916_v56 = vmul.f32 %v6043_v17, %v5732_v45  ;;  %v6875_v11 = vld [vmem:[#allocation125_spill] sm:$0xff] }
 0x5c1   : > { %v3158_v13 = vpop.permute.xlu0 %3157  ;;  %v2799_v7 = vadd.f32 %v2795_v15, %v2770_v19  ;;  %v2842_v53 = vadd.f32 %v2838_v29, %v2797_v5  ;;  %v1415_v2 = vmul.f32 %v6873_v4, %v6872_v36  ;;  %v1416_v42 = vmul.f32 %v6873_v4, %v6874_v28 }
 0x5c2   : > { %v3188_v43 = vadd.f32 %v3158_v13, %v6108_v49  ;;  %v3189_v63 = vadd.f32 %v3158_v13, %v6105_v22  ;;  %v1390_v22 = vadd.f32 %v1386_v25, %v1308_v34  ;;  %v2936_v23 = vsel %vm2742_vm13, %v6074_v50, 0.0 }
 0x5c3   : > { %v1435_v25 = vsel %vm6876_vm12, %v6875_v11, 0.0  ;;  %v2844_v20 = vadd.f32 %v2840_v62, %v2799_v7  ;;  %v2891_v45 = vadd.f32 %v2887_v1, %v2842_v53  ;;  %v2961_v30 = vmul.f32 %v6116_v33, %v2936_v23  ;;  %v6882_v11 = vld [vmem:[#allocation137_spill] sm:$0xff] }
 0x5c4   : > { %v6179_v52 = vpop.permute.xlu1 %3093  ;;  %3205 = vst.msk [vmem:[%s6196_s11] sm:$0xff] %vm3204_vm8, %v3188_v43  ;;  %3206 = vst.msk [vmem:[%s6196_s11 + $0x8] sm:$0xff] %vm3204_vm8, %v3189_v63  ;;  %v2938_v58 = vsel %vm2742_vm13, %v6100_v51, 0.0  ;;  %v2918_v31 = vmul.f32 %v6005_v24, %v5771_v40  ;;  %v2200_v37 = vsel %vm6880_vm15, %v5502_v44, 0.0  ;;  %v1420_v62 = vadd.f32 %v1416_v42, %v1391_v8 }
 0x5c5   : > { %v3166_v16 = vpop.permute.xlu0 %3165  ;;  %v2893_v63 = vadd.f32 %v2889_v48, %v2844_v20  ;;  %v2920_v15 = vadd.f32 %v2916_v56, %v2891_v45  ;;  %v2963_v40 = vmul.f32 %v6076_v32, %v2938_v58  ;;  %v2865_v44 = vsel %vm2742_vm13, 0.0, %v5971_v38  ;;  %v6885_v58 = vld [vmem:[#allocation136_spill] sm:$0xff] }
 0x5c6   : > { %v3192_v26 = vadd.f32 %v3166_v16, %v1462_v39  ;;  %v3193_v55 = vadd.f32 %v3166_v16, %v1463_v9  ;;  %v6877_v39 = vld [vmem:[#allocation126_spill] sm:$0xff]  ;;  %v6879_v9 = vld [vmem:[#allocation128_spill] sm:$0xff]  ;;  %v2890_v16 = vmul.f32 %v5993_v12, %v2865_v44  ;;  %v3055_v38 = vmul.f32 %v6161_v14, %v5801_v47 }
 0x5c7   : > { %v1436_v50 = vsel %vm6878_vm9, %v6877_v39, 0.0  ;;  %v1460_v0 = vmul.f32 %v6879_v9, %v1435_v25  ;;  %v2965_v61 = vadd.f32 %v2961_v30, %v2920_v15  ;;  %v3651_v48 = vunpack.i.l.bf16 %v6163_v21 }
 0x5c8   : > { %v2990_v49 = vpop.permute.xlu1 %2989  ;;  %3209 = vst.msk [vmem:[%s6196_s11 + $0x20] sm:$0xff] %vm3204_vm8, %v3192_v26  ;;  %3210 = vst.msk [vmem:[%s6196_s11 + $0x28] sm:$0xff] %vm3204_vm8, %v3193_v55  ;;  %v1461_v41 = vmul.f32 %v6879_v9, %v1436_v50  ;;  %v2922_v26 = vadd.f32 %v2918_v31, %v2893_v63  ;;  %v2919_v25 = vmul.f32 %v6005_v24, %v6882_v11 }
 0x5c9   : > { %v3001_v34 = vsel %vm2742_vm13, 0.0, %v2990_v49  ;;  %v3174_v13 = vpop.permute.xlu0 %3173  ;;  %v2917_v20 = vmul.f32 %v6043_v17, %v5801_v47  ;;  %v3057_v24 = vmul.f32 %v6118_v57, %v6882_v11  ;;  %v3002_v50 = vsel %vm2742_vm13, 0.0, %v3651_v48 }
 0x5ca   : > { %v3196_v10 = vadd.f32 %v3174_v13, %v5498_v59  ;;  %v3197_v43 = vadd.f32 %v3174_v13, %v5500_v54  ;;  %v3026_v29 = vmul.f32 %v6141_v60, %v3001_v34  ;;  %v1419_v59 = vadd.f32 %v1415_v2, %v1390_v22  ;;  %v6881_v2 = vld [vmem:[#allocation138_spill] sm:$0xff] }
 0x5cb   : > { %v2225_v54 = vmul.f32 %v5590_v3, %v2200_v37  ;;  %v1465_v7 = vadd.f32 %v1461_v41, %v1420_v62  ;;  %v2967_v8 = vadd.f32 %v2963_v40, %v2922_v26  ;;  %v2894_v28 = vadd.f32 %v2890_v16, %v6881_v2  ;;  %v6887_v41 = vld [vmem:[#allocation135_spill] sm:$0xff] }
 0x5cc   : > { %v2994_v6 = vpop.permute.xlu1 %2993  ;;  %3213 = vst.msk [vmem:[%s6196_s11 + $0x40] sm:$0xff] %vm3204_vm8, %v3196_v10  ;;  %3214 = vst.msk [vmem:[%s6196_s11 + $0x48] sm:$0xff] %vm3204_vm8, %v3197_v43  ;;  %v3030_v22 = vadd.f32 %v3026_v29, %v2965_v61  ;;  %v1464_v55 = vadd.f32 %v1460_v0, %v1419_v59  ;;  %v6886_v29 = vld [vmem:[#allocation129_spill] sm:$0xff]  ;;  %v2921_v37 = vadd.f32 %v2917_v20, %v6887_v41 }
 0x5cd   : > { %v3003_v51 = vsel %vm2742_vm13, 0.0, %v2994_v6  ;;  %v6242_v19 = vpop.permute.xlu0 %3181  ;;  %v2229_v12 = vadd.f32 %v2225_v54, %v5481_v27  ;;  %v6883_v27 = vld [vmem:[#allocation139_spill] sm:$0xff]  ;;  %v2923_v0 = vadd.f32 %v2919_v25, %v2894_v28  ;;  %v3027_v59 = vmul.f32 %v6141_v60, %v3002_v50 }
 0x5ce   : > { %v3028_v3 = vmul.f32 %v6102_v35, %v3003_v51  ;;  %v3059_v23 = vadd.f32 %v3055_v38, %v3030_v22  ;;  %v2937_v45 = vsel %vm2742_vm13, %v6883_v27, 0.0  ;;  %v3056_v60 = vmul.f32 0.0, %v6161_v14 }
 0x5cf   : > { %v2962_v31 = vmul.f32 %v6116_v33, %v2937_v45 }
 0x5d0   : > { %v3162_v5 = vpop.permute.xlu1 %3161  ;;  %v3032_v42 = vadd.f32 %v3028_v3, %v2967_v8 }
 0x5d1   : > { %v3190_v1 = vadd.f32 %v3162_v5, %v6148_v18  ;;  %v3191_v49 = vadd.f32 %v3162_v5, %v6156_v46  ;;  %v3652_v18 = vunpack.i.h.bf16 %v6163_v21  ;;  %v3064_v53 = vpop.permute.xlu0 %3063  ;;  %v6884_v21 = vld [vmem:[#allocation134_spill] sm:$0xff]  ;;  %v2966_v61 = vadd.f32 %v2962_v31, %v2921_v37 }
 0x5d2   : > { %v3075_v4 = vsel %vm2742_vm13, %v3064_v53, 0.0  ;;  %v2939_v30 = vsel %vm2742_vm13, %v6884_v21, 0.0  ;;  %v3061_v15 = vadd.f32 %v3057_v24, %v3032_v42 }
 0x5d3   : > { %3207 = vst.msk [vmem:[%s6196_s11 + $0x10] sm:$0xff] %vm3204_vm8, %v3190_v1  ;;  %3208 = vst.msk [vmem:[%s6196_s11 + $0x18] sm:$0xff] %vm3204_vm8, %v3191_v49  ;;  %v3100_v34 = vmul.f32 %v6179_v52, %v3075_v4  ;;  %v2964_v6 = vmul.f32 %v6076_v32, %v2939_v30  ;;  %v3004_v13 = vsel %vm2742_vm13, 0.0, %v3652_v18  ;;  %v3031_v44 = vadd.f32 %v3027_v59, %v2966_v61 }
 0x5d4   : > { %v3170_v46 = vpop.permute.xlu1 %3169  ;;  %v3029_v51 = vmul.f32 %v6102_v35, %v3004_v13  ;;  %v3058_v35 = vmul.f32 0.0, %v6118_v57 }
 0x5d5   : > { %v3194_v56 = vadd.f32 %v3170_v46, %v1464_v55  ;;  %v3195_v36 = vadd.f32 %v3170_v46, %v1465_v7  ;;  %v3104_v17 = vadd.f32 %v3100_v34, %v3059_v23  ;;  %v3068_v39 = vpop.permute.xlu0 %3067  ;;  %v2968_v40 = vadd.f32 %v2964_v6, %v2923_v0 }
 0x5d6   : > { %v3077_v63 = vsel %vm2742_vm13, %v3068_v39, 0.0  ;;  %v3060_v3 = vadd.f32 %v3056_v60, %v3031_v44 }
 0x5d7   : > { %3211 = vst.msk [vmem:[%s6196_s11 + $0x30] sm:$0xff] %vm3204_vm8, %v3194_v56  ;;  %3212 = vst.msk [vmem:[%s6196_s11 + $0x38] sm:$0xff] %vm3204_vm8, %v3195_v36  ;;  %v3200_v32 = vadd.f32 %v6242_v19, %v3104_v17  ;;  %v3102_v9 = vmul.f32 %v6886_v29, %v3077_v63  ;;  %v3033_v62 = vadd.f32 %v3029_v51, %v2968_v40 }
 0x5d8   : > { %v3178_v47 = vpop.permute.xlu1 %3177 }
 0x5d9   : > { %v3198_v10 = vadd.f32 %v3178_v47, %v6885_v58  ;;  %v3199_v43 = vadd.f32 %v3178_v47, %v2229_v12  ;;  %3217 = vst.msk [vmem:[%s6196_s11 + $0x60] sm:$0xff] %vm3204_vm8, %v3200_v32  ;;  %v3106_v54 = vadd.f32 %v3102_v9, %v3061_v15  ;;  %v3062_v55 = vadd.f32 %v3058_v35, %v3033_v62 }
 0x5db   : > { %3215 = vst.msk [vmem:[%s6196_s11 + $0x50] sm:$0xff] %vm3204_vm8, %v3198_v10  ;;  %3216 = vst.msk [vmem:[%s6196_s11 + $0x58] sm:$0xff] %vm3204_vm8, %v3199_v43 }
 0x5dc   : > { %v3186_v33 = vpop.permute.xlu1 %3185 }
 0x5dd   : > { %v3202_v5 = vadd.f32 %v3186_v33, %v3106_v54 }
 0x5df   : > { %3219 = vst.msk [vmem:[%s6196_s11 + $0x70] sm:$0xff] %vm3204_vm8, %v3202_v5 }
 0x5e0   : > { %v3655_v1 = vpop.permute.xlu1 %3654 }
 0x5e1   : > { %v3657_v49 = vunpack.i.h.bf16 %v3655_v1  ;;  %v3656_v16 = vunpack.i.l.bf16 %v3655_v1 }
 0x5e3   : > { %v3078_v26 = vsel %vm2742_vm13, %v3657_v49, 0.0  ;;  %v3076_v22 = vsel %vm2742_vm13, %v3656_v16, 0.0 }
 0x5e4   : > { %v3101_v7 = vmul.f32 %v6179_v52, %v3076_v22  ;;  %v3103_v8 = vmul.f32 %v6886_v29, %v3078_v26 }
 0x5e6   : > { %v3105_v38 = vadd.f32 %v3101_v7, %v3060_v3  ;;  %v3107_v57 = vadd.f32 %v3103_v8, %v3062_v55 }
 0x5e8   : > { %v3201_v14 = vadd.f32 %v6242_v19, %v3105_v38  ;;  %v3203_v18 = vadd.f32 %v3186_v33, %v3107_v57 }
 0x5ea   : > { %3218 = vst.msk [vmem:[%s6196_s11 + $0x68] sm:$0xff] %vm3204_vm8, %v3201_v14  ;;  %3220 = vst.msk [vmem:[%s6196_s11 + $0x78] sm:$0xff] %vm3204_vm8, %v3203_v18 }
 0x5eb   : > { %3765 = shalt.err (!%p3762_p13)
}
 0x5ec   : > { %s3766_s16 = scalar_lea.hbm %s6306_s8, 2048  ;;  %s3770_s9 = scalar_lea.hbm %s6368_s5, 4096 }
 0x5ed   : > { %p3767_p7 = scmp.ne.s32.totalorder %s6306_s8, %s3766_s16  ;;  %p3771_p5 = scmp.lt.u32.totalorder %s6306_s8, %s6368_s5 }
 0x5ee   : > { %p3772_p2 = scmp.lt.u32.totalorder %s3770_s9, %s3766_s16  ;;  %p3774_p0 = scmp.lt.u32.totalorder %s3766_s16, %s6306_s8 }
 0x5ef   : > { %p3768_p11 = pnand %p3767_p7, %p6888_p6 }
 0x5f0   : > { %p3773_p1 = por %p3772_p2, %p3771_p5 }
 0x5f1   : > { %p3769_p3 = pneg %p3768_p11 }
 0x5f2   : > { %p3775_p8 = por %p3774_p0, %p3773_p1 }
 0x5f4   : > { %p3776_p9 = pnand %p3775_p8, %p3769_p3 }
 0x5f6   : > { %3779 = shalt.err (!%p3776_p9)
}
 0x5f7   : > { %s3857_s25 = smov 128  }
 0x5f8   : > { %3556 = dma.vmem_to_hbm [thread:$0]  (%p6888_p6), %s6309_s10, 2048, %s6306_s8, %s3222_s21, %s3857_s25, %s3857_s25, %s3854_s15  }
 0x5f9 PF: > { %s6889_s24 = sld [smem:[#allocation17_spill]]  ;;  %s6890_s27 = sld [smem:[#allocation14_spill]] }
 0x5fa   : > { %s3252_s7 = sand.u32 1, %s3818_s18  }
 0x5fb   : > { %s3253_s11 = scalar_lea.sflag [#allocation4], %s3252_s7 }
 0x5ff   : > { %p6891_p12 = scmp.ne.s32.totalorder %s6889_s24, 0  ;;  %p6892_p4 = scmp.ge.s32.totalorder %s6890_s27, 2 }
 0x601   : > { %p3569_p10 = pnand %p6892_p4, %p6891_p12 }
 0x603   : > { %3813 = dma.done.wait (!%p3569_p10), %s3253_s11, 2048  }
 0x604   : > { %3815 = vsyncadd (!%p3569_p10), %s3253_s11, 4294965248  ;;  %s24_s23 = sadd.s32 1, %s6890_s27   ;;  %s6893_s6 = sld [smem:[#allocation12_spill]] }
 0x605   : > { %p21_p13 = scmp.ge.s32.totalorder %s24_s23, 4   ;;  %s6894_s20 = sld [smem:[#allocation16_spill]] }
 0x606   : > { %s6895_s21 = sld [smem:[#allocation13_spill]]  ;;  %s6896_s22 = sld [smem:[#allocation15_spill]] }
 0x607   : > { %s6897_s18 = smov %s3822_s19  ;;  %23 = sbr.rel (!%p21_p13) target bundleno = 10 (0xa), region = 144 }
 0x60a   : > { %s6898_s19 = smov %s6893_s6 }
 0x60e   :  { %3258 = vsyncpa [#allocation3], 1 }
 0x60f   :  { %3260 = vsyncpa [#allocation3 + $0x1], 1 }
 0x610   :  { %3261 = vsyncpa [#allocation6], 1 }
 0x611   :  { %3263 = vsyncpa [#allocation6 + $0x1], 1 }
 0x612   :  { %3264 = vsyncpa [#allocation4], 1 }
 0x613   :  { %3266 = vsyncpa [#allocation4 + $0x1], 1 }

</bundles_post_ra>
